<compile_context>
chip_gen: v7x
topology: tpu7x:2x2x1
jax: 0.10.0
libtpu: 0.0.40
codegen_flags: <defaults>
</compile_context>

<pallas_src>
import dataclasses
import math

import jax
import jax.numpy as jnp
from jax import lax
from jax.experimental import pallas as pl
from jax.experimental.pallas import tpu as pltpu


# ----------------------------------------------------------------------------
# In-kernel building blocks (all operate on small VMEM-resident values)
# ----------------------------------------------------------------------------
def _glu(g, c_half):
    return g[:, :c_half] * jax.nn.sigmoid(g[:, c_half:])


def _conv1d(x, w_ref, kernel, stride):
    """Valid Conv1d on a channels-last value.

    x: (T, C_in) value; w_ref: (kernel*C_in, C_out) ref, rows ordered
    (tap, channel).  Patches are built in-register by lane-concatenating
    `kernel` shifted views (fused im2col); for stride > 1 a 0/1 selection GEMM
    picks the strided output rows (no strided loads, no reshapes).
    """
    t_in = x.shape[0]
    t_full = t_in - kernel + 1
    if kernel == 1:
        patches = x
    else:
        patches = jnp.concatenate([x[j:j + t_full, :] for j in range(kernel)],
                                  axis=1)
    out = jnp.dot(patches, w_ref[...], preferred_element_type=jnp.float32)
    if stride == 1:
        return out
    t_out = (t_in - kernel) // stride + 1
    rows = lax.broadcasted_iota(jnp.int32, (t_out, t_full), 0)
    cols = lax.broadcasted_iota(jnp.int32, (t_out, t_full), 1)
    sel = (cols == rows * stride).astype(jnp.float32)
    return jnp.dot(sel, out, preferred_element_type=jnp.float32)


def _convtr_slab(v, wt_ref, bias_row, stride, c_out, relu):
    """ConvTranspose1d (kernel == 2*stride) fused with overlap-add + bias (+ReLU).

    v: (T_in, C_in); wt_ref: (C_in, kernel*C_out) with column = tap*C_out + c.
    Returns the (T_in+1, stride*C_out) slab: row q, column r*C_out + c is
    output sample stride*q + r, channel c.  Built fully as one value.
    """
    half = stride * c_out
    z = jnp.dot(v, wt_ref[...], preferred_element_type=jnp.float32)  # (T_in, 2*half)
    zlo = z[:, :half]          # taps 0 .. stride-1
    zhi = z[:, half:]          # taps stride .. 2*stride-1
    zero = jnp.zeros((1, half), jnp.float32)
    slab = (jnp.concatenate([zlo, zero], axis=0)
            + jnp.concatenate([zero, zhi], axis=0)
            + bias_row)
    if relu:
        slab = jnp.maximum(slab, 0.0)
    return slab


def _slab_to_time(slab, stride, c_out):
    """(Q, stride*C_out) slab -> (Q*stride, C_out) time-major value."""
    rows = []
    for q in range(slab.shape[0]):
        for r in range(stride):
            rows.append(slab[q:q + 1, r * c_out:(r + 1) * c_out])
    return jnp.concatenate(rows, axis=0)


# ----------------------------------------------------------------------------
# The mega-fused kernel
# ----------------------------------------------------------------------------
def make_fused_forward(cfg, batch, hidden, relu_flags):
    depth = cfg.depth
    n_lstm = cfg.lstm_layers
    K = cfg.kernel_size
    S = cfg.stride
    CTX = cfg.context
    H = hidden
    B = batch

    def kernel(*refs):
        it = iter(refs)
        x_ref = next(it)                                               # (B, T0, C0)
        enc_refs = [tuple(next(it) for _ in range(4)) for _ in range(depth)]
        lstm_refs = [tuple(next(it) for _ in range(3)) for _ in range(n_lstm)]
        wl_ref = next(it)
        bl_ref = next(it)
        dec_refs = [tuple(next(it) for _ in range(4)) for _ in range(depth)]
        out_ref = next(it)

        # ---- encoder: conv(K,S) + cond-bias + ReLU + 1x1 GLU (per batch) ----
        saved = []                      # saved[b][l]: encoder layer-l output
        for b in range(B):
            x = x_ref[b]                                               # (T0, C0)
            acts = []
            for (we1, b1, we2, b2) in enc_refs:
                h = _conv1d(x, we1, K, S) + b1[b:b + 1, :]
                h = jnp.maximum(h, 0.0)
                g = (jnp.dot(h, we2[...], preferred_element_type=jnp.float32)
                     + b2[b:b + 1, :])
                x = _glu(g, we2.shape[1] // 2)
                acts.append(x)
            saved.append(acts)

        # ---- BiLSTM stack: register state, batch+direction fused per step ----
        T = saved[0][-1].shape[0]
        X = jnp.concatenate([saved[b][-1] for b in range(B)], axis=0)  # (B*T, H)
        for (wih, bih, whh) in lstm_refs:
            XP = jnp.dot(X, wih[...], preferred_element_type=jnp.float32) + bih[...]
            WHH = whh[...]                                             # (H, 8H)
            hs = jnp.zeros((2 * B, H), jnp.float32)   # rows: [fwd b0..  | rev b0..]
            cs = jnp.zeros((2 * B, H), jnp.float32)
            out_f = [None] * T
            out_r = [None] * T
            for i in range(T):
                tf, tr = i, T - 1 - i
                g_rec = jnp.dot(hs, WHH, preferred_element_type=jnp.float32)  # (2B,8H)
                xp_f = jnp.concatenate(
                    [XP[b * T + tf:b * T + tf + 1, 0:4 * H] for b in range(B)],
                    axis=0)
                xp_r = jnp.concatenate(
                    [XP[b * T + tr:b * T + tr + 1, 4 * H:8 * H] for b in range(B)],
                    axis=0)
                pre = jnp.concatenate(
                    [g_rec[0:B, 0:4 * H] + xp_f,
                     g_rec[B:2 * B, 4 * H:8 * H] + xp_r], axis=0)      # (2B, 4H)
                i_g = jax.nn.sigmoid(pre[:, 0:H])
                f_g = jax.nn.sigmoid(pre[:, H:2 * H])
                g_g = jnp.tanh(pre[:, 2 * H:3 * H])
                o_g = jax.nn.sigmoid(pre[:, 3 * H:4 * H])
                cs = f_g * cs + i_g * g_g
                hs = o_g * jnp.tanh(cs)
                out_f[tf] = hs[0:B]
                out_r[tr] = hs[B:2 * B]
            rows = []
            for b in range(B):
                for t in range(T):
                    rows.append(jnp.concatenate(
                        [out_f[t][b:b + 1, :], out_r[t][b:b + 1, :]], axis=1))
            X = jnp.concatenate(rows, axis=0)                          # (B*T, 2H)

        # fused lstm_linear
        Y = jnp.dot(X, wl_ref[...], preferred_element_type=jnp.float32) + bl_ref[...]

        # ---- decoder: skip-add + context-conv GLU + convtranspose/OA (per batch) --
        for b in range(B):
            x = Y[b * T:(b + 1) * T, :]
            for d, (wd1, bd1, wt, bt) in enumerate(dec_refs):
                skip = saved[b][depth - 1 - d]
                diff = skip.shape[0] - x.shape[0]
                if diff:
                    lo = diff // 2
                    skip = skip[lo:skip.shape[0] - (diff - lo), :]
                x = x + skip
                g = _conv1d(x, wd1, CTX, 1) + bd1[b:b + 1, :]
                v = _glu(g, wd1.shape[1] // 2)
                c_out = wt.shape[1] // K
                slab = _convtr_slab(v, wt, bt[b:b + 1, :], S, c_out, relu_flags[d])
                if d == depth - 1:
                    out_ref[b] = slab            # single full store per batch
                else:
                    x = _slab_to_time(slab, S, c_out)

    return kernel


# ----------------------------------------------------------------------------
# Model config / parameters (PyTorch-equivalent init + rescale)
# ----------------------------------------------------------------------------
@dataclasses.dataclass
class Cfg:
    n_audio_channels: int = 4
    window_conditioning_size: int = 5
    kernel_size: int = 8
    stride: int = 4
    context: int = 3
    depth: int = 2
    channels: int = 16
    growth: float = 2.0
    lstm_layers: int = 2
    rescale: float = 0.1
    lstm_hidden: int = 0


def valid_length(cfg, length):
    for _ in range(cfg.depth):
        length = math.ceil((length - cfg.kernel_size) / cfg.stride) + 1
        length = max(1, length)
        length += cfg.context - 1
    for _ in range(cfg.depth):
        length = (length - 1) * cfg.stride + cfg.kernel_size
    return int(length)


def _uniform(key, shape, bound):
    return jax.random.uniform(key, shape, jnp.float32, -bound, bound)


def init_conv(key, c_in, c_out, k):
    k1, k2 = jax.random.split(key)
    bound = 1.0 / math.sqrt(c_in * k)
    return {"w": _uniform(k1, (c_out, c_in, k), bound),
            "b": _uniform(k2, (c_out,), bound)}


def init_convtr(key, c_in, c_out, k):
    k1, k2 = jax.random.split(key)
    bound = 1.0 / math.sqrt(c_in * k)
    return {"w": _uniform(k1, (c_in, c_out, k), bound),   # (C_in, C_out, K) like torch
            "b": _uniform(k2, (c_out,), bound)}


def build_params(key, cfg):
    keys = iter(jax.random.split(key, 256))
    enc_params, dec_params = [], []
    in_ch = cfg.n_audio_channels
    ch = cfg.channels
    for index in range(cfg.depth):
        enc = {
            "conv1": init_conv(next(keys), in_ch, ch, cfg.kernel_size),
            "conv2": init_conv(next(keys), ch, 2 * ch, 1),
            "gc_embed1": init_conv(next(keys), cfg.window_conditioning_size, ch, 1),
            "gc_embed2": init_conv(next(keys), cfg.window_conditioning_size, 2 * ch, 1),
        }
        enc_params.append(enc)
        out_ch = in_ch if index > 0 else 2 * cfg.n_audio_channels
        dec = {
            "conv1": init_conv(next(keys), ch, 2 * ch, cfg.context),
            "conv2": init_convtr(next(keys), ch, out_ch, cfg.kernel_size),
            "gc_embed1": init_conv(next(keys), cfg.window_conditioning_size, 2 * ch, 1),
            "gc_embed2": init_conv(next(keys), cfg.window_conditioning_size, out_ch, 1),
            "has_relu": index > 0,
        }
        dec_params.insert(0, dec)
        in_ch = ch
        ch = int(cfg.growth * ch)

    hidden = in_ch
    lstm = []
    in_size = hidden
    for _ in range(cfg.lstm_layers):
        dirs = []
        for _d in range(2):  # forward, reverse
            k1, k2, k3, k4 = jax.random.split(next(keys), 4)
            bound = 1.0 / math.sqrt(hidden)
            dirs.append({
                "w_ih": _uniform(k1, (4 * hidden, in_size), bound),
                "w_hh": _uniform(k2, (4 * hidden, hidden), bound),
                "b_ih": _uniform(k3, (4 * hidden,), bound),
                "b_hh": _uniform(k4, (4 * hidden,), bound),
            })
        lstm.append(dirs)
        in_size = 2 * hidden

    k1, k2 = jax.random.split(next(keys))
    bound = 1.0 / math.sqrt(2 * hidden)
    lstm_linear = {"w": _uniform(k1, (hidden, 2 * hidden), bound),
                   "b": _uniform(k2, (hidden,), bound)}

    def rescale(p):  # rescale_module equivalent (Conv1d / ConvTranspose1d only)
        std = jnp.std(p["w"])
        scale = jnp.sqrt(std / cfg.rescale)
        return {"w": p["w"] / scale, "b": p["b"] / scale}

    for enc in enc_params:
        for name in ("conv1", "conv2", "gc_embed1", "gc_embed2"):
            enc[name] = rescale(enc[name])
    for dec in dec_params:
        for name in ("conv1", "conv2", "gc_embed1", "gc_embed2"):
            dec[name] = rescale(dec[name])

    return {"encoder": enc_params, "decoder": dec_params,
            "lstm": lstm, "lstm_linear": lstm_linear}, hidden


# ----------------------------------------------------------------------------
# Forward pass: weight re-layout (input-side XLA glue) + one pallas_call
# ----------------------------------------------------------------------------
def cos_network_forward(params, mix, angle, cfg):
    assert cfg.kernel_size == 2 * cfg.stride, "overlap-add fusion assumes kernel == 2*stride"
    B = mix.shape[0]
    x = jnp.transpose(mix, (0, 2, 1)).astype(jnp.float32)     # (B, T, C) channels-last
    T0 = x.shape[1]
    hidden = params["lstm"][0][0]["w_hh"].shape[1]

    def embed(p):   # Conv1d(win_cond, C, 1) on a length-1 signal == tiny matmul
        return angle @ p["w"][:, :, 0].T + p["b"]

    inputs = [x]
    for enc in params["encoder"]:
        c_out = enc["conv1"]["w"].shape[0]
        we1 = jnp.transpose(enc["conv1"]["w"], (2, 1, 0)).reshape(-1, c_out)
        b1 = enc["conv1"]["b"][None, :] + embed(enc["gc_embed1"])      # (B, C)
        we2 = enc["conv2"]["w"][:, :, 0].T                             # (C, 2C)
        b2 = enc["conv2"]["b"][None, :] + embed(enc["gc_embed2"])      # (B, 2C)
        inputs += [we1, b1, we2, b2]
    for pf, pb in params["lstm"]:
        wih = jnp.concatenate([pf["w_ih"].T, pb["w_ih"].T], axis=1)    # (in, 8H)
        bih = jnp.concatenate([pf["b_ih"] + pf["b_hh"],
                               pb["b_ih"] + pb["b_hh"]])[None, :]      # (1, 8H)
        whh = jnp.concatenate([pf["w_hh"].T, pb["w_hh"].T], axis=1)    # (H, 8H)
        inputs += [wih, bih, whh]
    inputs += [params["lstm_linear"]["w"].T,                           # (2H, H)
               params["lstm_linear"]["b"][None, :]]                    # (1, H)
    relu_flags = []
    for dec in params["decoder"]:
        c2 = dec["conv1"]["w"].shape[0]                                # 2*C
        wd1 = jnp.transpose(dec["conv1"]["w"], (2, 1, 0)).reshape(-1, c2)
        bd1 = dec["conv1"]["b"][None, :] + embed(dec["gc_embed1"])     # (B, 2C)
        wt_raw = dec["conv2"]["w"]                                     # (C_in, C_out, K)
        c_outd = wt_raw.shape[1]
        wt = jnp.transpose(wt_raw, (0, 2, 1)).reshape(
            wt_raw.shape[0], cfg.kernel_size * c_outd)                 # col = tap*C_out + c
        bt = jnp.tile(dec["conv2"]["b"][None, :] + embed(dec["gc_embed2"]),
                      (1, cfg.stride))                                 # (B, stride*C_out)
        inputs += [wd1, bd1, wt, bt]
        relu_flags.append(bool(dec["has_relu"]))

    # static time-length bookkeeping for the output slab shape
    t = T0
    for _ in range(cfg.depth):
        t = (t - cfg.kernel_size) // cfg.stride + 1
    t_dec = t
    t_convtr_in = t
    for _ in range(cfg.depth):
        t_dec = t_dec - (cfg.context - 1)
        t_convtr_in = t_dec
        t_dec = (t_convtr_in - 1) * cfg.stride + cfg.kernel_size
    c_out_last = params["decoder"][-1]["conv2"]["w"].shape[1]
    out_rows = t_convtr_in + 1
    out_cols = cfg.stride * c_out_last
    t_out = t_dec                                   # == out_rows * stride

    kern = make_fused_forward(cfg, B, hidden, relu_flags)
    vmem = pl.BlockSpec(memory_space=pltpu.MemorySpace.VMEM)
    slab = pl.pallas_call(
        kern,
        out_shape=jax.ShapeDtypeStruct((B, out_rows, out_cols), jnp.float32),
        in_specs=[vmem] * len(inputs),
        out_specs=vmem,
    )(*inputs)

    # output-side XLA glue only: slab -> NCW -> (B, 2, n_audio, T)
    y = slab.reshape(B, t_out, c_out_last)
    y = jnp.transpose(y, (0, 2, 1))
    return y.reshape(B, 2, cfg.n_audio_channels, t_out)


# ----------------------------------------------------------------------------
# Main
# ----------------------------------------------------------------------------
if __name__ == "__main__":
    cfg = Cfg(n_audio_channels=4, window_conditioning_size=5, kernel_size=8,
              stride=4, context=3, depth=2, channels=16, growth=2.0,
              lstm_layers=2, rescale=0.1)

    key = jax.random.PRNGKey(0)
    pkey, mkey, akey = jax.random.split(key, 3)
    params, hidden = build_params(pkey, cfg)
    cfg.lstm_hidden = hidden

    B = 2
    T = valid_length(cfg, 32)   # -> 84 for these hyperparameters
    mix = jax.random.normal(mkey, (B, cfg.n_audio_channels, T), jnp.float32)
    angle = jax.random.normal(akey, (B, cfg.window_conditioning_size), jnp.float32)

    fwd = jax.jit(lambda m, a: cos_network_forward(params, m, a, cfg))
    out = fwd(mix, angle)
    out = jax.block_until_ready(out)

    assert out.ndim == 4 and out.shape[:3] == (B, 2, cfg.n_audio_channels), out.shape
    assert bool(jnp.all(jnp.isfinite(out)))
    print("KERNEL_OK")
</pallas_src>

<mosaic_0001>
module attributes {stable_mosaic.version = 11 : i64} {
  func.func @kernel(%arg0: memref<2x84x4xf32, #tpu.memory_space<vmem>>, %arg1: memref<32x16xf32, #tpu.memory_space<vmem>>, %arg2: memref<2x16xf32, #tpu.memory_space<vmem>>, %arg3: memref<16x32xf32, #tpu.memory_space<vmem>>, %arg4: memref<2x32xf32, #tpu.memory_space<vmem>>, %arg5: memref<128x32xf32, #tpu.memory_space<vmem>>, %arg6: memref<2x32xf32, #tpu.memory_space<vmem>>, %arg7: memref<32x64xf32, #tpu.memory_space<vmem>>, %arg8: memref<2x64xf32, #tpu.memory_space<vmem>>, %arg9: memref<32x256xf32, #tpu.memory_space<vmem>>, %arg10: memref<1x256xf32, #tpu.memory_space<vmem>>, %arg11: memref<32x256xf32, #tpu.memory_space<vmem>>, %arg12: memref<64x256xf32, #tpu.memory_space<vmem>>, %arg13: memref<1x256xf32, #tpu.memory_space<vmem>>, %arg14: memref<32x256xf32, #tpu.memory_space<vmem>>, %arg15: memref<64x32xf32, #tpu.memory_space<vmem>>, %arg16: memref<1x32xf32, #tpu.memory_space<vmem>>, %arg17: memref<96x64xf32, #tpu.memory_space<vmem>>, %arg18: memref<2x64xf32, #tpu.memory_space<vmem>>, %arg19: memref<32x128xf32, #tpu.memory_space<vmem>>, %arg20: memref<2x64xf32, #tpu.memory_space<vmem>>, %arg21: memref<48x32xf32, #tpu.memory_space<vmem>>, %arg22: memref<2x32xf32, #tpu.memory_space<vmem>>, %arg23: memref<16x64xf32, #tpu.memory_space<vmem>>, %arg24: memref<2x32xf32, #tpu.memory_space<vmem>>, %arg25: memref<2x11x32xf32, #tpu.memory_space<vmem>>) attributes {dimension_semantics = [], scalar_prefetch = 0 : i64, scratch_operands = 0 : i64, tpu.core_type = #tpu.core_type<tc>} {
    %c0 = arith.constant 0 : index
    %c0_0 = arith.constant 0 : index
    %c0_1 = arith.constant 0 : index
    %0 = vector.load %arg0[%c0, %c0_0, %c0_1] : memref<2x84x4xf32, #tpu.memory_space<vmem>>, vector<1x84x4xf32>
    %1 = vector.shape_cast %0 : vector<1x84x4xf32> to vector<84x4xf32>
    %2 = vector.extract_strided_slice %1 {offsets = [0, 0], sizes = [77, 4], strides = [1, 1]} : vector<84x4xf32> to vector<77x4xf32>
    %3 = vector.extract_strided_slice %1 {offsets = [1, 0], sizes = [77, 4], strides = [1, 1]} : vector<84x4xf32> to vector<77x4xf32>
    %4 = vector.extract_strided_slice %1 {offsets = [2, 0], sizes = [77, 4], strides = [1, 1]} : vector<84x4xf32> to vector<77x4xf32>
    %5 = vector.extract_strided_slice %1 {offsets = [3, 0], sizes = [77, 4], strides = [1, 1]} : vector<84x4xf32> to vector<77x4xf32>
    %6 = vector.extract_strided_slice %1 {offsets = [4, 0], sizes = [77, 4], strides = [1, 1]} : vector<84x4xf32> to vector<77x4xf32>
    %7 = vector.extract_strided_slice %1 {offsets = [5, 0], sizes = [77, 4], strides = [1, 1]} : vector<84x4xf32> to vector<77x4xf32>
    %8 = vector.extract_strided_slice %1 {offsets = [6, 0], sizes = [77, 4], strides = [1, 1]} : vector<84x4xf32> to vector<77x4xf32>
    %9 = vector.extract_strided_slice %1 {offsets = [7, 0], sizes = [77, 4], strides = [1, 1]} : vector<84x4xf32> to vector<77x4xf32>
    %10 = tpu.concatenate %2, %3, %4, %5, %6, %7, %8, %9 in 1 : vector<77x4xf32>, vector<77x4xf32>, vector<77x4xf32>, vector<77x4xf32>, vector<77x4xf32>, vector<77x4xf32>, vector<77x4xf32>, vector<77x4xf32> -> vector<77x32xf32>
    %c0_2 = arith.constant 0 : index
    %c0_3 = arith.constant 0 : index
    %11 = vector.load %arg1[%c0_2, %c0_3] : memref<32x16xf32, #tpu.memory_space<vmem>>, vector<32x16xf32>
    %cst = arith.constant dense<0.000000e+00> : vector<77x16xf32>
    %12 = tpu.matmul %10, %11, %cst {dimension_numbers = #tpu.dot_dimension_numbers<[1], [0], [0], [1], [0, 0, 1, 1], [], []>} : vector<77x32xf32>, vector<32x16xf32>, vector<77x16xf32> -> vector<77x16xf32>
    %13 = tpu.iota {dimensions = array<i32: 0>} : vector<20x77xi32>
    %14 = tpu.iota {dimensions = array<i32: 1>} : vector<20x77xi32>
    %c4_i32 = arith.constant 4 : i32
    %15 = vector.broadcast %c4_i32 : i32 to vector<20x77xi32>
    %16 = arith.muli %13, %15 : vector<20x77xi32>
    %17 = arith.cmpi eq, %14, %16 : vector<20x77xi32>
    %18 = arith.extui %17 : vector<20x77xi1> to vector<20x77xi32>
    %19 = arith.sitofp %18 : vector<20x77xi32> to vector<20x77xf32>
    %cst_4 = arith.constant dense<0.000000e+00> : vector<20x16xf32>
    %20 = tpu.matmul %19, %12, %cst_4 {dimension_numbers = #tpu.dot_dimension_numbers<[1], [0], [0], [1], [0, 0, 1, 1], [], []>} : vector<20x77xf32>, vector<77x16xf32>, vector<20x16xf32> -> vector<20x16xf32>
    %c0_5 = arith.constant 0 : index
    %c0_6 = arith.constant 0 : index
    %21 = vector.load %arg2[%c0_5, %c0_6] : memref<2x16xf32, #tpu.memory_space<vmem>>, vector<1x16xf32>
    %22 = vector.broadcast %21 : vector<1x16xf32> to vector<20x16xf32>
    %23 = arith.addf %20, %22 : vector<20x16xf32>
    %cst_7 = arith.constant 0.000000e+00 : f32
    %24 = vector.broadcast %cst_7 : f32 to vector<20x16xf32>
    %25 = arith.maximumf %23, %24 : vector<20x16xf32>
    %c0_8 = arith.constant 0 : index
    %c0_9 = arith.constant 0 : index
    %26 = vector.load %arg3[%c0_8, %c0_9] : memref<16x32xf32, #tpu.memory_space<vmem>>, vector<16x32xf32>
    %cst_10 = arith.constant dense<0.000000e+00> : vector<20x32xf32>
    %27 = tpu.matmul %25, %26, %cst_10 {dimension_numbers = #tpu.dot_dimension_numbers<[1], [0], [0], [1], [0, 0, 1, 1], [], []>} : vector<20x16xf32>, vector<16x32xf32>, vector<20x32xf32> -> vector<20x32xf32>
    %c0_11 = arith.constant 0 : index
    %c0_12 = arith.constant 0 : index
    %28 = vector.load %arg4[%c0_11, %c0_12] : memref<2x32xf32, #tpu.memory_space<vmem>>, vector<1x32xf32>
    %29 = vector.broadcast %28 : vector<1x32xf32> to vector<20x32xf32>
    %30 = arith.addf %27, %29 : vector<20x32xf32>
    %31 = vector.extract_strided_slice %30 {offsets = [0, 0], sizes = [20, 16], strides = [1, 1]} : vector<20x32xf32> to vector<20x16xf32>
    %32 = vector.extract_strided_slice %30 {offsets = [0, 16], sizes = [20, 16], strides = [1, 1]} : vector<20x32xf32> to vector<20x16xf32>
    %33 = arith.negf %32 : vector<20x16xf32>
    %34 = math.exp %33 : vector<20x16xf32>
    %cst_13 = arith.constant 1.000000e+00 : f32
    %35 = vector.broadcast %cst_13 : f32 to vector<20x16xf32>
    %36 = arith.addf %35, %34 : vector<20x16xf32>
    %37 = arith.divf %35, %36 : vector<20x16xf32>
    %38 = arith.mulf %31, %37 : vector<20x16xf32>
    %39 = vector.extract_strided_slice %38 {offsets = [0, 0], sizes = [13, 16], strides = [1, 1]} : vector<20x16xf32> to vector<13x16xf32>
    %40 = vector.extract_strided_slice %38 {offsets = [1, 0], sizes = [13, 16], strides = [1, 1]} : vector<20x16xf32> to vector<13x16xf32>
    %41 = vector.extract_strided_slice %38 {offsets = [2, 0], sizes = [13, 16], strides = [1, 1]} : vector<20x16xf32> to vector<13x16xf32>
    %42 = vector.extract_strided_slice %38 {offsets = [3, 0], sizes = [13, 16], strides = [1, 1]} : vector<20x16xf32> to vector<13x16xf32>
    %43 = vector.extract_strided_slice %38 {offsets = [4, 0], sizes = [13, 16], strides = [1, 1]} : vector<20x16xf32> to vector<13x16xf32>
    %44 = vector.extract_strided_slice %38 {offsets = [5, 0], sizes = [13, 16], strides = [1, 1]} : vector<20x16xf32> to vector<13x16xf32>
    %45 = vector.extract_strided_slice %38 {offsets = [6, 0], sizes = [13, 16], strides = [1, 1]} : vector<20x16xf32> to vector<13x16xf32>
    %46 = vector.extract_strided_slice %38 {offsets = [7, 0], sizes = [13, 16], strides = [1, 1]} : vector<20x16xf32> to vector<13x16xf32>
    %47 = tpu.concatenate %39, %40, %41, %42, %43, %44, %45, %46 in 1 : vector<13x16xf32>, vector<13x16xf32>, vector<13x16xf32>, vector<13x16xf32>, vector<13x16xf32>, vector<13x16xf32>, vector<13x16xf32>, vector<13x16xf32> -> vector<13x128xf32>
    %c0_14 = arith.constant 0 : index
    %c0_15 = arith.constant 0 : index
    %48 = vector.load %arg5[%c0_14, %c0_15] : memref<128x32xf32, #tpu.memory_space<vmem>>, vector<128x32xf32>
    %cst_16 = arith.constant dense<0.000000e+00> : vector<13x32xf32>
    %49 = tpu.matmul %47, %48, %cst_16 {dimension_numbers = #tpu.dot_dimension_numbers<[1], [0], [0], [1], [0, 0, 1, 1], [], []>} : vector<13x128xf32>, vector<128x32xf32>, vector<13x32xf32> -> vector<13x32xf32>
    %50 = tpu.iota {dimensions = array<i32: 0>} : vector<4x13xi32>
    %51 = tpu.iota {dimensions = array<i32: 1>} : vector<4x13xi32>
    %c4_i32_17 = arith.constant 4 : i32
    %52 = vector.broadcast %c4_i32_17 : i32 to vector<4x13xi32>
    %53 = arith.muli %50, %52 : vector<4x13xi32>
    %54 = arith.cmpi eq, %51, %53 : vector<4x13xi32>
    %55 = arith.extui %54 : vector<4x13xi1> to vector<4x13xi32>
    %56 = arith.sitofp %55 : vector<4x13xi32> to vector<4x13xf32>
    %cst_18 = arith.constant dense<0.000000e+00> : vector<4x32xf32>
    %57 = tpu.matmul %56, %49, %cst_18 {dimension_numbers = #tpu.dot_dimension_numbers<[1], [0], [0], [1], [0, 0, 1, 1], [], []>} : vector<4x13xf32>, vector<13x32xf32>, vector<4x32xf32> -> vector<4x32xf32>
    %c0_19 = arith.constant 0 : index
    %c0_20 = arith.constant 0 : index
    %58 = vector.load %arg6[%c0_19, %c0_20] : memref<2x32xf32, #tpu.memory_space<vmem>>, vector<1x32xf32>
    %59 = vector.broadcast %58 : vector<1x32xf32> to vector<4x32xf32>
    %60 = arith.addf %57, %59 : vector<4x32xf32>
    %cst_21 = arith.constant 0.000000e+00 : f32
    %61 = vector.broadcast %cst_21 : f32 to vector<4x32xf32>
    %62 = arith.maximumf %60, %61 : vector<4x32xf32>
    %c0_22 = arith.constant 0 : index
    %c0_23 = arith.constant 0 : index
    %63 = vector.load %arg7[%c0_22, %c0_23] : memref<32x64xf32, #tpu.memory_space<vmem>>, vector<32x64xf32>
    %cst_24 = arith.constant dense<0.000000e+00> : vector<4x64xf32>
    %64 = tpu.matmul %62, %63, %cst_24 {dimension_numbers = #tpu.dot_dimension_numbers<[1], [0], [0], [1], [0, 0, 1, 1], [], []>} : vector<4x32xf32>, vector<32x64xf32>, vector<4x64xf32> -> vector<4x64xf32>
    %c0_25 = arith.constant 0 : index
    %c0_26 = arith.constant 0 : index
    %65 = vector.load %arg8[%c0_25, %c0_26] : memref<2x64xf32, #tpu.memory_space<vmem>>, vector<1x64xf32>
    %66 = vector.broadcast %65 : vector<1x64xf32> to vector<4x64xf32>
    %67 = arith.addf %64, %66 : vector<4x64xf32>
    %68 = vector.extract_strided_slice %67 {offsets = [0, 0], sizes = [4, 32], strides = [1, 1]} : vector<4x64xf32> to vector<4x32xf32>
    %69 = vector.extract_strided_slice %67 {offsets = [0, 32], sizes = [4, 32], strides = [1, 1]} : vector<4x64xf32> to vector<4x32xf32>
    %70 = arith.negf %69 : vector<4x32xf32>
    %71 = math.exp %70 : vector<4x32xf32>
    %cst_27 = arith.constant 1.000000e+00 : f32
    %72 = vector.broadcast %cst_27 : f32 to vector<4x32xf32>
    %73 = arith.addf %72, %71 : vector<4x32xf32>
    %74 = arith.divf %72, %73 : vector<4x32xf32>
    %75 = arith.mulf %68, %74 : vector<4x32xf32>
    %c1 = arith.constant 1 : index
    %c0_28 = arith.constant 0 : index
    %c0_29 = arith.constant 0 : index
    %76 = vector.load %arg0[%c1, %c0_28, %c0_29] : memref<2x84x4xf32, #tpu.memory_space<vmem>>, vector<1x84x4xf32>
    %77 = vector.shape_cast %76 : vector<1x84x4xf32> to vector<84x4xf32>
    %78 = vector.extract_strided_slice %77 {offsets = [0, 0], sizes = [77, 4], strides = [1, 1]} : vector<84x4xf32> to vector<77x4xf32>
    %79 = vector.extract_strided_slice %77 {offsets = [1, 0], sizes = [77, 4], strides = [1, 1]} : vector<84x4xf32> to vector<77x4xf32>
    %80 = vector.extract_strided_slice %77 {offsets = [2, 0], sizes = [77, 4], strides = [1, 1]} : vector<84x4xf32> to vector<77x4xf32>
    %81 = vector.extract_strided_slice %77 {offsets = [3, 0], sizes = [77, 4], strides = [1, 1]} : vector<84x4xf32> to vector<77x4xf32>
    %82 = vector.extract_strided_slice %77 {offsets = [4, 0], sizes = [77, 4], strides = [1, 1]} : vector<84x4xf32> to vector<77x4xf32>
    %83 = vector.extract_strided_slice %77 {offsets = [5, 0], sizes = [77, 4], strides = [1, 1]} : vector<84x4xf32> to vector<77x4xf32>
    %84 = vector.extract_strided_slice %77 {offsets = [6, 0], sizes = [77, 4], strides = [1, 1]} : vector<84x4xf32> to vector<77x4xf32>
    %85 = vector.extract_strided_slice %77 {offsets = [7, 0], sizes = [77, 4], strides = [1, 1]} : vector<84x4xf32> to vector<77x4xf32>
    %86 = tpu.concatenate %78, %79, %80, %81, %82, %83, %84, %85 in 1 : vector<77x4xf32>, vector<77x4xf32>, vector<77x4xf32>, vector<77x4xf32>, vector<77x4xf32>, vector<77x4xf32>, vector<77x4xf32>, vector<77x4xf32> -> vector<77x32xf32>
    %c0_30 = arith.constant 0 : index
    %c0_31 = arith.constant 0 : index
    %87 = vector.load %arg1[%c0_30, %c0_31] : memref<32x16xf32, #tpu.memory_space<vmem>>, vector<32x16xf32>
    %cst_32 = arith.constant dense<0.000000e+00> : vector<77x16xf32>
    %88 = tpu.matmul %86, %87, %cst_32 {dimension_numbers = #tpu.dot_dimension_numbers<[1], [0], [0], [1], [0, 0, 1, 1], [], []>} : vector<77x32xf32>, vector<32x16xf32>, vector<77x16xf32> -> vector<77x16xf32>
    %89 = tpu.iota {dimensions = array<i32: 0>} : vector<20x77xi32>
    %90 = tpu.iota {dimensions = array<i32: 1>} : vector<20x77xi32>
    %c4_i32_33 = arith.constant 4 : i32
    %91 = vector.broadcast %c4_i32_33 : i32 to vector<20x77xi32>
    %92 = arith.muli %89, %91 : vector<20x77xi32>
    %93 = arith.cmpi eq, %90, %92 : vector<20x77xi32>
    %94 = arith.extui %93 : vector<20x77xi1> to vector<20x77xi32>
    %95 = arith.sitofp %94 : vector<20x77xi32> to vector<20x77xf32>
    %cst_34 = arith.constant dense<0.000000e+00> : vector<20x16xf32>
    %96 = tpu.matmul %95, %88, %cst_34 {dimension_numbers = #tpu.dot_dimension_numbers<[1], [0], [0], [1], [0, 0, 1, 1], [], []>} : vector<20x77xf32>, vector<77x16xf32>, vector<20x16xf32> -> vector<20x16xf32>
    %c1_35 = arith.constant 1 : index
    %c0_36 = arith.constant 0 : index
    %97 = vector.load %arg2[%c1_35, %c0_36] : memref<2x16xf32, #tpu.memory_space<vmem>>, vector<1x16xf32>
    %98 = vector.broadcast %97 : vector<1x16xf32> to vector<20x16xf32>
    %99 = arith.addf %96, %98 : vector<20x16xf32>
    %cst_37 = arith.constant 0.000000e+00 : f32
    %100 = vector.broadcast %cst_37 : f32 to vector<20x16xf32>
    %101 = arith.maximumf %99, %100 : vector<20x16xf32>
    %c0_38 = arith.constant 0 : index
    %c0_39 = arith.constant 0 : index
    %102 = vector.load %arg3[%c0_38, %c0_39] : memref<16x32xf32, #tpu.memory_space<vmem>>, vector<16x32xf32>
    %cst_40 = arith.constant dense<0.000000e+00> : vector<20x32xf32>
    %103 = tpu.matmul %101, %102, %cst_40 {dimension_numbers = #tpu.dot_dimension_numbers<[1], [0], [0], [1], [0, 0, 1, 1], [], []>} : vector<20x16xf32>, vector<16x32xf32>, vector<20x32xf32> -> vector<20x32xf32>
    %c1_41 = arith.constant 1 : index
    %c0_42 = arith.constant 0 : index
    %104 = vector.load %arg4[%c1_41, %c0_42] : memref<2x32xf32, #tpu.memory_space<vmem>>, vector<1x32xf32>
    %105 = vector.broadcast %104 : vector<1x32xf32> to vector<20x32xf32>
    %106 = arith.addf %103, %105 : vector<20x32xf32>
    %107 = vector.extract_strided_slice %106 {offsets = [0, 0], sizes = [20, 16], strides = [1, 1]} : vector<20x32xf32> to vector<20x16xf32>
    %108 = vector.extract_strided_slice %106 {offsets = [0, 16], sizes = [20, 16], strides = [1, 1]} : vector<20x32xf32> to vector<20x16xf32>
    %109 = arith.negf %108 : vector<20x16xf32>
    %110 = math.exp %109 : vector<20x16xf32>
    %cst_43 = arith.constant 1.000000e+00 : f32
    %111 = vector.broadcast %cst_43 : f32 to vector<20x16xf32>
    %112 = arith.addf %111, %110 : vector<20x16xf32>
    %113 = arith.divf %111, %112 : vector<20x16xf32>
    %114 = arith.mulf %107, %113 : vector<20x16xf32>
    %115 = vector.extract_strided_slice %114 {offsets = [0, 0], sizes = [13, 16], strides = [1, 1]} : vector<20x16xf32> to vector<13x16xf32>
    %116 = vector.extract_strided_slice %114 {offsets = [1, 0], sizes = [13, 16], strides = [1, 1]} : vector<20x16xf32> to vector<13x16xf32>
    %117 = vector.extract_strided_slice %114 {offsets = [2, 0], sizes = [13, 16], strides = [1, 1]} : vector<20x16xf32> to vector<13x16xf32>
    %118 = vector.extract_strided_slice %114 {offsets = [3, 0], sizes = [13, 16], strides = [1, 1]} : vector<20x16xf32> to vector<13x16xf32>
    %119 = vector.extract_strided_slice %114 {offsets = [4, 0], sizes = [13, 16], strides = [1, 1]} : vector<20x16xf32> to vector<13x16xf32>
    %120 = vector.extract_strided_slice %114 {offsets = [5, 0], sizes = [13, 16], strides = [1, 1]} : vector<20x16xf32> to vector<13x16xf32>
    %121 = vector.extract_strided_slice %114 {offsets = [6, 0], sizes = [13, 16], strides = [1, 1]} : vector<20x16xf32> to vector<13x16xf32>
    %122 = vector.extract_strided_slice %114 {offsets = [7, 0], sizes = [13, 16], strides = [1, 1]} : vector<20x16xf32> to vector<13x16xf32>
    %123 = tpu.concatenate %115, %116, %117, %118, %119, %120, %121, %122 in 1 : vector<13x16xf32>, vector<13x16xf32>, vector<13x16xf32>, vector<13x16xf32>, vector<13x16xf32>, vector<13x16xf32>, vector<13x16xf32>, vector<13x16xf32> -> vector<13x128xf32>
    %c0_44 = arith.constant 0 : index
    %c0_45 = arith.constant 0 : index
    %124 = vector.load %arg5[%c0_44, %c0_45] : memref<128x32xf32, #tpu.memory_space<vmem>>, vector<128x32xf32>
    %cst_46 = arith.constant dense<0.000000e+00> : vector<13x32xf32>
    %125 = tpu.matmul %123, %124, %cst_46 {dimension_numbers = #tpu.dot_dimension_numbers<[1], [0], [0], [1], [0, 0, 1, 1], [], []>} : vector<13x128xf32>, vector<128x32xf32>, vector<13x32xf32> -> vector<13x32xf32>
    %126 = tpu.iota {dimensions = array<i32: 0>} : vector<4x13xi32>
    %127 = tpu.iota {dimensions = array<i32: 1>} : vector<4x13xi32>
    %c4_i32_47 = arith.constant 4 : i32
    %128 = vector.broadcast %c4_i32_47 : i32 to vector<4x13xi32>
    %129 = arith.muli %126, %128 : vector<4x13xi32>
    %130 = arith.cmpi eq, %127, %129 : vector<4x13xi32>
    %131 = arith.extui %130 : vector<4x13xi1> to vector<4x13xi32>
    %132 = arith.sitofp %131 : vector<4x13xi32> to vector<4x13xf32>
    %cst_48 = arith.constant dense<0.000000e+00> : vector<4x32xf32>
    %133 = tpu.matmul %132, %125, %cst_48 {dimension_numbers = #tpu.dot_dimension_numbers<[1], [0], [0], [1], [0, 0, 1, 1], [], []>} : vector<4x13xf32>, vector<13x32xf32>, vector<4x32xf32> -> vector<4x32xf32>
    %c1_49 = arith.constant 1 : index
    %c0_50 = arith.constant 0 : index
    %134 = vector.load %arg6[%c1_49, %c0_50] : memref<2x32xf32, #tpu.memory_space<vmem>>, vector<1x32xf32>
    %135 = vector.broadcast %134 : vector<1x32xf32> to vector<4x32xf32>
    %136 = arith.addf %133, %135 : vector<4x32xf32>
    %cst_51 = arith.constant 0.000000e+00 : f32
    %137 = vector.broadcast %cst_51 : f32 to vector<4x32xf32>
    %138 = arith.maximumf %136, %137 : vector<4x32xf32>
    %c0_52 = arith.constant 0 : index
    %c0_53 = arith.constant 0 : index
    %139 = vector.load %arg7[%c0_52, %c0_53] : memref<32x64xf32, #tpu.memory_space<vmem>>, vector<32x64xf32>
    %cst_54 = arith.constant dense<0.000000e+00> : vector<4x64xf32>
    %140 = tpu.matmul %138, %139, %cst_54 {dimension_numbers = #tpu.dot_dimension_numbers<[1], [0], [0], [1], [0, 0, 1, 1], [], []>} : vector<4x32xf32>, vector<32x64xf32>, vector<4x64xf32> -> vector<4x64xf32>
    %c1_55 = arith.constant 1 : index
    %c0_56 = arith.constant 0 : index
    %141 = vector.load %arg8[%c1_55, %c0_56] : memref<2x64xf32, #tpu.memory_space<vmem>>, vector<1x64xf32>
    %142 = vector.broadcast %141 : vector<1x64xf32> to vector<4x64xf32>
    %143 = arith.addf %140, %142 : vector<4x64xf32>
    %144 = vector.extract_strided_slice %143 {offsets = [0, 0], sizes = [4, 32], strides = [1, 1]} : vector<4x64xf32> to vector<4x32xf32>
    %145 = vector.extract_strided_slice %143 {offsets = [0, 32], sizes = [4, 32], strides = [1, 1]} : vector<4x64xf32> to vector<4x32xf32>
    %146 = arith.negf %145 : vector<4x32xf32>
    %147 = math.exp %146 : vector<4x32xf32>
    %cst_57 = arith.constant 1.000000e+00 : f32
    %148 = vector.broadcast %cst_57 : f32 to vector<4x32xf32>
    %149 = arith.addf %148, %147 : vector<4x32xf32>
    %150 = arith.divf %148, %149 : vector<4x32xf32>
    %151 = arith.mulf %144, %150 : vector<4x32xf32>
    %152 = tpu.concatenate %75, %151 in 0 : vector<4x32xf32>, vector<4x32xf32> -> vector<8x32xf32>
    %c0_58 = arith.constant 0 : index
    %c0_59 = arith.constant 0 : index
    %153 = vector.load %arg9[%c0_58, %c0_59] : memref<32x256xf32, #tpu.memory_space<vmem>>, vector<32x256xf32>
    %cst_60 = arith.constant dense<0.000000e+00> : vector<8x256xf32>
    %154 = tpu.matmul %152, %153, %cst_60 {dimension_numbers = #tpu.dot_dimension_numbers<[1], [0], [0], [1], [0, 0, 1, 1], [], []>} : vector<8x32xf32>, vector<32x256xf32>, vector<8x256xf32> -> vector<8x256xf32>
    %c0_61 = arith.constant 0 : index
    %c0_62 = arith.constant 0 : index
    %155 = vector.load %arg10[%c0_61, %c0_62] : memref<1x256xf32, #tpu.memory_space<vmem>>, vector<1x256xf32>
    %156 = vector.broadcast %155 : vector<1x256xf32> to vector<8x256xf32>
    %157 = arith.addf %154, %156 : vector<8x256xf32>
    %c0_63 = arith.constant 0 : index
    %c0_64 = arith.constant 0 : index
    %158 = vector.load %arg11[%c0_63, %c0_64] : memref<32x256xf32, #tpu.memory_space<vmem>>, vector<32x256xf32>
    %cst_65 = arith.constant 0.000000e+00 : f32
    %159 = vector.broadcast %cst_65 : f32 to vector<4x32xf32>
    %cst_66 = arith.constant 0.000000e+00 : f32
    %160 = vector.broadcast %cst_66 : f32 to vector<4x32xf32>
    %cst_67 = arith.constant dense<0.000000e+00> : vector<4x256xf32>
    %161 = tpu.matmul %159, %158, %cst_67 {dimension_numbers = #tpu.dot_dimension_numbers<[1], [0], [0], [1], [0, 0, 1, 1], [], []>} : vector<4x32xf32>, vector<32x256xf32>, vector<4x256xf32> -> vector<4x256xf32>
    %162 = vector.extract_strided_slice %157 {offsets = [0, 0], sizes = [1, 128], strides = [1, 1]} : vector<8x256xf32> to vector<1x128xf32>
    %163 = vector.extract_strided_slice %157 {offsets = [4, 0], sizes = [1, 128], strides = [1, 1]} : vector<8x256xf32> to vector<1x128xf32>
    %164 = tpu.concatenate %162, %163 in 0 : vector<1x128xf32>, vector<1x128xf32> -> vector<2x128xf32>
    %165 = vector.extract_strided_slice %157 {offsets = [3, 128], sizes = [1, 128], strides = [1, 1]} : vector<8x256xf32> to vector<1x128xf32>
    %166 = vector.extract_strided_slice %157 {offsets = [7, 128], sizes = [1, 128], strides = [1, 1]} : vector<8x256xf32> to vector<1x128xf32>
    %167 = tpu.concatenate %165, %166 in 0 : vector<1x128xf32>, vector<1x128xf32> -> vector<2x128xf32>
    %168 = vector.extract_strided_slice %161 {offsets = [0, 0], sizes = [2, 128], strides = [1, 1]} : vector<4x256xf32> to vector<2x128xf32>
    %169 = arith.addf %168, %164 : vector<2x128xf32>
    %170 = vector.extract_strided_slice %161 {offsets = [2, 128], sizes = [2, 128], strides = [1, 1]} : vector<4x256xf32> to vector<2x128xf32>
    %171 = arith.addf %170, %167 : vector<2x128xf32>
    %172 = tpu.concatenate %169, %171 in 0 : vector<2x128xf32>, vector<2x128xf32> -> vector<4x128xf32>
    %173 = vector.extract_strided_slice %172 {offsets = [0, 0], sizes = [4, 32], strides = [1, 1]} : vector<4x128xf32> to vector<4x32xf32>
    %174 = arith.negf %173 : vector<4x32xf32>
    %175 = math.exp %174 : vector<4x32xf32>
    %cst_68 = arith.constant 1.000000e+00 : f32
    %176 = vector.broadcast %cst_68 : f32 to vector<4x32xf32>
    %177 = arith.addf %176, %175 : vector<4x32xf32>
    %178 = arith.divf %176, %177 : vector<4x32xf32>
    %179 = vector.extract_strided_slice %172 {offsets = [0, 32], sizes = [4, 32], strides = [1, 1]} : vector<4x128xf32> to vector<4x32xf32>
    %180 = arith.negf %179 : vector<4x32xf32>
    %181 = math.exp %180 : vector<4x32xf32>
    %cst_69 = arith.constant 1.000000e+00 : f32
    %182 = vector.broadcast %cst_69 : f32 to vector<4x32xf32>
    %183 = arith.addf %182, %181 : vector<4x32xf32>
    %184 = arith.divf %182, %183 : vector<4x32xf32>
    %185 = vector.extract_strided_slice %172 {offsets = [0, 64], sizes = [4, 32], strides = [1, 1]} : vector<4x128xf32> to vector<4x32xf32>
    %186 = math.tanh %185 : vector<4x32xf32>
    %187 = vector.extract_strided_slice %172 {offsets = [0, 96], sizes = [4, 32], strides = [1, 1]} : vector<4x128xf32> to vector<4x32xf32>
    %188 = arith.negf %187 : vector<4x32xf32>
    %189 = math.exp %188 : vector<4x32xf32>
    %cst_70 = arith.constant 1.000000e+00 : f32
    %190 = vector.broadcast %cst_70 : f32 to vector<4x32xf32>
    %191 = arith.addf %190, %189 : vector<4x32xf32>
    %192 = arith.divf %190, %191 : vector<4x32xf32>
    %193 = arith.mulf %184, %160 : vector<4x32xf32>
    %194 = arith.mulf %178, %186 : vector<4x32xf32>
    %195 = arith.addf %193, %194 : vector<4x32xf32>
    %196 = math.tanh %195 : vector<4x32xf32>
    %197 = arith.mulf %192, %196 : vector<4x32xf32>
    %198 = vector.extract_strided_slice %197 {offsets = [0, 0], sizes = [2, 32], strides = [1, 1]} : vector<4x32xf32> to vector<2x32xf32>
    %199 = vector.extract_strided_slice %197 {offsets = [2, 0], sizes = [2, 32], strides = [1, 1]} : vector<4x32xf32> to vector<2x32xf32>
    %cst_71 = arith.constant dense<0.000000e+00> : vector<4x256xf32>
    %200 = tpu.matmul %197, %158, %cst_71 {dimension_numbers = #tpu.dot_dimension_numbers<[1], [0], [0], [1], [0, 0, 1, 1], [], []>} : vector<4x32xf32>, vector<32x256xf32>, vector<4x256xf32> -> vector<4x256xf32>
    %201 = vector.extract_strided_slice %157 {offsets = [1, 0], sizes = [1, 128], strides = [1, 1]} : vector<8x256xf32> to vector<1x128xf32>
    %202 = vector.extract_strided_slice %157 {offsets = [5, 0], sizes = [1, 128], strides = [1, 1]} : vector<8x256xf32> to vector<1x128xf32>
    %203 = tpu.concatenate %201, %202 in 0 : vector<1x128xf32>, vector<1x128xf32> -> vector<2x128xf32>
    %204 = vector.extract_strided_slice %157 {offsets = [2, 128], sizes = [1, 128], strides = [1, 1]} : vector<8x256xf32> to vector<1x128xf32>
    %205 = vector.extract_strided_slice %157 {offsets = [6, 128], sizes = [1, 128], strides = [1, 1]} : vector<8x256xf32> to vector<1x128xf32>
    %206 = tpu.concatenate %204, %205 in 0 : vector<1x128xf32>, vector<1x128xf32> -> vector<2x128xf32>
    %207 = vector.extract_strided_slice %200 {offsets = [0, 0], sizes = [2, 128], strides = [1, 1]} : vector<4x256xf32> to vector<2x128xf32>
    %208 = arith.addf %207, %203 : vector<2x128xf32>
    %209 = vector.extract_strided_slice %200 {offsets = [2, 128], sizes = [2, 128], strides = [1, 1]} : vector<4x256xf32> to vector<2x128xf32>
    %210 = arith.addf %209, %206 : vector<2x128xf32>
    %211 = tpu.concatenate %208, %210 in 0 : vector<2x128xf32>, vector<2x128xf32> -> vector<4x128xf32>
    %212 = vector.extract_strided_slice %211 {offsets = [0, 0], sizes = [4, 32], strides = [1, 1]} : vector<4x128xf32> to vector<4x32xf32>
    %213 = arith.negf %212 : vector<4x32xf32>
    %214 = math.exp %213 : vector<4x32xf32>
    %cst_72 = arith.constant 1.000000e+00 : f32
    %215 = vector.broadcast %cst_72 : f32 to vector<4x32xf32>
    %216 = arith.addf %215, %214 : vector<4x32xf32>
    %217 = arith.divf %215, %216 : vector<4x32xf32>
    %218 = vector.extract_strided_slice %211 {offsets = [0, 32], sizes = [4, 32], strides = [1, 1]} : vector<4x128xf32> to vector<4x32xf32>
    %219 = arith.negf %218 : vector<4x32xf32>
    %220 = math.exp %219 : vector<4x32xf32>
    %cst_73 = arith.constant 1.000000e+00 : f32
    %221 = vector.broadcast %cst_73 : f32 to vector<4x32xf32>
    %222 = arith.addf %221, %220 : vector<4x32xf32>
    %223 = arith.divf %221, %222 : vector<4x32xf32>
    %224 = vector.extract_strided_slice %211 {offsets = [0, 64], sizes = [4, 32], strides = [1, 1]} : vector<4x128xf32> to vector<4x32xf32>
    %225 = math.tanh %224 : vector<4x32xf32>
    %226 = vector.extract_strided_slice %211 {offsets = [0, 96], sizes = [4, 32], strides = [1, 1]} : vector<4x128xf32> to vector<4x32xf32>
    %227 = arith.negf %226 : vector<4x32xf32>
    %228 = math.exp %227 : vector<4x32xf32>
    %cst_74 = arith.constant 1.000000e+00 : f32
    %229 = vector.broadcast %cst_74 : f32 to vector<4x32xf32>
    %230 = arith.addf %229, %228 : vector<4x32xf32>
    %231 = arith.divf %229, %230 : vector<4x32xf32>
    %232 = arith.mulf %223, %195 : vector<4x32xf32>
    %233 = arith.mulf %217, %225 : vector<4x32xf32>
    %234 = arith.addf %232, %233 : vector<4x32xf32>
    %235 = math.tanh %234 : vector<4x32xf32>
    %236 = arith.mulf %231, %235 : vector<4x32xf32>
    %237 = vector.extract_strided_slice %236 {offsets = [0, 0], sizes = [2, 32], strides = [1, 1]} : vector<4x32xf32> to vector<2x32xf32>
    %238 = vector.extract_strided_slice %236 {offsets = [2, 0], sizes = [2, 32], strides = [1, 1]} : vector<4x32xf32> to vector<2x32xf32>
    %cst_75 = arith.constant dense<0.000000e+00> : vector<4x256xf32>
    %239 = tpu.matmul %236, %158, %cst_75 {dimension_numbers = #tpu.dot_dimension_numbers<[1], [0], [0], [1], [0, 0, 1, 1], [], []>} : vector<4x32xf32>, vector<32x256xf32>, vector<4x256xf32> -> vector<4x256xf32>
    %240 = vector.extract_strided_slice %157 {offsets = [2, 0], sizes = [1, 128], strides = [1, 1]} : vector<8x256xf32> to vector<1x128xf32>
    %241 = vector.extract_strided_slice %157 {offsets = [6, 0], sizes = [1, 128], strides = [1, 1]} : vector<8x256xf32> to vector<1x128xf32>
    %242 = tpu.concatenate %240, %241 in 0 : vector<1x128xf32>, vector<1x128xf32> -> vector<2x128xf32>
    %243 = vector.extract_strided_slice %157 {offsets = [1, 128], sizes = [1, 128], strides = [1, 1]} : vector<8x256xf32> to vector<1x128xf32>
    %244 = vector.extract_strided_slice %157 {offsets = [5, 128], sizes = [1, 128], strides = [1, 1]} : vector<8x256xf32> to vector<1x128xf32>
    %245 = tpu.concatenate %243, %244 in 0 : vector<1x128xf32>, vector<1x128xf32> -> vector<2x128xf32>
    %246 = vector.extract_strided_slice %239 {offsets = [0, 0], sizes = [2, 128], strides = [1, 1]} : vector<4x256xf32> to vector<2x128xf32>
    %247 = arith.addf %246, %242 : vector<2x128xf32>
    %248 = vector.extract_strided_slice %239 {offsets = [2, 128], sizes = [2, 128], strides = [1, 1]} : vector<4x256xf32> to vector<2x128xf32>
    %249 = arith.addf %248, %245 : vector<2x128xf32>
    %250 = tpu.concatenate %247, %249 in 0 : vector<2x128xf32>, vector<2x128xf32> -> vector<4x128xf32>
    %251 = vector.extract_strided_slice %250 {offsets = [0, 0], sizes = [4, 32], strides = [1, 1]} : vector<4x128xf32> to vector<4x32xf32>
    %252 = arith.negf %251 : vector<4x32xf32>
    %253 = math.exp %252 : vector<4x32xf32>
    %cst_76 = arith.constant 1.000000e+00 : f32
    %254 = vector.broadcast %cst_76 : f32 to vector<4x32xf32>
    %255 = arith.addf %254, %253 : vector<4x32xf32>
    %256 = arith.divf %254, %255 : vector<4x32xf32>
    %257 = vector.extract_strided_slice %250 {offsets = [0, 32], sizes = [4, 32], strides = [1, 1]} : vector<4x128xf32> to vector<4x32xf32>
    %258 = arith.negf %257 : vector<4x32xf32>
    %259 = math.exp %258 : vector<4x32xf32>
    %cst_77 = arith.constant 1.000000e+00 : f32
    %260 = vector.broadcast %cst_77 : f32 to vector<4x32xf32>
    %261 = arith.addf %260, %259 : vector<4x32xf32>
    %262 = arith.divf %260, %261 : vector<4x32xf32>
    %263 = vector.extract_strided_slice %250 {offsets = [0, 64], sizes = [4, 32], strides = [1, 1]} : vector<4x128xf32> to vector<4x32xf32>
    %264 = math.tanh %263 : vector<4x32xf32>
    %265 = vector.extract_strided_slice %250 {offsets = [0, 96], sizes = [4, 32], strides = [1, 1]} : vector<4x128xf32> to vector<4x32xf32>
    %266 = arith.negf %265 : vector<4x32xf32>
    %267 = math.exp %266 : vector<4x32xf32>
    %cst_78 = arith.constant 1.000000e+00 : f32
    %268 = vector.broadcast %cst_78 : f32 to vector<4x32xf32>
    %269 = arith.addf %268, %267 : vector<4x32xf32>
    %270 = arith.divf %268, %269 : vector<4x32xf32>
    %271 = arith.mulf %262, %234 : vector<4x32xf32>
    %272 = arith.mulf %256, %264 : vector<4x32xf32>
    %273 = arith.addf %271, %272 : vector<4x32xf32>
    %274 = math.tanh %273 : vector<4x32xf32>
    %275 = arith.mulf %270, %274 : vector<4x32xf32>
    %276 = vector.extract_strided_slice %275 {offsets = [0, 0], sizes = [2, 32], strides = [1, 1]} : vector<4x32xf32> to vector<2x32xf32>
    %277 = vector.extract_strided_slice %275 {offsets = [2, 0], sizes = [2, 32], strides = [1, 1]} : vector<4x32xf32> to vector<2x32xf32>
    %cst_79 = arith.constant dense<0.000000e+00> : vector<4x256xf32>
    %278 = tpu.matmul %275, %158, %cst_79 {dimension_numbers = #tpu.dot_dimension_numbers<[1], [0], [0], [1], [0, 0, 1, 1], [], []>} : vector<4x32xf32>, vector<32x256xf32>, vector<4x256xf32> -> vector<4x256xf32>
    %279 = vector.extract_strided_slice %157 {offsets = [3, 0], sizes = [1, 128], strides = [1, 1]} : vector<8x256xf32> to vector<1x128xf32>
    %280 = vector.extract_strided_slice %157 {offsets = [7, 0], sizes = [1, 128], strides = [1, 1]} : vector<8x256xf32> to vector<1x128xf32>
    %281 = tpu.concatenate %279, %280 in 0 : vector<1x128xf32>, vector<1x128xf32> -> vector<2x128xf32>
    %282 = vector.extract_strided_slice %157 {offsets = [0, 128], sizes = [1, 128], strides = [1, 1]} : vector<8x256xf32> to vector<1x128xf32>
    %283 = vector.extract_strided_slice %157 {offsets = [4, 128], sizes = [1, 128], strides = [1, 1]} : vector<8x256xf32> to vector<1x128xf32>
    %284 = tpu.concatenate %282, %283 in 0 : vector<1x128xf32>, vector<1x128xf32> -> vector<2x128xf32>
    %285 = vector.extract_strided_slice %278 {offsets = [0, 0], sizes = [2, 128], strides = [1, 1]} : vector<4x256xf32> to vector<2x128xf32>
    %286 = arith.addf %285, %281 : vector<2x128xf32>
    %287 = vector.extract_strided_slice %278 {offsets = [2, 128], sizes = [2, 128], strides = [1, 1]} : vector<4x256xf32> to vector<2x128xf32>
    %288 = arith.addf %287, %284 : vector<2x128xf32>
    %289 = tpu.concatenate %286, %288 in 0 : vector<2x128xf32>, vector<2x128xf32> -> vector<4x128xf32>
    %290 = vector.extract_strided_slice %289 {offsets = [0, 0], sizes = [4, 32], strides = [1, 1]} : vector<4x128xf32> to vector<4x32xf32>
    %291 = arith.negf %290 : vector<4x32xf32>
    %292 = math.exp %291 : vector<4x32xf32>
    %cst_80 = arith.constant 1.000000e+00 : f32
    %293 = vector.broadcast %cst_80 : f32 to vector<4x32xf32>
    %294 = arith.addf %293, %292 : vector<4x32xf32>
    %295 = arith.divf %293, %294 : vector<4x32xf32>
    %296 = vector.extract_strided_slice %289 {offsets = [0, 32], sizes = [4, 32], strides = [1, 1]} : vector<4x128xf32> to vector<4x32xf32>
    %297 = arith.negf %296 : vector<4x32xf32>
    %298 = math.exp %297 : vector<4x32xf32>
    %cst_81 = arith.constant 1.000000e+00 : f32
    %299 = vector.broadcast %cst_81 : f32 to vector<4x32xf32>
    %300 = arith.addf %299, %298 : vector<4x32xf32>
    %301 = arith.divf %299, %300 : vector<4x32xf32>
    %302 = vector.extract_strided_slice %289 {offsets = [0, 64], sizes = [4, 32], strides = [1, 1]} : vector<4x128xf32> to vector<4x32xf32>
    %303 = math.tanh %302 : vector<4x32xf32>
    %304 = vector.extract_strided_slice %289 {offsets = [0, 96], sizes = [4, 32], strides = [1, 1]} : vector<4x128xf32> to vector<4x32xf32>
    %305 = arith.negf %304 : vector<4x32xf32>
    %306 = math.exp %305 : vector<4x32xf32>
    %cst_82 = arith.constant 1.000000e+00 : f32
    %307 = vector.broadcast %cst_82 : f32 to vector<4x32xf32>
    %308 = arith.addf %307, %306 : vector<4x32xf32>
    %309 = arith.divf %307, %308 : vector<4x32xf32>
    %310 = arith.mulf %301, %273 : vector<4x32xf32>
    %311 = arith.mulf %295, %303 : vector<4x32xf32>
    %312 = arith.addf %310, %311 : vector<4x32xf32>
    %313 = math.tanh %312 : vector<4x32xf32>
    %314 = arith.mulf %309, %313 : vector<4x32xf32>
    %315 = vector.extract_strided_slice %314 {offsets = [0, 0], sizes = [2, 32], strides = [1, 1]} : vector<4x32xf32> to vector<2x32xf32>
    %316 = vector.extract_strided_slice %314 {offsets = [2, 0], sizes = [2, 32], strides = [1, 1]} : vector<4x32xf32> to vector<2x32xf32>
    %317 = vector.extract_strided_slice %198 {offsets = [0, 0], sizes = [1, 32], strides = [1, 1]} : vector<2x32xf32> to vector<1x32xf32>
    %318 = vector.extract_strided_slice %316 {offsets = [0, 0], sizes = [1, 32], strides = [1, 1]} : vector<2x32xf32> to vector<1x32xf32>
    %319 = tpu.concatenate %317, %318 in 1 : vector<1x32xf32>, vector<1x32xf32> -> vector<1x64xf32>
    %320 = vector.extract_strided_slice %237 {offsets = [0, 0], sizes = [1, 32], strides = [1, 1]} : vector<2x32xf32> to vector<1x32xf32>
    %321 = vector.extract_strided_slice %277 {offsets = [0, 0], sizes = [1, 32], strides = [1, 1]} : vector<2x32xf32> to vector<1x32xf32>
    %322 = tpu.concatenate %320, %321 in 1 : vector<1x32xf32>, vector<1x32xf32> -> vector<1x64xf32>
    %323 = vector.extract_strided_slice %276 {offsets = [0, 0], sizes = [1, 32], strides = [1, 1]} : vector<2x32xf32> to vector<1x32xf32>
    %324 = vector.extract_strided_slice %238 {offsets = [0, 0], sizes = [1, 32], strides = [1, 1]} : vector<2x32xf32> to vector<1x32xf32>
    %325 = tpu.concatenate %323, %324 in 1 : vector<1x32xf32>, vector<1x32xf32> -> vector<1x64xf32>
    %326 = vector.extract_strided_slice %315 {offsets = [0, 0], sizes = [1, 32], strides = [1, 1]} : vector<2x32xf32> to vector<1x32xf32>
    %327 = vector.extract_strided_slice %199 {offsets = [0, 0], sizes = [1, 32], strides = [1, 1]} : vector<2x32xf32> to vector<1x32xf32>
    %328 = tpu.concatenate %326, %327 in 1 : vector<1x32xf32>, vector<1x32xf32> -> vector<1x64xf32>
    %329 = vector.extract_strided_slice %198 {offsets = [1, 0], sizes = [1, 32], strides = [1, 1]} : vector<2x32xf32> to vector<1x32xf32>
    %330 = vector.extract_strided_slice %316 {offsets = [1, 0], sizes = [1, 32], strides = [1, 1]} : vector<2x32xf32> to vector<1x32xf32>
    %331 = tpu.concatenate %329, %330 in 1 : vector<1x32xf32>, vector<1x32xf32> -> vector<1x64xf32>
    %332 = vector.extract_strided_slice %237 {offsets = [1, 0], sizes = [1, 32], strides = [1, 1]} : vector<2x32xf32> to vector<1x32xf32>
    %333 = vector.extract_strided_slice %277 {offsets = [1, 0], sizes = [1, 32], strides = [1, 1]} : vector<2x32xf32> to vector<1x32xf32>
    %334 = tpu.concatenate %332, %333 in 1 : vector<1x32xf32>, vector<1x32xf32> -> vector<1x64xf32>
    %335 = vector.extract_strided_slice %276 {offsets = [1, 0], sizes = [1, 32], strides = [1, 1]} : vector<2x32xf32> to vector<1x32xf32>
    %336 = vector.extract_strided_slice %238 {offsets = [1, 0], sizes = [1, 32], strides = [1, 1]} : vector<2x32xf32> to vector<1x32xf32>
    %337 = tpu.concatenate %335, %336 in 1 : vector<1x32xf32>, vector<1x32xf32> -> vector<1x64xf32>
    %338 = vector.extract_strided_slice %315 {offsets = [1, 0], sizes = [1, 32], strides = [1, 1]} : vector<2x32xf32> to vector<1x32xf32>
    %339 = vector.extract_strided_slice %199 {offsets = [1, 0], sizes = [1, 32], strides = [1, 1]} : vector<2x32xf32> to vector<1x32xf32>
    %340 = tpu.concatenate %338, %339 in 1 : vector<1x32xf32>, vector<1x32xf32> -> vector<1x64xf32>
    %341 = tpu.concatenate %319, %322, %325, %328, %331, %334, %337, %340 in 0 : vector<1x64xf32>, vector<1x64xf32>, vector<1x64xf32>, vector<1x64xf32>, vector<1x64xf32>, vector<1x64xf32>, vector<1x64xf32>, vector<1x64xf32> -> vector<8x64xf32>
    %c0_83 = arith.constant 0 : index
    %c0_84 = arith.constant 0 : index
    %342 = vector.load %arg12[%c0_83, %c0_84] : memref<64x256xf32, #tpu.memory_space<vmem>>, vector<64x256xf32>
    %cst_85 = arith.constant dense<0.000000e+00> : vector<8x256xf32>
    %343 = tpu.matmul %341, %342, %cst_85 {dimension_numbers = #tpu.dot_dimension_numbers<[1], [0], [0], [1], [0, 0, 1, 1], [], []>} : vector<8x64xf32>, vector<64x256xf32>, vector<8x256xf32> -> vector<8x256xf32>
    %c0_86 = arith.constant 0 : index
    %c0_87 = arith.constant 0 : index
    %344 = vector.load %arg13[%c0_86, %c0_87] : memref<1x256xf32, #tpu.memory_space<vmem>>, vector<1x256xf32>
    %345 = vector.broadcast %344 : vector<1x256xf32> to vector<8x256xf32>
    %346 = arith.addf %343, %345 : vector<8x256xf32>
    %c0_88 = arith.constant 0 : index
    %c0_89 = arith.constant 0 : index
    %347 = vector.load %arg14[%c0_88, %c0_89] : memref<32x256xf32, #tpu.memory_space<vmem>>, vector<32x256xf32>
    %cst_90 = arith.constant 0.000000e+00 : f32
    %348 = vector.broadcast %cst_90 : f32 to vector<4x32xf32>
    %cst_91 = arith.constant 0.000000e+00 : f32
    %349 = vector.broadcast %cst_91 : f32 to vector<4x32xf32>
    %cst_92 = arith.constant dense<0.000000e+00> : vector<4x256xf32>
    %350 = tpu.matmul %348, %347, %cst_92 {dimension_numbers = #tpu.dot_dimension_numbers<[1], [0], [0], [1], [0, 0, 1, 1], [], []>} : vector<4x32xf32>, vector<32x256xf32>, vector<4x256xf32> -> vector<4x256xf32>
    %351 = vector.extract_strided_slice %346 {offsets = [0, 0], sizes = [1, 128], strides = [1, 1]} : vector<8x256xf32> to vector<1x128xf32>
    %352 = vector.extract_strided_slice %346 {offsets = [4, 0], sizes = [1, 128], strides = [1, 1]} : vector<8x256xf32> to vector<1x128xf32>
    %353 = tpu.concatenate %351, %352 in 0 : vector<1x128xf32>, vector<1x128xf32> -> vector<2x128xf32>
    %354 = vector.extract_strided_slice %346 {offsets = [3, 128], sizes = [1, 128], strides = [1, 1]} : vector<8x256xf32> to vector<1x128xf32>
    %355 = vector.extract_strided_slice %346 {offsets = [7, 128], sizes = [1, 128], strides = [1, 1]} : vector<8x256xf32> to vector<1x128xf32>
    %356 = tpu.concatenate %354, %355 in 0 : vector<1x128xf32>, vector<1x128xf32> -> vector<2x128xf32>
    %357 = vector.extract_strided_slice %350 {offsets = [0, 0], sizes = [2, 128], strides = [1, 1]} : vector<4x256xf32> to vector<2x128xf32>
    %358 = arith.addf %357, %353 : vector<2x128xf32>
    %359 = vector.extract_strided_slice %350 {offsets = [2, 128], sizes = [2, 128], strides = [1, 1]} : vector<4x256xf32> to vector<2x128xf32>
    %360 = arith.addf %359, %356 : vector<2x128xf32>
    %361 = tpu.concatenate %358, %360 in 0 : vector<2x128xf32>, vector<2x128xf32> -> vector<4x128xf32>
    %362 = vector.extract_strided_slice %361 {offsets = [0, 0], sizes = [4, 32], strides = [1, 1]} : vector<4x128xf32> to vector<4x32xf32>
    %363 = arith.negf %362 : vector<4x32xf32>
    %364 = math.exp %363 : vector<4x32xf32>
    %cst_93 = arith.constant 1.000000e+00 : f32
    %365 = vector.broadcast %cst_93 : f32 to vector<4x32xf32>
    %366 = arith.addf %365, %364 : vector<4x32xf32>
    %367 = arith.divf %365, %366 : vector<4x32xf32>
    %368 = vector.extract_strided_slice %361 {offsets = [0, 32], sizes = [4, 32], strides = [1, 1]} : vector<4x128xf32> to vector<4x32xf32>
    %369 = arith.negf %368 : vector<4x32xf32>
    %370 = math.exp %369 : vector<4x32xf32>
    %cst_94 = arith.constant 1.000000e+00 : f32
    %371 = vector.broadcast %cst_94 : f32 to vector<4x32xf32>
    %372 = arith.addf %371, %370 : vector<4x32xf32>
    %373 = arith.divf %371, %372 : vector<4x32xf32>
    %374 = vector.extract_strided_slice %361 {offsets = [0, 64], sizes = [4, 32], strides = [1, 1]} : vector<4x128xf32> to vector<4x32xf32>
    %375 = math.tanh %374 : vector<4x32xf32>
    %376 = vector.extract_strided_slice %361 {offsets = [0, 96], sizes = [4, 32], strides = [1, 1]} : vector<4x128xf32> to vector<4x32xf32>
    %377 = arith.negf %376 : vector<4x32xf32>
    %378 = math.exp %377 : vector<4x32xf32>
    %cst_95 = arith.constant 1.000000e+00 : f32
    %379 = vector.broadcast %cst_95 : f32 to vector<4x32xf32>
    %380 = arith.addf %379, %378 : vector<4x32xf32>
    %381 = arith.divf %379, %380 : vector<4x32xf32>
    %382 = arith.mulf %373, %349 : vector<4x32xf32>
    %383 = arith.mulf %367, %375 : vector<4x32xf32>
    %384 = arith.addf %382, %383 : vector<4x32xf32>
    %385 = math.tanh %384 : vector<4x32xf32>
    %386 = arith.mulf %381, %385 : vector<4x32xf32>
    %387 = vector.extract_strided_slice %386 {offsets = [0, 0], sizes = [2, 32], strides = [1, 1]} : vector<4x32xf32> to vector<2x32xf32>
    %388 = vector.extract_strided_slice %386 {offsets = [2, 0], sizes = [2, 32], strides = [1, 1]} : vector<4x32xf32> to vector<2x32xf32>
    %cst_96 = arith.constant dense<0.000000e+00> : vector<4x256xf32>
    %389 = tpu.matmul %386, %347, %cst_96 {dimension_numbers = #tpu.dot_dimension_numbers<[1], [0], [0], [1], [0, 0, 1, 1], [], []>} : vector<4x32xf32>, vector<32x256xf32>, vector<4x256xf32> -> vector<4x256xf32>
    %390 = vector.extract_strided_slice %346 {offsets = [1, 0], sizes = [1, 128], strides = [1, 1]} : vector<8x256xf32> to vector<1x128xf32>
    %391 = vector.extract_strided_slice %346 {offsets = [5, 0], sizes = [1, 128], strides = [1, 1]} : vector<8x256xf32> to vector<1x128xf32>
    %392 = tpu.concatenate %390, %391 in 0 : vector<1x128xf32>, vector<1x128xf32> -> vector<2x128xf32>
    %393 = vector.extract_strided_slice %346 {offsets = [2, 128], sizes = [1, 128], strides = [1, 1]} : vector<8x256xf32> to vector<1x128xf32>
    %394 = vector.extract_strided_slice %346 {offsets = [6, 128], sizes = [1, 128], strides = [1, 1]} : vector<8x256xf32> to vector<1x128xf32>
    %395 = tpu.concatenate %393, %394 in 0 : vector<1x128xf32>, vector<1x128xf32> -> vector<2x128xf32>
    %396 = vector.extract_strided_slice %389 {offsets = [0, 0], sizes = [2, 128], strides = [1, 1]} : vector<4x256xf32> to vector<2x128xf32>
    %397 = arith.addf %396, %392 : vector<2x128xf32>
    %398 = vector.extract_strided_slice %389 {offsets = [2, 128], sizes = [2, 128], strides = [1, 1]} : vector<4x256xf32> to vector<2x128xf32>
    %399 = arith.addf %398, %395 : vector<2x128xf32>
    %400 = tpu.concatenate %397, %399 in 0 : vector<2x128xf32>, vector<2x128xf32> -> vector<4x128xf32>
    %401 = vector.extract_strided_slice %400 {offsets = [0, 0], sizes = [4, 32], strides = [1, 1]} : vector<4x128xf32> to vector<4x32xf32>
    %402 = arith.negf %401 : vector<4x32xf32>
    %403 = math.exp %402 : vector<4x32xf32>
    %cst_97 = arith.constant 1.000000e+00 : f32
    %404 = vector.broadcast %cst_97 : f32 to vector<4x32xf32>
    %405 = arith.addf %404, %403 : vector<4x32xf32>
    %406 = arith.divf %404, %405 : vector<4x32xf32>
    %407 = vector.extract_strided_slice %400 {offsets = [0, 32], sizes = [4, 32], strides = [1, 1]} : vector<4x128xf32> to vector<4x32xf32>
    %408 = arith.negf %407 : vector<4x32xf32>
    %409 = math.exp %408 : vector<4x32xf32>
    %cst_98 = arith.constant 1.000000e+00 : f32
    %410 = vector.broadcast %cst_98 : f32 to vector<4x32xf32>
    %411 = arith.addf %410, %409 : vector<4x32xf32>
    %412 = arith.divf %410, %411 : vector<4x32xf32>
    %413 = vector.extract_strided_slice %400 {offsets = [0, 64], sizes = [4, 32], strides = [1, 1]} : vector<4x128xf32> to vector<4x32xf32>
    %414 = math.tanh %413 : vector<4x32xf32>
    %415 = vector.extract_strided_slice %400 {offsets = [0, 96], sizes = [4, 32], strides = [1, 1]} : vector<4x128xf32> to vector<4x32xf32>
    %416 = arith.negf %415 : vector<4x32xf32>
    %417 = math.exp %416 : vector<4x32xf32>
    %cst_99 = arith.constant 1.000000e+00 : f32
    %418 = vector.broadcast %cst_99 : f32 to vector<4x32xf32>
    %419 = arith.addf %418, %417 : vector<4x32xf32>
    %420 = arith.divf %418, %419 : vector<4x32xf32>
    %421 = arith.mulf %412, %384 : vector<4x32xf32>
    %422 = arith.mulf %406, %414 : vector<4x32xf32>
    %423 = arith.addf %421, %422 : vector<4x32xf32>
    %424 = math.tanh %423 : vector<4x32xf32>
    %425 = arith.mulf %420, %424 : vector<4x32xf32>
    %426 = vector.extract_strided_slice %425 {offsets = [0, 0], sizes = [2, 32], strides = [1, 1]} : vector<4x32xf32> to vector<2x32xf32>
    %427 = vector.extract_strided_slice %425 {offsets = [2, 0], sizes = [2, 32], strides = [1, 1]} : vector<4x32xf32> to vector<2x32xf32>
    %cst_100 = arith.constant dense<0.000000e+00> : vector<4x256xf32>
    %428 = tpu.matmul %425, %347, %cst_100 {dimension_numbers = #tpu.dot_dimension_numbers<[1], [0], [0], [1], [0, 0, 1, 1], [], []>} : vector<4x32xf32>, vector<32x256xf32>, vector<4x256xf32> -> vector<4x256xf32>
    %429 = vector.extract_strided_slice %346 {offsets = [2, 0], sizes = [1, 128], strides = [1, 1]} : vector<8x256xf32> to vector<1x128xf32>
    %430 = vector.extract_strided_slice %346 {offsets = [6, 0], sizes = [1, 128], strides = [1, 1]} : vector<8x256xf32> to vector<1x128xf32>
    %431 = tpu.concatenate %429, %430 in 0 : vector<1x128xf32>, vector<1x128xf32> -> vector<2x128xf32>
    %432 = vector.extract_strided_slice %346 {offsets = [1, 128], sizes = [1, 128], strides = [1, 1]} : vector<8x256xf32> to vector<1x128xf32>
    %433 = vector.extract_strided_slice %346 {offsets = [5, 128], sizes = [1, 128], strides = [1, 1]} : vector<8x256xf32> to vector<1x128xf32>
    %434 = tpu.concatenate %432, %433 in 0 : vector<1x128xf32>, vector<1x128xf32> -> vector<2x128xf32>
    %435 = vector.extract_strided_slice %428 {offsets = [0, 0], sizes = [2, 128], strides = [1, 1]} : vector<4x256xf32> to vector<2x128xf32>
    %436 = arith.addf %435, %431 : vector<2x128xf32>
    %437 = vector.extract_strided_slice %428 {offsets = [2, 128], sizes = [2, 128], strides = [1, 1]} : vector<4x256xf32> to vector<2x128xf32>
    %438 = arith.addf %437, %434 : vector<2x128xf32>
    %439 = tpu.concatenate %436, %438 in 0 : vector<2x128xf32>, vector<2x128xf32> -> vector<4x128xf32>
    %440 = vector.extract_strided_slice %439 {offsets = [0, 0], sizes = [4, 32], strides = [1, 1]} : vector<4x128xf32> to vector<4x32xf32>
    %441 = arith.negf %440 : vector<4x32xf32>
    %442 = math.exp %441 : vector<4x32xf32>
    %cst_101 = arith.constant 1.000000e+00 : f32
    %443 = vector.broadcast %cst_101 : f32 to vector<4x32xf32>
    %444 = arith.addf %443, %442 : vector<4x32xf32>
    %445 = arith.divf %443, %444 : vector<4x32xf32>
    %446 = vector.extract_strided_slice %439 {offsets = [0, 32], sizes = [4, 32], strides = [1, 1]} : vector<4x128xf32> to vector<4x32xf32>
    %447 = arith.negf %446 : vector<4x32xf32>
    %448 = math.exp %447 : vector<4x32xf32>
    %cst_102 = arith.constant 1.000000e+00 : f32
    %449 = vector.broadcast %cst_102 : f32 to vector<4x32xf32>
    %450 = arith.addf %449, %448 : vector<4x32xf32>
    %451 = arith.divf %449, %450 : vector<4x32xf32>
    %452 = vector.extract_strided_slice %439 {offsets = [0, 64], sizes = [4, 32], strides = [1, 1]} : vector<4x128xf32> to vector<4x32xf32>
    %453 = math.tanh %452 : vector<4x32xf32>
    %454 = vector.extract_strided_slice %439 {offsets = [0, 96], sizes = [4, 32], strides = [1, 1]} : vector<4x128xf32> to vector<4x32xf32>
    %455 = arith.negf %454 : vector<4x32xf32>
    %456 = math.exp %455 : vector<4x32xf32>
    %cst_103 = arith.constant 1.000000e+00 : f32
    %457 = vector.broadcast %cst_103 : f32 to vector<4x32xf32>
    %458 = arith.addf %457, %456 : vector<4x32xf32>
    %459 = arith.divf %457, %458 : vector<4x32xf32>
    %460 = arith.mulf %451, %423 : vector<4x32xf32>
    %461 = arith.mulf %445, %453 : vector<4x32xf32>
    %462 = arith.addf %460, %461 : vector<4x32xf32>
    %463 = math.tanh %462 : vector<4x32xf32>
    %464 = arith.mulf %459, %463 : vector<4x32xf32>
    %465 = vector.extract_strided_slice %464 {offsets = [0, 0], sizes = [2, 32], strides = [1, 1]} : vector<4x32xf32> to vector<2x32xf32>
    %466 = vector.extract_strided_slice %464 {offsets = [2, 0], sizes = [2, 32], strides = [1, 1]} : vector<4x32xf32> to vector<2x32xf32>
    %cst_104 = arith.constant dense<0.000000e+00> : vector<4x256xf32>
    %467 = tpu.matmul %464, %347, %cst_104 {dimension_numbers = #tpu.dot_dimension_numbers<[1], [0], [0], [1], [0, 0, 1, 1], [], []>} : vector<4x32xf32>, vector<32x256xf32>, vector<4x256xf32> -> vector<4x256xf32>
    %468 = vector.extract_strided_slice %346 {offsets = [3, 0], sizes = [1, 128], strides = [1, 1]} : vector<8x256xf32> to vector<1x128xf32>
    %469 = vector.extract_strided_slice %346 {offsets = [7, 0], sizes = [1, 128], strides = [1, 1]} : vector<8x256xf32> to vector<1x128xf32>
    %470 = tpu.concatenate %468, %469 in 0 : vector<1x128xf32>, vector<1x128xf32> -> vector<2x128xf32>
    %471 = vector.extract_strided_slice %346 {offsets = [0, 128], sizes = [1, 128], strides = [1, 1]} : vector<8x256xf32> to vector<1x128xf32>
    %472 = vector.extract_strided_slice %346 {offsets = [4, 128], sizes = [1, 128], strides = [1, 1]} : vector<8x256xf32> to vector<1x128xf32>
    %473 = tpu.concatenate %471, %472 in 0 : vector<1x128xf32>, vector<1x128xf32> -> vector<2x128xf32>
    %474 = vector.extract_strided_slice %467 {offsets = [0, 0], sizes = [2, 128], strides = [1, 1]} : vector<4x256xf32> to vector<2x128xf32>
    %475 = arith.addf %474, %470 : vector<2x128xf32>
    %476 = vector.extract_strided_slice %467 {offsets = [2, 128], sizes = [2, 128], strides = [1, 1]} : vector<4x256xf32> to vector<2x128xf32>
    %477 = arith.addf %476, %473 : vector<2x128xf32>
    %478 = tpu.concatenate %475, %477 in 0 : vector<2x128xf32>, vector<2x128xf32> -> vector<4x128xf32>
    %479 = vector.extract_strided_slice %478 {offsets = [0, 0], sizes = [4, 32], strides = [1, 1]} : vector<4x128xf32> to vector<4x32xf32>
    %480 = arith.negf %479 : vector<4x32xf32>
    %481 = math.exp %480 : vector<4x32xf32>
    %cst_105 = arith.constant 1.000000e+00 : f32
    %482 = vector.broadcast %cst_105 : f32 to vector<4x32xf32>
    %483 = arith.addf %482, %481 : vector<4x32xf32>
    %484 = arith.divf %482, %483 : vector<4x32xf32>
    %485 = vector.extract_strided_slice %478 {offsets = [0, 32], sizes = [4, 32], strides = [1, 1]} : vector<4x128xf32> to vector<4x32xf32>
    %486 = arith.negf %485 : vector<4x32xf32>
    %487 = math.exp %486 : vector<4x32xf32>
    %cst_106 = arith.constant 1.000000e+00 : f32
    %488 = vector.broadcast %cst_106 : f32 to vector<4x32xf32>
    %489 = arith.addf %488, %487 : vector<4x32xf32>
    %490 = arith.divf %488, %489 : vector<4x32xf32>
    %491 = vector.extract_strided_slice %478 {offsets = [0, 64], sizes = [4, 32], strides = [1, 1]} : vector<4x128xf32> to vector<4x32xf32>
    %492 = math.tanh %491 : vector<4x32xf32>
    %493 = vector.extract_strided_slice %478 {offsets = [0, 96], sizes = [4, 32], strides = [1, 1]} : vector<4x128xf32> to vector<4x32xf32>
    %494 = arith.negf %493 : vector<4x32xf32>
    %495 = math.exp %494 : vector<4x32xf32>
    %cst_107 = arith.constant 1.000000e+00 : f32
    %496 = vector.broadcast %cst_107 : f32 to vector<4x32xf32>
    %497 = arith.addf %496, %495 : vector<4x32xf32>
    %498 = arith.divf %496, %497 : vector<4x32xf32>
    %499 = arith.mulf %490, %462 : vector<4x32xf32>
    %500 = arith.mulf %484, %492 : vector<4x32xf32>
    %501 = arith.addf %499, %500 : vector<4x32xf32>
    %502 = math.tanh %501 : vector<4x32xf32>
    %503 = arith.mulf %498, %502 : vector<4x32xf32>
    %504 = vector.extract_strided_slice %503 {offsets = [0, 0], sizes = [2, 32], strides = [1, 1]} : vector<4x32xf32> to vector<2x32xf32>
    %505 = vector.extract_strided_slice %503 {offsets = [2, 0], sizes = [2, 32], strides = [1, 1]} : vector<4x32xf32> to vector<2x32xf32>
    %506 = vector.extract_strided_slice %387 {offsets = [0, 0], sizes = [1, 32], strides = [1, 1]} : vector<2x32xf32> to vector<1x32xf32>
    %507 = vector.extract_strided_slice %505 {offsets = [0, 0], sizes = [1, 32], strides = [1, 1]} : vector<2x32xf32> to vector<1x32xf32>
    %508 = tpu.concatenate %506, %507 in 1 : vector<1x32xf32>, vector<1x32xf32> -> vector<1x64xf32>
    %509 = vector.extract_strided_slice %426 {offsets = [0, 0], sizes = [1, 32], strides = [1, 1]} : vector<2x32xf32> to vector<1x32xf32>
    %510 = vector.extract_strided_slice %466 {offsets = [0, 0], sizes = [1, 32], strides = [1, 1]} : vector<2x32xf32> to vector<1x32xf32>
    %511 = tpu.concatenate %509, %510 in 1 : vector<1x32xf32>, vector<1x32xf32> -> vector<1x64xf32>
    %512 = vector.extract_strided_slice %465 {offsets = [0, 0], sizes = [1, 32], strides = [1, 1]} : vector<2x32xf32> to vector<1x32xf32>
    %513 = vector.extract_strided_slice %427 {offsets = [0, 0], sizes = [1, 32], strides = [1, 1]} : vector<2x32xf32> to vector<1x32xf32>
    %514 = tpu.concatenate %512, %513 in 1 : vector<1x32xf32>, vector<1x32xf32> -> vector<1x64xf32>
    %515 = vector.extract_strided_slice %504 {offsets = [0, 0], sizes = [1, 32], strides = [1, 1]} : vector<2x32xf32> to vector<1x32xf32>
    %516 = vector.extract_strided_slice %388 {offsets = [0, 0], sizes = [1, 32], strides = [1, 1]} : vector<2x32xf32> to vector<1x32xf32>
    %517 = tpu.concatenate %515, %516 in 1 : vector<1x32xf32>, vector<1x32xf32> -> vector<1x64xf32>
    %518 = vector.extract_strided_slice %387 {offsets = [1, 0], sizes = [1, 32], strides = [1, 1]} : vector<2x32xf32> to vector<1x32xf32>
    %519 = vector.extract_strided_slice %505 {offsets = [1, 0], sizes = [1, 32], strides = [1, 1]} : vector<2x32xf32> to vector<1x32xf32>
    %520 = tpu.concatenate %518, %519 in 1 : vector<1x32xf32>, vector<1x32xf32> -> vector<1x64xf32>
    %521 = vector.extract_strided_slice %426 {offsets = [1, 0], sizes = [1, 32], strides = [1, 1]} : vector<2x32xf32> to vector<1x32xf32>
    %522 = vector.extract_strided_slice %466 {offsets = [1, 0], sizes = [1, 32], strides = [1, 1]} : vector<2x32xf32> to vector<1x32xf32>
    %523 = tpu.concatenate %521, %522 in 1 : vector<1x32xf32>, vector<1x32xf32> -> vector<1x64xf32>
    %524 = vector.extract_strided_slice %465 {offsets = [1, 0], sizes = [1, 32], strides = [1, 1]} : vector<2x32xf32> to vector<1x32xf32>
    %525 = vector.extract_strided_slice %427 {offsets = [1, 0], sizes = [1, 32], strides = [1, 1]} : vector<2x32xf32> to vector<1x32xf32>
    %526 = tpu.concatenate %524, %525 in 1 : vector<1x32xf32>, vector<1x32xf32> -> vector<1x64xf32>
    %527 = vector.extract_strided_slice %504 {offsets = [1, 0], sizes = [1, 32], strides = [1, 1]} : vector<2x32xf32> to vector<1x32xf32>
    %528 = vector.extract_strided_slice %388 {offsets = [1, 0], sizes = [1, 32], strides = [1, 1]} : vector<2x32xf32> to vector<1x32xf32>
    %529 = tpu.concatenate %527, %528 in 1 : vector<1x32xf32>, vector<1x32xf32> -> vector<1x64xf32>
    %530 = tpu.concatenate %508, %511, %514, %517, %520, %523, %526, %529 in 0 : vector<1x64xf32>, vector<1x64xf32>, vector<1x64xf32>, vector<1x64xf32>, vector<1x64xf32>, vector<1x64xf32>, vector<1x64xf32>, vector<1x64xf32> -> vector<8x64xf32>
    %c0_108 = arith.constant 0 : index
    %c0_109 = arith.constant 0 : index
    %531 = vector.load %arg15[%c0_108, %c0_109] : memref<64x32xf32, #tpu.memory_space<vmem>>, vector<64x32xf32>
    %cst_110 = arith.constant dense<0.000000e+00> : vector<8x32xf32>
    %532 = tpu.matmul %530, %531, %cst_110 {dimension_numbers = #tpu.dot_dimension_numbers<[1], [0], [0], [1], [0, 0, 1, 1], [], []>} : vector<8x64xf32>, vector<64x32xf32>, vector<8x32xf32> -> vector<8x32xf32>
    %c0_111 = arith.constant 0 : index
    %c0_112 = arith.constant 0 : index
    %533 = vector.load %arg16[%c0_111, %c0_112] : memref<1x32xf32, #tpu.memory_space<vmem>>, vector<1x32xf32>
    %534 = vector.broadcast %533 : vector<1x32xf32> to vector<8x32xf32>
    %535 = arith.addf %532, %534 : vector<8x32xf32>
    %536 = vector.extract_strided_slice %535 {offsets = [0, 0], sizes = [4, 32], strides = [1, 1]} : vector<8x32xf32> to vector<4x32xf32>
    %537 = arith.addf %536, %75 : vector<4x32xf32>
    %538 = vector.extract_strided_slice %537 {offsets = [0, 0], sizes = [2, 32], strides = [1, 1]} : vector<4x32xf32> to vector<2x32xf32>
    %539 = vector.extract_strided_slice %537 {offsets = [1, 0], sizes = [2, 32], strides = [1, 1]} : vector<4x32xf32> to vector<2x32xf32>
    %540 = vector.extract_strided_slice %537 {offsets = [2, 0], sizes = [2, 32], strides = [1, 1]} : vector<4x32xf32> to vector<2x32xf32>
    %541 = tpu.concatenate %538, %539, %540 in 1 : vector<2x32xf32>, vector<2x32xf32>, vector<2x32xf32> -> vector<2x96xf32>
    %c0_113 = arith.constant 0 : index
    %c0_114 = arith.constant 0 : index
    %542 = vector.load %arg17[%c0_113, %c0_114] : memref<96x64xf32, #tpu.memory_space<vmem>>, vector<96x64xf32>
    %cst_115 = arith.constant dense<0.000000e+00> : vector<2x64xf32>
    %543 = tpu.matmul %541, %542, %cst_115 {dimension_numbers = #tpu.dot_dimension_numbers<[1], [0], [0], [1], [0, 0, 1, 1], [], []>} : vector<2x96xf32>, vector<96x64xf32>, vector<2x64xf32> -> vector<2x64xf32>
    %c0_116 = arith.constant 0 : index
    %c0_117 = arith.constant 0 : index
    %544 = vector.load %arg18[%c0_116, %c0_117] : memref<2x64xf32, #tpu.memory_space<vmem>>, vector<1x64xf32>
    %545 = vector.broadcast %544 : vector<1x64xf32> to vector<2x64xf32>
    %546 = arith.addf %543, %545 : vector<2x64xf32>
    %547 = vector.extract_strided_slice %546 {offsets = [0, 0], sizes = [2, 32], strides = [1, 1]} : vector<2x64xf32> to vector<2x32xf32>
    %548 = vector.extract_strided_slice %546 {offsets = [0, 32], sizes = [2, 32], strides = [1, 1]} : vector<2x64xf32> to vector<2x32xf32>
    %549 = arith.negf %548 : vector<2x32xf32>
    %550 = math.exp %549 : vector<2x32xf32>
    %cst_118 = arith.constant 1.000000e+00 : f32
    %551 = vector.broadcast %cst_118 : f32 to vector<2x32xf32>
    %552 = arith.addf %551, %550 : vector<2x32xf32>
    %553 = arith.divf %551, %552 : vector<2x32xf32>
    %554 = arith.mulf %547, %553 : vector<2x32xf32>
    %c0_119 = arith.constant 0 : index
    %c0_120 = arith.constant 0 : index
    %555 = vector.load %arg20[%c0_119, %c0_120] : memref<2x64xf32, #tpu.memory_space<vmem>>, vector<1x64xf32>
    %c0_121 = arith.constant 0 : index
    %c0_122 = arith.constant 0 : index
    %556 = vector.load %arg19[%c0_121, %c0_122] : memref<32x128xf32, #tpu.memory_space<vmem>>, vector<32x128xf32>
    %cst_123 = arith.constant dense<0.000000e+00> : vector<2x128xf32>
    %557 = tpu.matmul %554, %556, %cst_123 {dimension_numbers = #tpu.dot_dimension_numbers<[1], [0], [0], [1], [0, 0, 1, 1], [], []>} : vector<2x32xf32>, vector<32x128xf32>, vector<2x128xf32> -> vector<2x128xf32>
    %558 = vector.extract_strided_slice %557 {offsets = [0, 0], sizes = [2, 64], strides = [1, 1]} : vector<2x128xf32> to vector<2x64xf32>
    %559 = vector.extract_strided_slice %557 {offsets = [0, 64], sizes = [2, 64], strides = [1, 1]} : vector<2x128xf32> to vector<2x64xf32>
    %cst_124 = arith.constant 0.000000e+00 : f32
    %560 = vector.broadcast %cst_124 : f32 to vector<1x64xf32>
    %561 = tpu.concatenate %558, %560 in 0 : vector<2x64xf32>, vector<1x64xf32> -> vector<3x64xf32>
    %562 = tpu.concatenate %560, %559 in 0 : vector<1x64xf32>, vector<2x64xf32> -> vector<3x64xf32>
    %563 = arith.addf %561, %562 : vector<3x64xf32>
    %564 = vector.broadcast %555 : vector<1x64xf32> to vector<3x64xf32>
    %565 = arith.addf %563, %564 : vector<3x64xf32>
    %cst_125 = arith.constant 0.000000e+00 : f32
    %566 = vector.broadcast %cst_125 : f32 to vector<3x64xf32>
    %567 = arith.maximumf %565, %566 : vector<3x64xf32>
    %568 = vector.extract_strided_slice %567 {offsets = [0, 0], sizes = [1, 16], strides = [1, 1]} : vector<3x64xf32> to vector<1x16xf32>
    %569 = vector.extract_strided_slice %567 {offsets = [0, 16], sizes = [1, 16], strides = [1, 1]} : vector<3x64xf32> to vector<1x16xf32>
    %570 = vector.extract_strided_slice %567 {offsets = [0, 32], sizes = [1, 16], strides = [1, 1]} : vector<3x64xf32> to vector<1x16xf32>
    %571 = vector.extract_strided_slice %567 {offsets = [0, 48], sizes = [1, 16], strides = [1, 1]} : vector<3x64xf32> to vector<1x16xf32>
    %572 = vector.extract_strided_slice %567 {offsets = [1, 0], sizes = [1, 16], strides = [1, 1]} : vector<3x64xf32> to vector<1x16xf32>
    %573 = vector.extract_strided_slice %567 {offsets = [1, 16], sizes = [1, 16], strides = [1, 1]} : vector<3x64xf32> to vector<1x16xf32>
    %574 = vector.extract_strided_slice %567 {offsets = [1, 32], sizes = [1, 16], strides = [1, 1]} : vector<3x64xf32> to vector<1x16xf32>
    %575 = vector.extract_strided_slice %567 {offsets = [1, 48], sizes = [1, 16], strides = [1, 1]} : vector<3x64xf32> to vector<1x16xf32>
    %576 = vector.extract_strided_slice %567 {offsets = [2, 0], sizes = [1, 16], strides = [1, 1]} : vector<3x64xf32> to vector<1x16xf32>
    %577 = vector.extract_strided_slice %567 {offsets = [2, 16], sizes = [1, 16], strides = [1, 1]} : vector<3x64xf32> to vector<1x16xf32>
    %578 = vector.extract_strided_slice %567 {offsets = [2, 32], sizes = [1, 16], strides = [1, 1]} : vector<3x64xf32> to vector<1x16xf32>
    %579 = vector.extract_strided_slice %567 {offsets = [2, 48], sizes = [1, 16], strides = [1, 1]} : vector<3x64xf32> to vector<1x16xf32>
    %580 = tpu.concatenate %568, %569, %570, %571, %572, %573, %574, %575, %576, %577, %578, %579 in 0 : vector<1x16xf32>, vector<1x16xf32>, vector<1x16xf32>, vector<1x16xf32>, vector<1x16xf32>, vector<1x16xf32>, vector<1x16xf32>, vector<1x16xf32>, vector<1x16xf32>, vector<1x16xf32>, vector<1x16xf32>, vector<1x16xf32> -> vector<12x16xf32>
    %581 = vector.extract_strided_slice %38 {offsets = [4, 0], sizes = [12, 16], strides = [1, 1]} : vector<20x16xf32> to vector<12x16xf32>
    %582 = arith.addf %580, %581 : vector<12x16xf32>
    %583 = vector.extract_strided_slice %582 {offsets = [0, 0], sizes = [10, 16], strides = [1, 1]} : vector<12x16xf32> to vector<10x16xf32>
    %584 = vector.extract_strided_slice %582 {offsets = [1, 0], sizes = [10, 16], strides = [1, 1]} : vector<12x16xf32> to vector<10x16xf32>
    %585 = vector.extract_strided_slice %582 {offsets = [2, 0], sizes = [10, 16], strides = [1, 1]} : vector<12x16xf32> to vector<10x16xf32>
    %586 = tpu.concatenate %583, %584, %585 in 1 : vector<10x16xf32>, vector<10x16xf32>, vector<10x16xf32> -> vector<10x48xf32>
    %c0_126 = arith.constant 0 : index
    %c0_127 = arith.constant 0 : index
    %587 = vector.load %arg21[%c0_126, %c0_127] : memref<48x32xf32, #tpu.memory_space<vmem>>, vector<48x32xf32>
    %cst_128 = arith.constant dense<0.000000e+00> : vector<10x32xf32>
    %588 = tpu.matmul %586, %587, %cst_128 {dimension_numbers = #tpu.dot_dimension_numbers<[1], [0], [0], [1], [0, 0, 1, 1], [], []>} : vector<10x48xf32>, vector<48x32xf32>, vector<10x32xf32> -> vector<10x32xf32>
    %c0_129 = arith.constant 0 : index
    %c0_130 = arith.constant 0 : index
    %589 = vector.load %arg22[%c0_129, %c0_130] : memref<2x32xf32, #tpu.memory_space<vmem>>, vector<1x32xf32>
    %590 = vector.broadcast %589 : vector<1x32xf32> to vector<10x32xf32>
    %591 = arith.addf %588, %590 : vector<10x32xf32>
    %592 = vector.extract_strided_slice %591 {offsets = [0, 0], sizes = [10, 16], strides = [1, 1]} : vector<10x32xf32> to vector<10x16xf32>
    %593 = vector.extract_strided_slice %591 {offsets = [0, 16], sizes = [10, 16], strides = [1, 1]} : vector<10x32xf32> to vector<10x16xf32>
    %594 = arith.negf %593 : vector<10x16xf32>
    %595 = math.exp %594 : vector<10x16xf32>
    %cst_131 = arith.constant 1.000000e+00 : f32
    %596 = vector.broadcast %cst_131 : f32 to vector<10x16xf32>
    %597 = arith.addf %596, %595 : vector<10x16xf32>
    %598 = arith.divf %596, %597 : vector<10x16xf32>
    %599 = arith.mulf %592, %598 : vector<10x16xf32>
    %c0_132 = arith.constant 0 : index
    %c0_133 = arith.constant 0 : index
    %600 = vector.load %arg24[%c0_132, %c0_133] : memref<2x32xf32, #tpu.memory_space<vmem>>, vector<1x32xf32>
    %c0_134 = arith.constant 0 : index
    %c0_135 = arith.constant 0 : index
    %601 = vector.load %arg23[%c0_134, %c0_135] : memref<16x64xf32, #tpu.memory_space<vmem>>, vector<16x64xf32>
    %cst_136 = arith.constant dense<0.000000e+00> : vector<10x64xf32>
    %602 = tpu.matmul %599, %601, %cst_136 {dimension_numbers = #tpu.dot_dimension_numbers<[1], [0], [0], [1], [0, 0, 1, 1], [], []>} : vector<10x16xf32>, vector<16x64xf32>, vector<10x64xf32> -> vector<10x64xf32>
    %603 = vector.extract_strided_slice %602 {offsets = [0, 0], sizes = [10, 32], strides = [1, 1]} : vector<10x64xf32> to vector<10x32xf32>
    %604 = vector.extract_strided_slice %602 {offsets = [0, 32], sizes = [10, 32], strides = [1, 1]} : vector<10x64xf32> to vector<10x32xf32>
    %cst_137 = arith.constant 0.000000e+00 : f32
    %605 = vector.broadcast %cst_137 : f32 to vector<1x32xf32>
    %606 = tpu.concatenate %603, %605 in 0 : vector<10x32xf32>, vector<1x32xf32> -> vector<11x32xf32>
    %607 = tpu.concatenate %605, %604 in 0 : vector<1x32xf32>, vector<10x32xf32> -> vector<11x32xf32>
    %608 = arith.addf %606, %607 : vector<11x32xf32>
    %609 = vector.broadcast %600 : vector<1x32xf32> to vector<11x32xf32>
    %610 = arith.addf %608, %609 : vector<11x32xf32>
    %c0_138 = arith.constant 0 : index
    %c0_139 = arith.constant 0 : index
    %c0_140 = arith.constant 0 : index
    %611 = vector.load %arg25[%c0_138, %c0_139, %c0_140] : memref<2x11x32xf32, #tpu.memory_space<vmem>>, vector<1x11x32xf32>
    %612 = vector.shape_cast %611 : vector<1x11x32xf32> to vector<11x32xf32>
    %613 = vector.shape_cast %610 : vector<11x32xf32> to vector<1x11x32xf32>
    tpu.vector_store %arg25[%c0_138, %c0_139, %c0_140], %613 {strides = array<i32>} : memref<2x11x32xf32, #tpu.memory_space<vmem>>, vector<1x11x32xf32>,
    %614 = vector.extract_strided_slice %535 {offsets = [4, 0], sizes = [4, 32], strides = [1, 1]} : vector<8x32xf32> to vector<4x32xf32>
    %615 = arith.addf %614, %151 : vector<4x32xf32>
    %616 = vector.extract_strided_slice %615 {offsets = [0, 0], sizes = [2, 32], strides = [1, 1]} : vector<4x32xf32> to vector<2x32xf32>
    %617 = vector.extract_strided_slice %615 {offsets = [1, 0], sizes = [2, 32], strides = [1, 1]} : vector<4x32xf32> to vector<2x32xf32>
    %618 = vector.extract_strided_slice %615 {offsets = [2, 0], sizes = [2, 32], strides = [1, 1]} : vector<4x32xf32> to vector<2x32xf32>
    %619 = tpu.concatenate %616, %617, %618 in 1 : vector<2x32xf32>, vector<2x32xf32>, vector<2x32xf32> -> vector<2x96xf32>
    %c0_141 = arith.constant 0 : index
    %c0_142 = arith.constant 0 : index
    %620 = vector.load %arg17[%c0_141, %c0_142] : memref<96x64xf32, #tpu.memory_space<vmem>>, vector<96x64xf32>
    %cst_143 = arith.constant dense<0.000000e+00> : vector<2x64xf32>
    %621 = tpu.matmul %619, %620, %cst_143 {dimension_numbers = #tpu.dot_dimension_numbers<[1], [0], [0], [1], [0, 0, 1, 1], [], []>} : vector<2x96xf32>, vector<96x64xf32>, vector<2x64xf32> -> vector<2x64xf32>
    %c1_144 = arith.constant 1 : index
    %c0_145 = arith.constant 0 : index
    %622 = vector.load %arg18[%c1_144, %c0_145] : memref<2x64xf32, #tpu.memory_space<vmem>>, vector<1x64xf32>
    %623 = vector.broadcast %622 : vector<1x64xf32> to vector<2x64xf32>
    %624 = arith.addf %621, %623 : vector<2x64xf32>
    %625 = vector.extract_strided_slice %624 {offsets = [0, 0], sizes = [2, 32], strides = [1, 1]} : vector<2x64xf32> to vector<2x32xf32>
    %626 = vector.extract_strided_slice %624 {offsets = [0, 32], sizes = [2, 32], strides = [1, 1]} : vector<2x64xf32> to vector<2x32xf32>
    %627 = arith.negf %626 : vector<2x32xf32>
    %628 = math.exp %627 : vector<2x32xf32>
    %cst_146 = arith.constant 1.000000e+00 : f32
    %629 = vector.broadcast %cst_146 : f32 to vector<2x32xf32>
    %630 = arith.addf %629, %628 : vector<2x32xf32>
    %631 = arith.divf %629, %630 : vector<2x32xf32>
    %632 = arith.mulf %625, %631 : vector<2x32xf32>
    %c1_147 = arith.constant 1 : index
    %c0_148 = arith.constant 0 : index
    %633 = vector.load %arg20[%c1_147, %c0_148] : memref<2x64xf32, #tpu.memory_space<vmem>>, vector<1x64xf32>
    %c0_149 = arith.constant 0 : index
    %c0_150 = arith.constant 0 : index
    %634 = vector.load %arg19[%c0_149, %c0_150] : memref<32x128xf32, #tpu.memory_space<vmem>>, vector<32x128xf32>
    %cst_151 = arith.constant dense<0.000000e+00> : vector<2x128xf32>
    %635 = tpu.matmul %632, %634, %cst_151 {dimension_numbers = #tpu.dot_dimension_numbers<[1], [0], [0], [1], [0, 0, 1, 1], [], []>} : vector<2x32xf32>, vector<32x128xf32>, vector<2x128xf32> -> vector<2x128xf32>
    %636 = vector.extract_strided_slice %635 {offsets = [0, 0], sizes = [2, 64], strides = [1, 1]} : vector<2x128xf32> to vector<2x64xf32>
    %637 = vector.extract_strided_slice %635 {offsets = [0, 64], sizes = [2, 64], strides = [1, 1]} : vector<2x128xf32> to vector<2x64xf32>
    %cst_152 = arith.constant 0.000000e+00 : f32
    %638 = vector.broadcast %cst_152 : f32 to vector<1x64xf32>
    %639 = tpu.concatenate %636, %638 in 0 : vector<2x64xf32>, vector<1x64xf32> -> vector<3x64xf32>
    %640 = tpu.concatenate %638, %637 in 0 : vector<1x64xf32>, vector<2x64xf32> -> vector<3x64xf32>
    %641 = arith.addf %639, %640 : vector<3x64xf32>
    %642 = vector.broadcast %633 : vector<1x64xf32> to vector<3x64xf32>
    %643 = arith.addf %641, %642 : vector<3x64xf32>
    %cst_153 = arith.constant 0.000000e+00 : f32
    %644 = vector.broadcast %cst_153 : f32 to vector<3x64xf32>
    %645 = arith.maximumf %643, %644 : vector<3x64xf32>
    %646 = vector.extract_strided_slice %645 {offsets = [0, 0], sizes = [1, 16], strides = [1, 1]} : vector<3x64xf32> to vector<1x16xf32>
    %647 = vector.extract_strided_slice %645 {offsets = [0, 16], sizes = [1, 16], strides = [1, 1]} : vector<3x64xf32> to vector<1x16xf32>
    %648 = vector.extract_strided_slice %645 {offsets = [0, 32], sizes = [1, 16], strides = [1, 1]} : vector<3x64xf32> to vector<1x16xf32>
    %649 = vector.extract_strided_slice %645 {offsets = [0, 48], sizes = [1, 16], strides = [1, 1]} : vector<3x64xf32> to vector<1x16xf32>
    %650 = vector.extract_strided_slice %645 {offsets = [1, 0], sizes = [1, 16], strides = [1, 1]} : vector<3x64xf32> to vector<1x16xf32>
    %651 = vector.extract_strided_slice %645 {offsets = [1, 16], sizes = [1, 16], strides = [1, 1]} : vector<3x64xf32> to vector<1x16xf32>
    %652 = vector.extract_strided_slice %645 {offsets = [1, 32], sizes = [1, 16], strides = [1, 1]} : vector<3x64xf32> to vector<1x16xf32>
    %653 = vector.extract_strided_slice %645 {offsets = [1, 48], sizes = [1, 16], strides = [1, 1]} : vector<3x64xf32> to vector<1x16xf32>
    %654 = vector.extract_strided_slice %645 {offsets = [2, 0], sizes = [1, 16], strides = [1, 1]} : vector<3x64xf32> to vector<1x16xf32>
    %655 = vector.extract_strided_slice %645 {offsets = [2, 16], sizes = [1, 16], strides = [1, 1]} : vector<3x64xf32> to vector<1x16xf32>
    %656 = vector.extract_strided_slice %645 {offsets = [2, 32], sizes = [1, 16], strides = [1, 1]} : vector<3x64xf32> to vector<1x16xf32>
    %657 = vector.extract_strided_slice %645 {offsets = [2, 48], sizes = [1, 16], strides = [1, 1]} : vector<3x64xf32> to vector<1x16xf32>
    %658 = tpu.concatenate %646, %647, %648, %649, %650, %651, %652, %653, %654, %655, %656, %657 in 0 : vector<1x16xf32>, vector<1x16xf32>, vector<1x16xf32>, vector<1x16xf32>, vector<1x16xf32>, vector<1x16xf32>, vector<1x16xf32>, vector<1x16xf32>, vector<1x16xf32>, vector<1x16xf32>, vector<1x16xf32>, vector<1x16xf32> -> vector<12x16xf32>
    %659 = vector.extract_strided_slice %114 {offsets = [4, 0], sizes = [12, 16], strides = [1, 1]} : vector<20x16xf32> to vector<12x16xf32>
    %660 = arith.addf %658, %659 : vector<12x16xf32>
    %661 = vector.extract_strided_slice %660 {offsets = [0, 0], sizes = [10, 16], strides = [1, 1]} : vector<12x16xf32> to vector<10x16xf32>
    %662 = vector.extract_strided_slice %660 {offsets = [1, 0], sizes = [10, 16], strides = [1, 1]} : vector<12x16xf32> to vector<10x16xf32>
    %663 = vector.extract_strided_slice %660 {offsets = [2, 0], sizes = [10, 16], strides = [1, 1]} : vector<12x16xf32> to vector<10x16xf32>
    %664 = tpu.concatenate %661, %662, %663 in 1 : vector<10x16xf32>, vector<10x16xf32>, vector<10x16xf32> -> vector<10x48xf32>
    %c0_154 = arith.constant 0 : index
    %c0_155 = arith.constant 0 : index
    %665 = vector.load %arg21[%c0_154, %c0_155] : memref<48x32xf32, #tpu.memory_space<vmem>>, vector<48x32xf32>
    %cst_156 = arith.constant dense<0.000000e+00> : vector<10x32xf32>
    %666 = tpu.matmul %664, %665, %cst_156 {dimension_numbers = #tpu.dot_dimension_numbers<[1], [0], [0], [1], [0, 0, 1, 1], [], []>} : vector<10x48xf32>, vector<48x32xf32>, vector<10x32xf32> -> vector<10x32xf32>
    %c1_157 = arith.constant 1 : index
    %c0_158 = arith.constant 0 : index
    %667 = vector.load %arg22[%c1_157, %c0_158] : memref<2x32xf32, #tpu.memory_space<vmem>>, vector<1x32xf32>
    %668 = vector.broadcast %667 : vector<1x32xf32> to vector<10x32xf32>
    %669 = arith.addf %666, %668 : vector<10x32xf32>
    %670 = vector.extract_strided_slice %669 {offsets = [0, 0], sizes = [10, 16], strides = [1, 1]} : vector<10x32xf32> to vector<10x16xf32>
    %671 = vector.extract_strided_slice %669 {offsets = [0, 16], sizes = [10, 16], strides = [1, 1]} : vector<10x32xf32> to vector<10x16xf32>
    %672 = arith.negf %671 : vector<10x16xf32>
    %673 = math.exp %672 : vector<10x16xf32>
    %cst_159 = arith.constant 1.000000e+00 : f32
    %674 = vector.broadcast %cst_159 : f32 to vector<10x16xf32>
    %675 = arith.addf %674, %673 : vector<10x16xf32>
    %676 = arith.divf %674, %675 : vector<10x16xf32>
    %677 = arith.mulf %670, %676 : vector<10x16xf32>
    %c1_160 = arith.constant 1 : index
    %c0_161 = arith.constant 0 : index
    %678 = vector.load %arg24[%c1_160, %c0_161] : memref<2x32xf32, #tpu.memory_space<vmem>>, vector<1x32xf32>
    %c0_162 = arith.constant 0 : index
    %c0_163 = arith.constant 0 : index
    %679 = vector.load %arg23[%c0_162, %c0_163] : memref<16x64xf32, #tpu.memory_space<vmem>>, vector<16x64xf32>
    %cst_164 = arith.constant dense<0.000000e+00> : vector<10x64xf32>
    %680 = tpu.matmul %677, %679, %cst_164 {dimension_numbers = #tpu.dot_dimension_numbers<[1], [0], [0], [1], [0, 0, 1, 1], [], []>} : vector<10x16xf32>, vector<16x64xf32>, vector<10x64xf32> -> vector<10x64xf32>
    %681 = vector.extract_strided_slice %680 {offsets = [0, 0], sizes = [10, 32], strides = [1, 1]} : vector<10x64xf32> to vector<10x32xf32>
    %682 = vector.extract_strided_slice %680 {offsets = [0, 32], sizes = [10, 32], strides = [1, 1]} : vector<10x64xf32> to vector<10x32xf32>
    %cst_165 = arith.constant 0.000000e+00 : f32
    %683 = vector.broadcast %cst_165 : f32 to vector<1x32xf32>
    %684 = tpu.concatenate %681, %683 in 0 : vector<10x32xf32>, vector<1x32xf32> -> vector<11x32xf32>
    %685 = tpu.concatenate %683, %682 in 0 : vector<1x32xf32>, vector<10x32xf32> -> vector<11x32xf32>
    %686 = arith.addf %684, %685 : vector<11x32xf32>
    %687 = vector.broadcast %678 : vector<1x32xf32> to vector<11x32xf32>
    %688 = arith.addf %686, %687 : vector<11x32xf32>
    %c1_166 = arith.constant 1 : index
    %c0_167 = arith.constant 0 : index
    %c0_168 = arith.constant 0 : index
    %689 = vector.load %arg25[%c1_166, %c0_167, %c0_168] : memref<2x11x32xf32, #tpu.memory_space<vmem>>, vector<1x11x32xf32>
    %690 = vector.shape_cast %689 : vector<1x11x32xf32> to vector<11x32xf32>
    %691 = vector.shape_cast %688 : vector<11x32xf32> to vector<1x11x32xf32>
    tpu.vector_store %arg25[%c1_166, %c0_167, %c0_168], %691 {strides = array<i32>} : memref<2x11x32xf32, #tpu.memory_space<vmem>>, vector<1x11x32xf32>,
    return
  }
}

</mosaic_0001>

<bundles_post_ra>
// kernel: tile.19
= control target key start
LH: loop header
LB: loop body
LE: loop exit
PB: predicated region body
PF: predicated region fallthrough
CT: control target
= control target key end

     0   :  { %s29_s10 = smov 3  ;;  %s10_s11 = smov 3  ;;  %vm12_vm0 = vcmask 64512   ;;  %vm19_vm1 = vcmask 261312   ;;  %vm26_vm2 = vcmask 195712   ;;  %vm33_vm3 = vcmask 130112   ;;  %s67_s0 = inlined_call_operand.vmem [shape: f32[2,4,8], index: 0, kind: input, shape index: {}]   ;;  %s68_s1 = inlined_call_operand.vmem [shape: f32[2,32], index: 1, kind: output, shape index: {}]  }
   0x1   :  { %v41_v0 = vld [vmem:[%s67_s0 + $0x4] sm:$0xf]  ;;  %v8_v1 = vld [vmem:[%s67_s0] sm:$0xf]  ;;  %s15_s0 = smov 3  ;;  %s22_s12 = smov 3 }
   0x2   :  { %7 = vst [vmem:[#allocation1 + $0x8] sm:$0xf] %v41_v0  ;;  %9 = vst [vmem:[#allocation1] sm:$0xf] %v8_v1  ;;  %s45_s13 = smov 24   ;;  %s46_s14 = smov 8  }
   0x3   :  { %s47_s15 = smov 16  }
   0x9   :  { %v16_v2 = vld [vmem:[#allocation1 + $0x3] ss:$8 sm:%s15_s0]   ;;  %v30_v3 = vld [vmem:[#allocation1 + $0x1] ss:$8 sm:%s29_s10]   ;;  %v11_v4 = vld [vmem:[#allocation1] ss:$8 sm:%s10_s11]  }
   0xa   :  { %17 = vrot.lane.b32.xlu0 %v16_v2, %s45_s13  ;;  %31 = vrot.lane.b32.xlu1 %v30_v3, %s46_s14  ;;  %v23_v5 = vld [vmem:[#allocation1 + $0x2] ss:$8 sm:%s22_s12]   ;;  %13 = vst.msk [vmem:[#allocation0] sm:$0x3] %vm12_vm0, %v11_v4  }
   0xe   :  { %24 = vrot.lane.b32.xlu0 %v23_v5, %s47_s15 }
  0x7c   :  { %v18_v6 = vpop.permute.xlu0 %17   ;;  %v32_v7 = vpop.permute.xlu1 %31  }
  0x7d   :  { %20 = vst.msk [vmem:[#allocation0] sm:$0x3] %vm19_vm1, %v18_v6  }
  0x80   :  { %v25_v8 = vpop.permute.xlu0 %24  }
  0x81   :  { %27 = vst.msk [vmem:[#allocation0] sm:$0x3] %vm26_vm2, %v25_v8  }
  0x82   :  { %34 = vst.msk [vmem:[#allocation0] sm:$0x3] %vm33_vm3, %v32_v7  }
  0x89   :  { %v38_v9 = vld [vmem:[#allocation0] sm:$0x3] }
  0x8a   :  { %40 = vst [vmem:[%s68_s1] sm:$0x3] %v38_v9 }

// kernel: tile.14
= control target key start
LH: loop header
LB: loop body
LE: loop exit
PB: predicated region body
PF: predicated region fallthrough
CT: control target
= control target key end

     0   :  { %s29_s10 = smov 3  ;;  %s10_s11 = smov 3  ;;  %vm12_vm0 = vcmask 130048   ;;  %vm19_vm1 = vcmask 523648   ;;  %vm26_vm2 = vcmask 392448   ;;  %vm33_vm3 = vcmask 261248   ;;  %s67_s0 = inlined_call_operand.vmem [shape: f32[2,4,16], index: 0, kind: input, shape index: {}]   ;;  %s68_s1 = inlined_call_operand.vmem [shape: f32[2,64], index: 1, kind: output, shape index: {}]  }
   0x1   :  { %v41_v0 = vld [vmem:[%s67_s0 + $0x4] sm:$0xf]  ;;  %v8_v1 = vld [vmem:[%s67_s0] sm:$0xf]  ;;  %s15_s0 = smov 3  ;;  %s22_s12 = smov 3 }
   0x2   :  { %7 = vst [vmem:[#allocation1 + $0x8] sm:$0xf] %v41_v0  ;;  %9 = vst [vmem:[#allocation1] sm:$0xf] %v8_v1  ;;  %s45_s13 = smov 48   ;;  %s46_s14 = smov 16  }
   0x3   :  { %s47_s15 = smov 32  }
   0x9   :  { %v16_v2 = vld [vmem:[#allocation1 + $0x3] ss:$8 sm:%s15_s0]   ;;  %v30_v3 = vld [vmem:[#allocation1 + $0x1] ss:$8 sm:%s29_s10]   ;;  %v11_v4 = vld [vmem:[#allocation1] ss:$8 sm:%s10_s11]  }
   0xa   :  { %17 = vrot.lane.b32.xlu0 %v16_v2, %s45_s13  ;;  %31 = vrot.lane.b32.xlu1 %v30_v3, %s46_s14  ;;  %v23_v5 = vld [vmem:[#allocation1 + $0x2] ss:$8 sm:%s22_s12]   ;;  %13 = vst.msk [vmem:[#allocation0] sm:$0x3] %vm12_vm0, %v11_v4  }
   0xe   :  { %24 = vrot.lane.b32.xlu0 %v23_v5, %s47_s15 }
  0x7c   :  { %v18_v6 = vpop.permute.xlu0 %17   ;;  %v32_v7 = vpop.permute.xlu1 %31  }
  0x7d   :  { %20 = vst.msk [vmem:[#allocation0] sm:$0x3] %vm19_vm1, %v18_v6  }
  0x80   :  { %v25_v8 = vpop.permute.xlu0 %24  }
  0x81   :  { %27 = vst.msk [vmem:[#allocation0] sm:$0x3] %vm26_vm2, %v25_v8  }
  0x82   :  { %34 = vst.msk [vmem:[#allocation0] sm:$0x3] %vm33_vm3, %v32_v7  }
  0x89   :  { %v38_v9 = vld [vmem:[#allocation0] sm:$0x3] }
  0x8a   :  { %40 = vst [vmem:[%s68_s1] sm:$0x3] %v38_v9 }

// kernel: _lambda_.1
= control target key start
LH: loop header
LB: loop body
LE: loop exit
PB: predicated region body
PF: predicated region fallthrough
CT: control target
= control target key end

     0   :  { %s8462_s0 = inlined_call_operand.vmem [shape: f32[2,84,4], index: 0, kind: input, shape index: {}]   ;;  %s8463_s1 = inlined_call_operand.vmem [shape: f32[32,16], index: 1, kind: input, shape index: {}]   ;;  %s8464_s2 = inlined_call_operand.vmem [shape: f32[2,16], index: 2, kind: input, shape index: {}]   ;;  %s8465_s3 = inlined_call_operand.vmem [shape: f32[16,32], index: 3, kind: input, shape index: {}]   ;;  %s8466_s4 = inlined_call_operand.vmem [shape: f32[2,32], index: 4, kind: input, shape index: {}]   ;;  %s8467_s5 = inlined_call_operand.vmem [shape: f32[128,32], index: 5, kind: input, shape index: {}]   ;;  %s8468_s6 = inlined_call_operand.vmem [shape: f32[2,32], index: 6, kind: input, shape index: {}]   ;;  %s8469_s7 = inlined_call_operand.hbm [shape: f32[32,64], index: 7, kind: input, shape index: {}]   ;;  %s8470_s8 = inlined_call_operand.vmem [shape: f32[2,64], index: 8, kind: input, shape index: {}]   ;;  %s8471_s9 = inlined_call_operand.hbm [shape: f32[32,256], index: 9, kind: input, shape index: {}]   ;;  %s8472_s10 = inlined_call_operand.hbm [shape: f32[1,256], index: 10, kind: input, shape index: {}]   ;;  %s8473_s11 = inlined_call_operand.hbm [shape: f32[32,256], index: 11, kind: input, shape index: {}]   ;;  %s8474_s12 = inlined_call_operand.vmem [shape: f32[64,256], index: 12, kind: input, shape index: {}]   ;;  %s8475_s13 = inlined_call_operand.hbm [shape: f32[1,256], index: 13, kind: input, shape index: {}]   ;;  %s8476_s14 = inlined_call_operand.hbm [shape: f32[32,256], index: 14, kind: input, shape index: {}]   ;;  %s8477_s15 = inlined_call_operand.hbm [shape: f32[64,32], index: 15, kind: input, shape index: {}]   ;;  %s8478_s16 = inlined_call_operand.vmem [shape: f32[1,32], index: 16, kind: input, shape index: {}]   ;;  %s8479_s17 = inlined_call_operand.vmem [shape: f32[96,64], index: 17, kind: input, shape index: {}]   ;;  %s8480_s18 = inlined_call_operand.vmem [shape: f32[2,64], index: 18, kind: input, shape index: {}]   ;;  %s8481_s19 = inlined_call_operand.hbm [shape: f32[32,128], index: 19, kind: input, shape index: {}]   ;;  %s8482_s20 = inlined_call_operand.vmem [shape: f32[2,64], index: 20, kind: input, shape index: {}]   ;;  %s8483_s21 = inlined_call_operand.hbm [shape: f32[48,32], index: 21, kind: input, shape index: {}]   ;;  %s8484_s22 = inlined_call_operand.vmem [shape: f32[2,32], index: 22, kind: input, shape index: {}]   ;;  %s8485_s23 = inlined_call_operand.hbm [shape: f32[16,64], index: 23, kind: input, shape index: {}]   ;;  %s8486_s24 = inlined_call_operand.vmem [shape: f32[2,32], index: 24, kind: input, shape index: {}]   ;;  %s8487_s25 = inlined_call_operand.vmem [shape: f32[2,11,32], index: 25, kind: output, shape index: {}]  }
   0x1   :  { %8550 = sst [smem:[#allocation54_spill]] %s8462_s0 }
   0x2   :  { %8551 = sst [smem:[#allocation55_spill]] %s8463_s1 }
   0x3   :  { %8552 = sst [smem:[#allocation56_spill]] %s8464_s2 }
   0x4   :  { %8553 = sst [smem:[#allocation57_spill]] %s8465_s3 }
   0x5   :  { %8554 = sst [smem:[#allocation58_spill]] %s8466_s4 }
   0x6   :  { %8555 = sst [smem:[#allocation59_spill]] %s8467_s5 }
   0x7   :  { %8556 = sst [smem:[#allocation60_spill]] %s8468_s6 }
   0x8   :  { %8557 = sst [smem:[#allocation61_spill]] %s8469_s7 }
   0x9   :  { %8558 = sst [smem:[#allocation62_spill]] %s8470_s8 }
   0xa   :  { %8559 = sst [smem:[#allocation63_spill]] %s8471_s9 }
   0xb   :  { %8560 = sst [smem:[#allocation64_spill]] %s8486_s24 }
   0xc   :  { %8561 = sst [smem:[#allocation65_spill]] %s8487_s25 }
   0xd   :  { %30 = vsyncpa [#allocation3], 0 }
   0xe   :  { %31 = vsyncpa [#allocation5], 0 }
   0xf   :  { %32 = vsyncpa [#allocation8], 0 }
  0x10   :  { %33 = vsyncpa [#allocation11], 0 }
  0x11   :  { %34 = vsyncpa [#allocation14], 0 }
  0x12   :  { %35 = vsyncpa [#allocation17], 0  ;;  %s6341_s29 = smov [#allocation4]   ;;  %s8562_s7 = sld [smem:[#allocation63_spill]] }
  0x13   :  { %s69_s2 = sshll.u32 %s6341_s29, 4  ;;  %s70_s2 = int_to_ptr.vmem [resolvable:$true] %s69_s2 }
  0x18   :  { %s6109_s3 = scalar_lea.hbm %s8562_s7, 1024 }
  0x19   :  { %p6110_p0 = scmp.ne.s32.totalorder %s8562_s7, %s6109_s3  ;;  %p6113_p1 = scmp.lt.u32.totalorder %s6109_s3, %s8562_s7 }
  0x1b   :  { %p6115_p2 = pnand %p6113_p1, %p6110_p0 }
  0x1d   :  { %6118 = shalt.err (!%p6115_p2)
}
  0x1e   :  { %s6119_s4 = scalar_lea.vmem %s70_s2, 1024  ;;  %p6124_p4 = scmp.lt.s32.totalorder %s70_s2, %s70_s2 }
  0x1f   :  { %p6120_p3 = scmp.ne.s32.totalorder %s70_s2, %s6119_s4  ;;  %p6125_p5 = scmp.lt.s32.totalorder %s6119_s4, %s6119_s4 }
  0x21   :  { %p6126_p6 = por %p6125_p5, %p6124_p4 }
  0x23   :  { %p6127_p7 = pnand %p6126_p6, %p6120_p3 }
  0x25   :  { %6130 = shalt.err (!%p6127_p7)
}
  0x26   :  { %s6342_s28 = smov 256   ;;  %s6343_s9 = smov 16  }
  0x27   :  { %75 = dma.hbm_to_vmem [thread:$0]  %s8562_s7, 1024, %s70_s2, [#allocation5], %s6342_s28, %s6342_s28, %s6343_s9  }
  0x28   :  { %s6344_s29 = smov [#allocation7]   ;;  %s6345_s30 = smov [#allocation10]  }
  0x29   :  { %s91_s6 = sshll.u32 %s6344_s29, 4  ;;  %s115_s3 = sshll.u32 %s6345_s30, 4  ;;  %s92_s6 = int_to_ptr.vmem [resolvable:$true] %s91_s6  ;;  %s116_s3 = int_to_ptr.vmem [resolvable:$true] %s115_s3 }
  0x2a   :  { %s6131_s8 = scalar_lea.hbm %s8473_s11, 1024 }
  0x2b   :  { %p6132_p8 = scmp.ne.s32.totalorder %s8473_s11, %s6131_s8  ;;  %p6135_p9 = scmp.lt.u32.totalorder %s6131_s8, %s8473_s11 }
  0x2d   :  { %p6137_p10 = pnand %p6135_p9, %p6132_p8 }
  0x2f   :  { %6140 = shalt.err (!%p6137_p10)
}
  0x30   :  { %s6141_s2 = scalar_lea.vmem %s92_s6, 1024  ;;  %p6146_p12 = scmp.lt.s32.totalorder %s92_s6, %s92_s6 }
  0x31   :  { %p6142_p11 = scmp.ne.s32.totalorder %s92_s6, %s6141_s2  ;;  %p6147_p13 = scmp.lt.s32.totalorder %s6141_s2, %s6141_s2 }
  0x33   :  { %p6148_p0 = por %p6147_p13, %p6146_p12 }
  0x35   :  { %p6149_p1 = pnand %p6148_p0, %p6142_p11 }
  0x37   :  { %6152 = shalt.err (!%p6149_p1)
}
  0x38   :  { %97 = dma.hbm_to_vmem [thread:$0]  %s8473_s11, 1024, %s92_s6, [#allocation8], %s6342_s28, %s6342_s28, %s6343_s9  }
  0x39   :  { %s6153_s25 = scalar_lea.hbm %s8476_s14, 1024 }
  0x3a   :  { %p6154_p2 = scmp.ne.s32.totalorder %s8476_s14, %s6153_s25  ;;  %p6157_p3 = scmp.lt.u32.totalorder %s6153_s25, %s8476_s14 }
  0x3c   :  { %p6159_p4 = pnand %p6157_p3, %p6154_p2 }
  0x3e   :  { %6162 = shalt.err (!%p6159_p4)
}
  0x3f   :  { %s6163_s8 = scalar_lea.vmem %s116_s3, 1024  ;;  %p6168_p6 = scmp.lt.s32.totalorder %s116_s3, %s116_s3 }
  0x40   :  { %p6164_p5 = scmp.ne.s32.totalorder %s116_s3, %s6163_s8  ;;  %p6169_p7 = scmp.lt.s32.totalorder %s6163_s8, %s6163_s8 }
  0x42   :  { %p6170_p8 = por %p6169_p7, %p6168_p6 }
  0x44   :  { %p6171_p9 = pnand %p6170_p8, %p6164_p5 }
  0x46   :  { %6174 = shalt.err (!%p6171_p9)
}
  0x47   :  { %121 = dma.hbm_to_vmem [thread:$0]  %s8476_s14, 1024, %s116_s3, [#allocation11], %s6342_s28, %s6342_s28, %s6343_s9  }
  0x48   :  { %s6346_s27 = smov [#allocation13]   ;;  %s6347_s2 = smov [#allocation2]  }
  0x49   :  { %s145_s4 = sshll.u32 %s6346_s27, 4  ;;  %s55_s7 = sshll.u32 %s6347_s2, 4  ;;  %s146_s4 = int_to_ptr.vmem [resolvable:$true] %s145_s4  ;;  %s56_s7 = int_to_ptr.vmem [resolvable:$true] %s55_s7 }
  0x4a   :  { %s6175_s24 = scalar_lea.hbm %s8481_s19, 512 }
  0x4b   :  { %p6176_p10 = scmp.ne.s32.totalorder %s8481_s19, %s6175_s24  ;;  %p6179_p11 = scmp.lt.u32.totalorder %s6175_s24, %s8481_s19 }
  0x4d   :  { %p6181_p12 = pnand %p6179_p11, %p6176_p10 }
  0x4f   :  { %6184 = shalt.err (!%p6181_p12)
}
  0x50   :  { %s6185_s14 = scalar_lea.vmem %s146_s4, 512  ;;  %p6190_p0 = scmp.lt.s32.totalorder %s146_s4, %s146_s4 }
  0x51   :  { %p6186_p13 = scmp.ne.s32.totalorder %s146_s4, %s6185_s14  ;;  %p6191_p1 = scmp.lt.s32.totalorder %s6185_s14, %s6185_s14 }
  0x53   :  { %p6192_p2 = por %p6191_p1, %p6190_p0 }
  0x55   :  { %p6193_p3 = pnand %p6192_p2, %p6186_p13 }
  0x57   :  { %6196 = shalt.err (!%p6193_p3)
}
  0x58   :  { %s6348_s28 = smov 128   ;;  %s6349_s3 = smov 8  }
  0x59   :  { %151 = dma.hbm_to_vmem [thread:$0]  %s8481_s19, 512, %s146_s4, [#allocation14], %s6348_s28, %s6348_s28, %s6349_s3  }
  0x5a   :  { %s8563_s27 = sld [smem:[#allocation61_spill]] }
  0x60   :  { %s6197_s2 = scalar_lea.hbm %s8563_s27, 512 }
  0x61   :  { %p6198_p4 = scmp.ne.s32.totalorder %s8563_s27, %s6197_s2  ;;  %p6201_p5 = scmp.lt.u32.totalorder %s6197_s2, %s8563_s27 }
  0x63   :  { %p6203_p6 = pnand %p6201_p5, %p6198_p4 }
  0x65   :  { %6206 = shalt.err (!%p6203_p6)
}
  0x66   :  { %s6207_s29 = scalar_lea.vmem %s56_s7, 512  ;;  %p6212_p8 = scmp.lt.s32.totalorder %s56_s7, %s56_s7 }
  0x67   :  { %p6208_p7 = scmp.ne.s32.totalorder %s56_s7, %s6207_s29  ;;  %p6213_p9 = scmp.lt.s32.totalorder %s6207_s29, %s6207_s29 }
  0x69   :  { %p6214_p10 = por %p6213_p9, %p6212_p8 }
  0x6b   :  { %p6215_p11 = pnand %p6214_p10, %p6208_p7 }
  0x6d   :  { %6218 = shalt.err (!%p6215_p11)
}
  0x6e   :  { %61 = dma.hbm_to_vmem [thread:$0]  %s8563_s27, 512, %s56_s7, [#allocation3], %s6348_s28, %s6348_s28, %s6349_s3  }
  0x6f   :  { %s6350_s30 = smov [#allocation6]   ;;  %s6351_s14 = smov [#allocation9]  }
  0x70   :  { %s82_s26 = sshll.u32 %s6350_s30, 4  ;;  %s106_s1 = sshll.u32 %s6351_s14, 4  ;;  %s83_s26 = int_to_ptr.vmem [resolvable:$true] %s82_s26  ;;  %s107_s1 = int_to_ptr.vmem [resolvable:$true] %s106_s1 }
  0x71   :  { %s6219_s6 = scalar_lea.hbm %s8472_s10, 32 }
  0x72   :  { %p6220_p12 = scmp.ne.s32.totalorder %s8472_s10, %s6219_s6  ;;  %p6223_p13 = scmp.lt.u32.totalorder %s6219_s6, %s8472_s10 }
  0x74   :  { %p6225_p0 = pnand %p6223_p13, %p6220_p12 }
  0x76   :  { %6228 = shalt.err (!%p6225_p0)
}
  0x77   :  { %s6229_s7 = scalar_lea.vmem %s83_s26, 32  ;;  %p6234_p2 = scmp.lt.s32.totalorder %s83_s26, %s83_s26 }
  0x78   :  { %p6230_p1 = scmp.ne.s32.totalorder %s83_s26, %s6229_s7  ;;  %p6235_p3 = scmp.lt.s32.totalorder %s6229_s7, %s6229_s7 }
  0x7a   :  { %p6236_p4 = por %p6235_p3, %p6234_p2 }
  0x7c   :  { %p6237_p5 = pnand %p6236_p4, %p6230_p1 }
  0x7e   :  { %6240 = shalt.err (!%p6237_p5)
}
  0x7f   :  { %85 = dma.hbm_to_vmem [thread:$0]  %s8472_s10, 32, %s83_s26, [#allocation5]  }
  0x80   :  { %s6241_s4 = scalar_lea.hbm %s8475_s13, 32 }
  0x81   :  { %p6242_p6 = scmp.ne.s32.totalorder %s8475_s13, %s6241_s4  ;;  %p6245_p7 = scmp.lt.u32.totalorder %s6241_s4, %s8475_s13 }
  0x83   :  { %p6247_p8 = pnand %p6245_p7, %p6242_p6 }
  0x85   :  { %6250 = shalt.err (!%p6247_p8)
}
  0x86   :  { %s6251_s6 = scalar_lea.vmem %s107_s1, 32  ;;  %p6256_p10 = scmp.lt.s32.totalorder %s107_s1, %s107_s1 }
  0x87   :  { %p6252_p9 = scmp.ne.s32.totalorder %s107_s1, %s6251_s6  ;;  %p6257_p11 = scmp.lt.s32.totalorder %s6251_s6, %s6251_s6 }
  0x89   :  { %p6258_p12 = por %p6257_p11, %p6256_p10 }
  0x8b   :  { %p6259_p13 = pnand %p6258_p12, %p6252_p9 }
  0x8d   :  { %6262 = shalt.err (!%p6259_p13)
}
  0x8e   :  { %109 = dma.hbm_to_vmem [thread:$0]  %s8475_s13, 32, %s107_s1, [#allocation8]  }
  0x8f   :  { %s6352_s2 = smov [#allocation12]   ;;  %s6353_s0 = smov [#allocation15]  }
  0x90   :  { %s127_s5 = sshll.u32 %s6352_s2, 4  ;;  %s159_s24 = sshll.u32 %s6353_s0, 4  ;;  %s128_s5 = int_to_ptr.vmem [resolvable:$true] %s127_s5  ;;  %s160_s24 = int_to_ptr.vmem [resolvable:$true] %s159_s24 }
  0x91   :  { %s6263_s25 = scalar_lea.hbm %s8477_s15, 1024 }
  0x92   :  { %p6264_p0 = scmp.ne.s32.totalorder %s8477_s15, %s6263_s25  ;;  %p6267_p1 = scmp.lt.u32.totalorder %s6263_s25, %s8477_s15 }
  0x94   :  { %p6269_p2 = pnand %p6267_p1, %p6264_p0 }
  0x96   :  { %6272 = shalt.err (!%p6269_p2)
}
  0x97   :  { %s6273_s13 = scalar_lea.vmem %s128_s5, 1024  ;;  %p6278_p4 = scmp.lt.s32.totalorder %s128_s5, %s128_s5 }
  0x98   :  { %p6274_p3 = scmp.ne.s32.totalorder %s128_s5, %s6273_s13  ;;  %p6279_p5 = scmp.lt.s32.totalorder %s6273_s13, %s6273_s13 }
  0x9a   :  { %p6280_p6 = por %p6279_p5, %p6278_p4 }
  0x9c   :  { %p6281_p7 = pnand %p6280_p6, %p6274_p3 }
  0x9e   :  { %6284 = shalt.err (!%p6281_p7)
}
  0x9f   :  { %133 = dma.hbm_to_vmem [thread:$0]  %s8477_s15, 1024, %s128_s5, [#allocation11], %s6348_s28, %s6348_s28, %s6349_s3  }
  0xa0   :  { %s6285_s6 = scalar_lea.hbm %s8483_s21, 768 }
  0xa1   :  { %p6286_p8 = scmp.ne.s32.totalorder %s8483_s21, %s6285_s6  ;;  %p6289_p9 = scmp.lt.u32.totalorder %s6285_s6, %s8483_s21 }
  0xa3   :  { %p6291_p10 = pnand %p6289_p9, %p6286_p8 }
  0xa5   :  { %6294 = shalt.err (!%p6291_p10)
}
  0xa6   :  { %s6295_s7 = scalar_lea.vmem %s160_s24, 768  ;;  %p6300_p12 = scmp.lt.s32.totalorder %s160_s24, %s160_s24 }
  0xa7   :  { %p6296_p11 = scmp.ne.s32.totalorder %s160_s24, %s6295_s7  ;;  %p6301_p13 = scmp.lt.s32.totalorder %s6295_s7, %s6295_s7 }
  0xa9   :  { %p6302_p0 = por %p6301_p13, %p6300_p12 }
  0xab   :  { %p6303_p1 = pnand %p6302_p0, %p6296_p11 }
  0xad   :  { %6306 = shalt.err (!%p6303_p1)
}
  0xae   :  { %165 = dma.hbm_to_vmem [thread:$0]  %s8483_s21, 768, %s160_s24, [#allocation14], %s6348_s28, %s6348_s28, %s6349_s3  }
  0xaf   :  { %s6354_s27 = smov [#allocation16]   ;;  %s6307_s4 = scalar_lea.hbm %s8485_s23, 256 }
  0xb0   :  { %s173_s25 = sshll.u32 %s6354_s27, 4  ;;  %p6308_p2 = scmp.ne.s32.totalorder %s8485_s23, %s6307_s4  ;;  %s174_s25 = int_to_ptr.vmem [resolvable:$true] %s173_s25 }
  0xb1   :  { %p6311_p3 = scmp.lt.u32.totalorder %s6307_s4, %s8485_s23 }
  0xb3   :  { %p6313_p4 = pnand %p6311_p3, %p6308_p2 }
  0xb5   :  { %6316 = shalt.err (!%p6313_p4)
}
  0xb6   :  { %s6317_s8 = scalar_lea.vmem %s174_s25, 256  ;;  %p6322_p6 = scmp.lt.s32.totalorder %s174_s25, %s174_s25 }
  0xb7   :  { %p6318_p5 = scmp.ne.s32.totalorder %s174_s25, %s6317_s8  ;;  %p6323_p7 = scmp.lt.s32.totalorder %s6317_s8, %s6317_s8 }
  0xb9   :  { %p6324_p8 = por %p6323_p7, %p6322_p6 }
  0xbb   :  { %p6325_p9 = pnand %p6324_p8, %p6318_p5 }
  0xbd   :  { %6328 = shalt.err (!%p6325_p9)
}
  0xbe   :  { %179 = dma.hbm_to_vmem [thread:$0]  %s8485_s23, 256, %s174_s25, [#allocation17], %s6348_s28, %s6348_s28, %s6349_s3  }
  0xbf   :  { %6329 = dma.done.wait [#allocation3], 512  }
  0xc0   :  { %6330 = vsyncadd [#allocation3], 4294966784 }
  0xc1   :  { %6331 = dma.done.wait [#allocation5], 1056  }
  0xc2   :  { %6332 = vsyncadd [#allocation5], 4294966240 }
  0xc3   :  { %6333 = dma.done.wait [#allocation8], 1056  }
  0xc4   :  { %6334 = vsyncadd [#allocation8], 4294966240 }
  0xc5   :  { %6335 = dma.done.wait [#allocation11], 2048  }
  0xc6   :  { %6336 = vsyncadd [#allocation11], 4294965248 }
  0xc7   :  { %6337 = dma.done.wait [#allocation14], 1280  }
  0xc8   :  { %6338 = vsyncadd [#allocation14], 4294966016 }
  0xc9   :  { %6339 = dma.done.wait [#allocation17], 256  }
  0xca   :  { %6340 = vsyncadd [#allocation17], 4294967040  ;;  %s8564_s10 = sld [smem:[#allocation54_spill]]  ;;  %vm283_vm0 = vcmask 1045504   ;;  %vm233_vm1 = vcmask 1046528   ;;  %s6355_s0 = smov 4  }
  0xcb   :  { %vm333_vm2 = vcmask 1044480   ;;  %vm8549_vm3 = vcmask 1043456   ;;  %s6356_s5 = smov 12   ;;  %vm8548_vm4 = vcmask 1042432   ;;  %s6357_s29 = smov 20   ;;  %vm8547_vm5 = vcmask 1041408  }
  0xcc   :  { %s6358_s19 = smov 24   ;;  %vm8546_vm6 = vcmask 1040384   ;;  %s8565_s14 = sld [smem:[#allocation55_spill]]  ;;  %vm592_vm7 = vcmask 31744   ;;  %vm8504_vm8 = vcmask 64512   ;;  %vm8503_vm9 = vcmask 97280  }
  0xcd   :  { %s6359_s2 = smov 28   ;;  %vm625_vm10 = vcmask 130048   ;;  %vm8502_vm11 = vcmask 162816   ;;  %vm8501_vm12 = vcmask 195584   ;;  %vm8500_vm13 = vcmask 228352   ;;  %s8566_s21 = sld [smem:[#allocation57_spill]] }
  0xce   :  { %vm8506_vm14 = vcmask 261120   ;;  %vm6361_vm15 = vmmov 0   ;;  %s8575_s23 = sld [smem:[#allocation56_spill]]  ;;  %s8576_s15 = sld [smem:[#allocation58_spill]] }
  0xcf   :  { %s6364_s27 = smov 112   ;;  %s8577_s30 = sld [smem:[#allocation59_spill]] }
  0xd0   :  { %v6647_v0 = vld [vmem:[%s8564_s10] sm:$0xff]  ;;  %v6652_v1 = vld [vmem:[%s8564_s10 + $0x8] sm:$0xff]  ;;  %v6657_v2 = vld [vmem:[%s8564_s10 + $0x10] sm:$0xff]  ;;  %s6366_s26 = smov 48   ;;  %s6367_s28 = smov 64  }
  0xd1   :  { %v284_v3 = vrot.slane %v6647_v0, 2  ;;  %v285_v4 = vrot.slane %v6652_v1, 2  ;;  %v234_v5 = vrot.slane %v6647_v0, 1  ;;  %v235_v6 = vrot.slane %v6652_v1, 1  ;;  %v6677_v16 = vld [vmem:[%s8564_s10 + $0x18] sm:$0xff]  ;;  %v6696_v27 = vld [vmem:[%s8564_s10 + $0x20] sm:$0xff] }
  0xd2   :  { %v287_v7 = vrot.slane %v6657_v2, 2  ;;  %v237_v8 = vrot.slane %v6657_v2, 1  ;;  %v335_v11 = vrot.slane %v6652_v1, 3  ;;  %v337_v14 = vrot.slane %v6657_v2, 3  ;;  %v6733_v50 = vld [vmem:[%s8564_s10 + $0x28] sm:$0xff]  ;;  %v669_v51 = vld [vmem:[%s8565_s14] sm:$0xff] }
  0xd3   :  { %v286_v9 = vsel %vm283_vm0, %v284_v3, %v285_v4  ;;  %v236_v10 = vsel %vm233_vm1, %v234_v5, %v235_v6  ;;  %v334_v15 = vrot.slane %v6647_v0, 3  ;;  %v239_v17 = vrot.slane %v6677_v16, 1  ;;  %v670_v52 = vld [vmem:[%s8565_s14 + $0x8] sm:$0xff]  ;;  %v671_v53 = vld [vmem:[%s8565_s14 + $0x10] sm:$0xff]  ;;  %v672_v54 = vld [vmem:[%s8565_s14 + $0x18] sm:$0xff]  ;;  %s6368_s4 = smov 80  }
  0xd4   :  { %303 = vrot.lane.b32.xlu1 %v286_v9, %s6349_s3  ;;  %253 = vrot.lane.b32.xlu0 %v236_v10, %s6355_s0  ;;  %v288_v12 = vsel %vm283_vm0, %v285_v4, %v287_v7  ;;  %v238_v13 = vsel %vm233_vm1, %v235_v6, %v237_v8  ;;  %v338_v18 = vsel %vm333_vm2, %v335_v11, %v337_v14  ;;  %v385_v20 = vrot.slane %v6647_v0, 4  ;;  %v6769_v4 = vld [vmem:[%s8564_s10 + $0x30] sm:$0xff]  ;;  %s6369_s13 = smov 96   ;;  %s8687_s7 = sld [smem:[#allocation62_spill]] }
  0xd5   :  { %v336_v19 = vsel %vm333_vm2, %v334_v15, %v335_v11  ;;  %v386_v21 = vrot.slane %v6652_v1, 4  ;;  %v240_v22 = vsel %vm233_vm1, %v237_v8, %v239_v17  ;;  %v437_v24 = vrot.slane %v6647_v0, 5 }
  0xd6   :  { %v438_v25 = vrot.slane %v6652_v1, 5  ;;  %v388_v26 = vrot.slane %v6657_v2, 4  ;;  %v289_v30 = vrot.slane %v6677_v16, 2  ;;  %v241_v31 = vrot.slane %v6696_v27, 1 }
  0xd7   :  { %v387_v23 = vsel %vm8549_vm3, %v385_v20, %v386_v21  ;;  %v489_v32 = vrot.slane %v6647_v0, 6  ;;  %v490_v35 = vrot.slane %v6652_v1, 6  ;;  %v440_v36 = vrot.slane %v6657_v2, 5 }
  0xd8   :  { %305 = vrot.lane.b32.xlu1 %v288_v12, %s6349_s3  ;;  %255 = vrot.lane.b32.xlu0 %v238_v13, %s6355_s0  ;;  %v439_v28 = vsel %vm8548_vm4, %v437_v24, %v438_v25  ;;  %v389_v29 = vsel %vm8549_vm3, %v386_v21, %v388_v26  ;;  %v290_v33 = vsel %vm283_vm0, %v287_v7, %v289_v30  ;;  %v339_v37 = vrot.slane %v6677_v16, 3 }
  0xd9   :  { %v242_v34 = vsel %vm233_vm1, %v239_v17, %v241_v31  ;;  %v491_v38 = vsel %vm8547_vm5, %v489_v32, %v490_v35  ;;  %v441_v39 = vsel %vm8548_vm4, %v438_v25, %v440_v36  ;;  %v291_v40 = vrot.slane %v6696_v27, 2 }
  0xda   :  { %v340_v41 = vsel %vm333_vm2, %v337_v14, %v339_v37  ;;  %v541_v43 = vrot.slane %v6647_v0, 7  ;;  %v542_v44 = vrot.slane %v6652_v1, 7  ;;  %v492_v45 = vrot.slane %v6657_v2, 6 }
  0xdb   :  { %v292_v42 = vsel %vm283_vm0, %v289_v30, %v291_v40  ;;  %v390_v48 = vrot.slane %v6677_v16, 4  ;;  %v341_v49 = vrot.slane %v6696_v27, 3  ;;  %v243_v55 = vrot.slane %v6733_v50, 1 }
  0xdc   :  { %355 = vrot.lane.b32.xlu1 %v338_v18, %s6356_s5  ;;  %353 = vrot.lane.b32.xlu0 %v336_v19, %s6356_s5  ;;  %v543_v46 = vsel %vm8546_vm6, %v541_v43, %v542_v44  ;;  %v493_v47 = vsel %vm8547_vm5, %v490_v35, %v492_v45  ;;  %v6750_v56 = vpack.c.bf16 %v670_v52, %v669_v51  ;;  %v544_v59 = vrot.slane %v6657_v2, 7 }
  0xdd   :  { %v391_v57 = vsel %vm8549_vm3, %v388_v26, %v390_v48  ;;  %v342_v58 = vsel %vm333_vm2, %v339_v37, %v341_v49  ;;  %v6755_v60 = vpack.c.bf16 %v672_v54, %v671_v53  ;;  %v244_v61 = vsel %vm233_vm1, %v241_v31, %v243_v55  ;;  %v6805_v26 = vld [vmem:[%s8564_s10 + $0x38] sm:$0xff] }
  0xde   :  { %5573 = vmatprep.subr.bf16.mxu0 %v6750_v56  ;;  %v545_v62 = vsel %vm8546_vm6, %v542_v44, %v544_v59  ;;  %v442_v63 = vrot.slane %v6677_v16, 5  ;;  %v392_v3 = vrot.slane %v6696_v27, 4  ;;  %v293_v7 = vrot.slane %v6733_v50, 2 }
  0xdf   :  { %5575 = vmatpush3.bf16.msra.mxu0 %v6750_v56  ;;  %v245_v8 = vrot.slane %v6769_v4, 1  ;;  %v494_v11 = vrot.slane %v6677_v16, 6  ;;  %v444_v12 = vrot.slane %v6696_v27, 5  ;;  %v343_v15 = vrot.slane %v6733_v50, 3 }
  0xe0   :  { %257 = vrot.lane.b32.xlu1 %v240_v22, %s6355_s0  ;;  %406 = vrot.lane.b32.xlu0 %v387_v23, %s6343_s9  ;;  %v443_v5 = vsel %vm8548_vm4, %v440_v36, %v442_v63  ;;  %v393_v6 = vsel %vm8549_vm3, %v390_v48, %v392_v3  ;;  %v294_v9 = vsel %vm283_vm0, %v291_v40, %v293_v7  ;;  %v295_v17 = vrot.slane %v6769_v4, 2  ;;  %v6822_v36 = vld [vmem:[%s8564_s10 + $0x40] sm:$0xff] }
  0xe1   :  { %5577 = vmatprep.subr.bf16.mxu0 %v6755_v60  ;;  %v246_v10 = vsel %vm233_vm1, %v243_v55, %v245_v8  ;;  %v495_v13 = vsel %vm8547_vm5, %v492_v45, %v494_v11  ;;  %v445_v14 = vsel %vm8548_vm4, %v442_v63, %v444_v12  ;;  %v344_v18 = vsel %vm333_vm2, %v341_v49, %v343_v15 }
  0xe2   :  { %v296_v19 = vsel %vm283_vm0, %v293_v7, %v295_v17  ;;  %v546_v20 = vrot.slane %v6677_v16, 7  ;;  %v496_v21 = vrot.slane %v6696_v27, 6  ;;  %v394_v24 = vrot.slane %v6733_v50, 4 }
  0xe3   :  { %5579 = vmatpush3.bf16.msra.mxu0 %v6755_v60  ;;  %v345_v25 = vrot.slane %v6769_v4, 3  ;;  %v247_v30 = vrot.slane %v6805_v26, 1  ;;  %v548_v31 = vrot.slane %v6696_v27, 7  ;;  %v396_v35 = vrot.slane %v6769_v4, 4 }
  0xe4   :  { %458 = vrot.lane.b32.xlu1 %v439_v28, %s6357_s29  ;;  %408 = vrot.lane.b32.xlu0 %v389_v29, %s6343_s9  ;;  %v547_v22 = vsel %vm8546_vm6, %v544_v59, %v546_v20  ;;  %v497_v23 = vsel %vm8547_vm5, %v494_v11, %v496_v21  ;;  %v395_v28 = vsel %vm8549_vm3, %v392_v3, %v394_v24  ;;  %v249_v40 = vrot.slane %v6822_v36, 1  ;;  %v6857_v59 = vld [vmem:[%s8564_s10 + $0x48] sm:$0xff] }
  0xe5   :  { %v346_v29 = vsel %vm333_vm2, %v343_v15, %v345_v25  ;;  %v248_v32 = vsel %vm233_vm1, %v245_v8, %v247_v30  ;;  %v498_v43 = vrot.slane %v6733_v50, 6  ;;  %v448_v44 = vrot.slane %v6769_v4, 5 }
  0xe6   :  { %v299_v48 = vrot.slane %v6822_v36, 2  ;;  %v550_v52 = vrot.slane %v6733_v50, 7  ;;  %v500_v53 = vrot.slane %v6769_v4, 6  ;;  %v251_v63 = vrot.slane %v6857_v59, 1 }
  0xe7   :  { %v499_v45 = vsel %vm8547_vm5, %v496_v21, %v498_v43  ;;  %v552_v3 = vrot.slane %v6769_v4, 7  ;;  %v450_v7 = vrot.slane %v6805_v26, 5  ;;  %v400_v8 = vrot.slane %v6822_v36, 4 }
  0xe8   :  { %307 = vrot.lane.b32.xlu1 %v290_v33, %s6349_s3  ;;  %259 = vrot.lane.b32.xlu0 %v242_v34, %s6355_s0  ;;  %v549_v33 = vsel %vm8546_vm6, %v546_v20, %v548_v31  ;;  %v446_v34 = vrot.slane %v6733_v50, 5  ;;  %v551_v54 = vsel %vm8546_vm6, %v548_v31, %v550_v52  ;;  %v501_v55 = vsel %vm8547_vm5, %v498_v43, %v500_v53 }
  0xe9   :  { %v301_v11 = vrot.slane %v6857_v59, 2  ;;  %v554_v20 = vrot.slane %v6805_v26, 7  ;;  %v504_v21 = vrot.slane %v6822_v36, 6 }
  0xea   :  { %v447_v37 = vsel %vm8548_vm4, %v444_v12, %v446_v34 }
  0xeb   :  { %v302_v12 = vsel %vm283_vm0, %v299_v48, %v301_v11 }
  0xec   :  { %510 = vrot.lane.b32.xlu1 %v491_v38, %s6358_s19  ;;  %460 = vrot.lane.b32.xlu0 %v441_v39, %s6357_s29  ;;  %v397_v38 = vsel %vm8549_vm3, %v394_v24, %v396_v35  ;;  %v297_v39 = vrot.slane %v6805_v26, 2  ;;  %v402_v24 = vrot.slane %v6857_v59, 4 }
  0xee   :  { %v300_v51 = vsel %vm283_vm0, %v297_v39, %v299_v48 }
  0xf0   :  { %357 = vrot.lane.b32.xlu1 %v340_v41, %s6356_s5  ;;  %309 = vrot.lane.b32.xlu0 %v292_v42, %s6349_s3  ;;  %v298_v41 = vsel %vm283_vm0, %v295_v17, %v297_v39  ;;  %v250_v42 = vsel %vm233_vm1, %v247_v30, %v249_v40  ;;  %v403_v30 = vsel %vm8549_vm3, %v400_v8, %v402_v24 }
  0xf4   :  { %562 = vrot.lane.b32.xlu1 %v543_v46, %s6359_s2  ;;  %512 = vrot.lane.b32.xlu0 %v493_v47, %s6358_s19  ;;  %v449_v46 = vsel %vm8548_vm4, %v446_v34, %v448_v44  ;;  %v347_v47 = vrot.slane %v6805_v26, 3 }
  0xf6   :  { %v348_v49 = vsel %vm333_vm2, %v345_v25, %v347_v47 }
  0xf8   :  { %410 = vrot.lane.b32.xlu1 %v391_v57, %s6343_s9  ;;  %359 = vrot.lane.b32.xlu0 %v342_v58, %s6356_s5  ;;  %v398_v57 = vrot.slane %v6805_v26, 4  ;;  %v349_v58 = vrot.slane %v6822_v36, 3 }
  0xfc   :  { %261 = vrot.lane.b32.xlu1 %v244_v61, %s6355_s0  ;;  %564 = vrot.lane.b32.xlu0 %v545_v62, %s6359_s2  ;;  %v399_v61 = vsel %vm8549_vm3, %v396_v35, %v398_v57  ;;  %v350_v62 = vsel %vm333_vm2, %v347_v47, %v349_v58 }
 0x100   :  { %462 = vrot.lane.b32.xlu1 %v443_v5, %s6357_s29  ;;  %412 = vrot.lane.b32.xlu0 %v393_v6, %s6343_s9  ;;  %v252_v5 = vsel %vm233_vm1, %v249_v40, %v251_v63  ;;  %v553_v6 = vsel %vm8546_vm6, %v550_v52, %v552_v3 }
 0x104   :  { %311 = vrot.lane.b32.xlu1 %v294_v9, %s6349_s3  ;;  %263 = vrot.lane.b32.xlu0 %v246_v10, %s6355_s0  ;;  %v451_v9 = vsel %vm8548_vm4, %v448_v44, %v450_v7  ;;  %v401_v10 = vsel %vm8549_vm3, %v398_v57, %v400_v8  ;;  %v506_v44 = vrot.slane %v6857_v59, 6 }
 0x108   :  { %514 = vrot.lane.b32.xlu1 %v495_v13, %s6358_s19  ;;  %464 = vrot.lane.b32.xlu0 %v445_v14, %s6357_s29  ;;  %v502_v13 = vrot.slane %v6805_v26, 6  ;;  %v452_v14 = vrot.slane %v6822_v36, 5 }
 0x10a   :  { %v503_v15 = vsel %vm8547_vm5, %v500_v53, %v502_v13  ;;  %v453_v17 = vsel %vm8548_vm4, %v450_v7, %v452_v14 }
 0x10c   :  { %361 = vrot.lane.b32.xlu1 %v344_v18, %s6356_s5  ;;  %313 = vrot.lane.b32.xlu0 %v296_v19, %s6349_s3  ;;  %v351_v18 = vrot.slane %v6857_v59, 3 }
 0x10e   :  { %v352_v19 = vsel %vm333_vm2, %v349_v58, %v351_v18 }
 0x110   :  { %566 = vrot.lane.b32.xlu1 %v547_v22, %s6359_s2  ;;  %516 = vrot.lane.b32.xlu0 %v497_v23, %s6358_s19  ;;  %v555_v22 = vsel %vm8546_vm6, %v552_v3, %v554_v20  ;;  %v505_v23 = vsel %vm8547_vm5, %v502_v13, %v504_v21 }
 0x114   :  { %414 = vrot.lane.b32.xlu1 %v395_v28, %s6343_s9  ;;  %363 = vrot.lane.b32.xlu0 %v346_v29, %s6356_s5  ;;  %v222_v29 = vld [vmem:[%s8564_s10 + $0x50] sm:$0xf] }
 0x115   :  { %v404_v31 = vrot.slane %v222_v29, 4  ;;  %v456_v39 = vrot.slane %v222_v29, 5  ;;  %v560_v52 = vrot.slane %v222_v29, 7 }
 0x117   :  { %v405_v35 = vsel %vm8549_vm3, %v402_v24, %v404_v31 }
 0x118   :  { %265 = vrot.lane.b32.xlu1 %v248_v32, %s6355_s0  ;;  %568 = vrot.lane.b32.xlu0 %v549_v33, %s6359_s2  ;;  %v556_v32 = vrot.slane %v6822_v36, 7 }
 0x11c   :  { %466 = vrot.lane.b32.xlu1 %v447_v37, %s6357_s29  ;;  %416 = vrot.lane.b32.xlu0 %v397_v38, %s6343_s9  ;;  %v557_v37 = vsel %vm8546_vm6, %v554_v20, %v556_v32  ;;  %v454_v38 = vrot.slane %v6857_v59, 5 }
 0x11e   :  { %v455_v43 = vsel %vm8548_vm4, %v452_v14, %v454_v38 }
 0x120   :  { %315 = vrot.lane.b32.xlu1 %v298_v41, %s6349_s3  ;;  %267 = vrot.lane.b32.xlu0 %v250_v42, %s6355_s0  ;;  %v457_v42 = vsel %vm8548_vm4, %v454_v38, %v456_v39 }
 0x124   :  { %518 = vrot.lane.b32.xlu1 %v499_v45, %s6358_s19  ;;  %468 = vrot.lane.b32.xlu0 %v449_v46, %s6357_s29  ;;  %v508_v45 = vrot.slane %v222_v29, 6 }
 0x126   :  { %v509_v48 = vsel %vm8547_vm5, %v506_v44, %v508_v45 }
 0x128   :  { %365 = vrot.lane.b32.xlu1 %v348_v49, %s6356_s5  ;;  %317 = vrot.lane.b32.xlu0 %v300_v51, %s6349_s3  ;;  %v507_v49 = vsel %vm8547_vm5, %v504_v21, %v506_v44  ;;  %v558_v51 = vrot.slane %v6857_v59, 7 }
 0x12a   :  { %v559_v57 = vsel %vm8546_vm6, %v556_v32, %v558_v51 }
 0x12c   :  { %570 = vrot.lane.b32.xlu1 %v551_v54, %s6359_s2  ;;  %520 = vrot.lane.b32.xlu0 %v501_v55, %s6358_s19  ;;  %v561_v55 = vsel %vm8546_vm6, %v558_v51, %v560_v52 }
 0x130   :  { %418 = vrot.lane.b32.xlu1 %v399_v61, %s6343_s9  ;;  %367 = vrot.lane.b32.xlu0 %v350_v62, %s6356_s5 }
 0x134   :  { %269 = vrot.lane.b32.xlu1 %v252_v5, %s6355_s0  ;;  %572 = vrot.lane.b32.xlu0 %v553_v6, %s6359_s2 }
 0x138   :  { %470 = vrot.lane.b32.xlu1 %v451_v9, %s6357_s29  ;;  %420 = vrot.lane.b32.xlu0 %v401_v10, %s6343_s9 }
 0x13c   :  { %319 = vrot.lane.b32.xlu1 %v302_v12, %s6349_s3  ;;  %271 = vrot.lane.b32.xlu0 %v251_v63, %s6355_s0 }
 0x140   :  { %522 = vrot.lane.b32.xlu1 %v503_v15, %s6358_s19  ;;  %472 = vrot.lane.b32.xlu0 %v453_v17, %s6357_s29 }
 0x144   :  { %369 = vrot.lane.b32.xlu1 %v352_v19, %s6356_s5  ;;  %321 = vrot.lane.b32.xlu0 %v301_v11, %s6349_s3 }
 0x146   :  { %v304_v25 = vpop.permute.xlu1 %303  ;;  %v254_v28 = vpop.permute.xlu0 %253 }
 0x147   :  { %v593_v3 = vsel %vm592_vm7, %v6647_v0, %v254_v28 }
 0x148   :  { %574 = vrot.lane.b32.xlu1 %v555_v22, %s6359_s2  ;;  %524 = vrot.lane.b32.xlu0 %v505_v23, %s6358_s19  ;;  %v604_v5 = vsel %vm8504_vm8, %v593_v3, %v304_v25 }
 0x14a   :  { %v306_v33 = vpop.permute.xlu1 %305  ;;  %v256_v34 = vpop.permute.xlu0 %255 }
 0x14b   :  { %v594_v13 = vsel %vm592_vm7, %v6652_v1, %v256_v34 }
 0x14c   :  { %422 = vrot.lane.b32.xlu1 %v403_v30, %s6343_s9  ;;  %371 = vrot.lane.b32.xlu0 %v351_v18, %s6356_s5  ;;  %v605_v15 = vsel %vm8504_vm8, %v594_v13, %v306_v33 }
 0x14e   :  { %v356_v40 = vpop.permute.xlu1 %355  ;;  %v354_v41 = vpop.permute.xlu0 %353 }
 0x14f   :  { %v615_v8 = vsel %vm8503_vm9, %v604_v5, %v354_v41  ;;  %v616_v19 = vsel %vm8503_vm9, %v605_v15, %v356_v40 }
 0x150   :  { %424 = vrot.lane.b32.xlu1 %v405_v35, %s6343_s9  ;;  %576 = vrot.lane.b32.xlu0 %v557_v37, %s6359_s2 }
 0x152   :  { %v258_v46 = vpop.permute.xlu1 %257  ;;  %v407_v47 = vpop.permute.xlu0 %406 }
 0x153   :  { %v626_v9 = vsel %vm625_vm10, %v615_v8, %v407_v47  ;;  %v595_v33 = vsel %vm592_vm7, %v6657_v2, %v258_v46 }
 0x154   :  { %476 = vrot.lane.b32.xlu1 %v457_v42, %s6357_s29  ;;  %474 = vrot.lane.b32.xlu0 %v455_v43, %s6357_s29 }
 0x156   :  { %v459_v53 = vpop.permute.xlu1 %458  ;;  %v409_v54 = vpop.permute.xlu0 %408 }
 0x157   :  { %v637_v10 = vsel %vm8502_vm11, %v626_v9, %v459_v53  ;;  %v627_v20 = vsel %vm625_vm10, %v616_v19, %v409_v54 }
 0x158   :  { %528 = vrot.lane.b32.xlu1 %v509_v48, %s6358_s19  ;;  %526 = vrot.lane.b32.xlu0 %v507_v49, %s6358_s19 }
 0x15a   :  { %v308_v58 = vpop.permute.xlu1 %307  ;;  %v260_v61 = vpop.permute.xlu0 %259 }
 0x15b   :  { %v606_v34 = vsel %vm8504_vm8, %v595_v33, %v308_v58  ;;  %v596_v2 = vsel %vm592_vm7, %v6677_v16, %v260_v61 }
 0x15c   :  { %580 = vrot.lane.b32.xlu1 %v561_v55, %s6359_s2  ;;  %578 = vrot.lane.b32.xlu0 %v559_v57, %s6359_s2 }
 0x15e   :  { %v511_v62 = vpop.permute.xlu1 %510  ;;  %v461_v63 = vpop.permute.xlu0 %460 }
 0x15f   :  { %v648_v11 = vsel %vm8501_vm12, %v637_v10, %v511_v62  ;;  %v638_v21 = vsel %vm8502_vm11, %v627_v20, %v461_v63 }
 0x162   :  { %v358_v6 = vpop.permute.xlu1 %357  ;;  %v310_v7 = vpop.permute.xlu0 %309 }
 0x163   :  { %v617_v38 = vsel %vm8503_vm9, %v606_v34, %v358_v6  ;;  %v607_v45 = vsel %vm8504_vm8, %v596_v2, %v310_v7 }
 0x166   :  { %v563_v0 = vpop.permute.xlu1 %562  ;;  %v513_v12 = vpop.permute.xlu0 %512 }
 0x167   :  { %v659_v14 = vsel %vm8500_vm13, %v648_v11, %v563_v0  ;;  %v649_v22 = vsel %vm8501_vm12, %v638_v21, %v513_v12 }
 0x168   :  { %5205 = vmatprep.mubr.msk.f32.mxu0 %vm8506_vm14, %v659_v14 }
 0x16a   :  { %v411_v17 = vpop.permute.xlu1 %410  ;;  %v360_v18 = vpop.permute.xlu0 %359 }
 0x16b   :  { %v628_v39 = vsel %vm625_vm10, %v617_v38, %v411_v17  ;;  %v618_v48 = vsel %vm8503_vm9, %v607_v45, %v360_v18 }
 0x16e   :  { %v262_v23 = vpop.permute.xlu1 %261  ;;  %v565_v24 = vpop.permute.xlu0 %564 }
 0x16f   :  { %v660_v1 = vsel %vm8500_vm13, %v649_v22, %v565_v24  ;;  %v597_v3 = vsel %vm592_vm7, %v6696_v27, %v262_v23 }
 0x170   :  { %5206 = vmatmul.mubr.msk.f32.vlgmr.msra.gmra.mrb[0].mxu0 %vm8506_vm14, %v660_v1 }
 0x172   :  { %v463_v25 = vpop.permute.xlu1 %462  ;;  %v413_v28 = vpop.permute.xlu0 %412 }
 0x173   :  { %v639_v40 = vsel %vm8502_vm11, %v628_v39, %v463_v25  ;;  %v629_v49 = vsel %vm625_vm10, %v618_v48, %v413_v28 }
 0x176   :  { %v312_v29 = vpop.permute.xlu1 %311  ;;  %v264_v30 = vpop.permute.xlu0 %263 }
 0x177   :  { %v608_v5 = vsel %vm8504_vm8, %v597_v3, %v312_v29  ;;  %v598_v27 = vsel %vm592_vm7, %v6733_v50, %v264_v30 }
 0x17a   :  { %v515_v31 = vpop.permute.xlu1 %514  ;;  %v465_v32 = vpop.permute.xlu0 %464 }
 0x17b   :  { %v650_v41 = vsel %vm8501_vm12, %v639_v40, %v515_v31  ;;  %v640_v51 = vsel %vm8502_vm11, %v629_v49, %v465_v32 }
 0x17e   :  { %v362_v35 = vpop.permute.xlu1 %361  ;;  %v314_v37 = vpop.permute.xlu0 %313 }
 0x17f   :  { %v619_v8 = vsel %vm8503_vm9, %v608_v5, %v362_v35  ;;  %v609_v14 = vsel %vm8504_vm8, %v598_v27, %v314_v37  ;;  %v939_v27 = vld [vmem:[%s8566_s21 + $0x8] sm:$0xff] }
 0x182   :  { %v567_v42 = vpop.permute.xlu1 %566  ;;  %v517_v43 = vpop.permute.xlu0 %516 }
 0x183   :  { %v661_v44 = vsel %vm8500_vm13, %v650_v41, %v567_v42  ;;  %v651_v52 = vsel %vm8501_vm12, %v640_v51, %v517_v43 }
 0x184   :  { %5208 = vmatprep.mubr.msk.f32.mxu0 %vm8506_vm14, %v661_v44 }
 0x186   :  { %v415_v46 = vpop.permute.xlu1 %414  ;;  %v364_v47 = vpop.permute.xlu0 %363 }
 0x187   :  { %v630_v9 = vsel %vm625_vm10, %v619_v8, %v415_v46  ;;  %v620_v18 = vsel %vm8503_vm9, %v609_v14, %v364_v47 }
 0x18a   :  { %v266_v53 = vpop.permute.xlu1 %265  ;;  %v569_v54 = vpop.permute.xlu0 %568 }
 0x18b   :  { %v662_v55 = vsel %vm8500_vm13, %v651_v52, %v569_v54  ;;  %v599_v31 = vsel %vm592_vm7, %v6769_v4, %v266_v53  ;;  %v8510_v54 = vmov 0.0|0.0  }
 0x18c   :  { %5209 = vmatmul.mubr.msk.f32.gmra.mrb[2].mxu0 %vm8506_vm14, %v662_v55  ;;  %5580 = vmatprep.subr.bf16.mxu1 %v8510_v54 }
 0x18d   :  { %5596 = vmatprep.subr.bf16.mxu0 %v8510_v54 }
 0x18e   :  { %v467_v57 = vpop.permute.xlu1 %466  ;;  %v417_v16 = vpop.permute.xlu0 %416 }
 0x18f   :  { %v641_v10 = vsel %vm8502_vm11, %v630_v9, %v467_v57  ;;  %v631_v19 = vsel %vm625_vm10, %v620_v18, %v417_v16 }
 0x192   :  { %v316_v58 = vpop.permute.xlu1 %315  ;;  %v268_v61 = vpop.permute.xlu0 %267 }
 0x193   :  { %v610_v32 = vsel %vm8504_vm8, %v599_v31, %v316_v58  ;;  %v600_v4 = vsel %vm592_vm7, %v6805_v26, %v268_v61 }
 0x196   :  { %v519_v62 = vpop.permute.xlu1 %518  ;;  %v469_v63 = vpop.permute.xlu0 %468 }
 0x197   :  { %v652_v11 = vsel %vm8501_vm12, %v641_v10, %v519_v62  ;;  %v642_v20 = vsel %vm8502_vm11, %v631_v19, %v469_v63 }
 0x19a   :  { %v366_v6 = vpop.permute.xlu1 %365  ;;  %v318_v7 = vpop.permute.xlu0 %317 }
 0x19b   :  { %v621_v35 = vsel %vm8503_vm9, %v610_v32, %v366_v6  ;;  %v611_v43 = vsel %vm8504_vm8, %v600_v4, %v318_v7 }
 0x19e   :  { %v571_v0 = vpop.permute.xlu1 %570  ;;  %v521_v12 = vpop.permute.xlu0 %520 }
 0x19f   :  { %v663_v13 = vsel %vm8500_vm13, %v652_v11, %v571_v0  ;;  %v653_v21 = vsel %vm8501_vm12, %v642_v20, %v521_v12  ;;  %v8508_v12 = vmov 0.0  }
 0x1a0   :  { %5211 = vmatprep.mubr.msk.f32.mxu0 %vm8506_vm14, %v663_v13  ;;  %5240 = vmatprep.mubr.msk.f32.mxu1 %vm6361_vm15, %v8508_v12  ;;  %v938_v13 = vld [vmem:[%s8566_s21] sm:$0xff]  ;;  %s6365_s21 = smov 32  }
 0x1a1   :  { %v7026_v14 = vpack.c.bf16 %v939_v27, %v938_v13 }
 0x1a2   :  { %v419_v15 = vpop.permute.xlu1 %418  ;;  %v368_v17 = vpop.permute.xlu0 %367 }
 0x1a3   :  { %v632_v37 = vsel %vm625_vm10, %v621_v35, %v419_v15  ;;  %v622_v45 = vsel %vm8503_vm9, %v611_v43, %v368_v17  ;;  %8567 = vst [vmem:[#allocation24_spill] sm:$0xff] %v7026_v14  ;;  %5598 = vmatpush3.bf16.msra.mxu0 %v7026_v14  ;;  %v8569_v35 = vmov 0  ;;  %v4909_v43 = vld [vmem:[%s8575_s23] ss:$0 sm:$0xff] }
 0x1a4   :  { %5631 = vmatprep.subr.bf16.mxu0 %v8510_v54 }
 0x1a6   :  { %v270_v22 = vpop.permute.xlu1 %269  ;;  %v573_v23 = vpop.permute.xlu0 %572 }
 0x1a7   :  { %v664_v24 = vsel %vm8500_vm13, %v653_v21, %v573_v23  ;;  %v601_v55 = vsel %vm592_vm7, %v6822_v36, %v270_v22 }
 0x1a8   :  { %5212 = vmatmul.mubr.msk.f32.gmra.mrb[4].mxu0 %vm8506_vm14, %v664_v24 }
 0x1aa   :  { %v471_v1 = vpop.permute.xlu1 %470  ;;  %v421_v50 = vpop.permute.xlu0 %420 }
 0x1ab   :  { %v643_v38 = vsel %vm8502_vm11, %v632_v37, %v471_v1  ;;  %v633_v46 = vsel %vm625_vm10, %v622_v45, %v421_v50 }
 0x1ae   :  { %v320_v25 = vpop.permute.xlu1 %319  ;;  %v272_v28 = vpop.permute.xlu0 %271 }
 0x1af   :  { %v602_v57 = vsel %vm592_vm7, %v6857_v59, %v272_v28  ;;  %v612_v16 = vsel %vm8504_vm8, %v601_v55, %v320_v25  ;;  %v819_v28 = vlaneseq }
 0x1b2   :  { %v523_v29 = vpop.permute.xlu1 %522  ;;  %v473_v30 = vpop.permute.xlu0 %472 }
 0x1b3   :  { %v654_v39 = vsel %vm8501_vm12, %v643_v38, %v523_v29  ;;  %v644_v47 = vsel %vm8502_vm11, %v633_v46, %v473_v30  ;;  %v7034_v29 = vshrl.u32 %v819_v28, 7  ;;  %v824_v30 = vand.u32 127, %v819_v28  ;;  %v1166_v28 = vld [vmem:[%s8577_s30 + $0x30] sm:$0xff] }
 0x1b5   :  { %8568 = vst [vmem:[#allocation25_spill] sm:$0xff] %v7034_v29  ;;  %v825_v31 = vmul.u32 4, %v7034_v29  ;;  %v821_v32 = vadd.s32 8, %v7034_v29  ;;  %v822_v38 = vadd.s32 16, %v7034_v29 }
 0x1b6   :  { %v370_v33 = vpop.permute.xlu1 %369  ;;  %v322_v34 = vpop.permute.xlu0 %321 }
 0x1b7   :  { %v613_v58 = vsel %vm8504_vm8, %v602_v57, %v322_v34  ;;  %v623_v63 = vsel %vm8503_vm9, %v612_v16, %v370_v33  ;;  %v826_v37 = vmul.u32 4, %v821_v32  ;;  %v4914_v57 = vld [vmem:[%s8576_s15] ss:$0 sm:$0xff] }
 0x1b8   :  { %v1168_v32 = vld [vmem:[%s8577_s30 + $0x40] sm:$0xff] }
 0x1b9   :  { %vm829_vm8 = vcmp.eq.s32.totalorder %v824_v30, %v826_v37 }
 0x1ba   :  { %v575_v40 = vpop.permute.xlu1 %574  ;;  %v525_v41 = vpop.permute.xlu0 %524 }
 0x1bb   :  { %v665_v42 = vsel %vm8500_vm13, %v654_v39, %v575_v40  ;;  %v655_v48 = vsel %vm8501_vm12, %v644_v47, %v525_v41  ;;  %v827_v41 = vmul.u32 4, %v822_v38 }
 0x1bc   :  { %5214 = vmatprep.mubr.msk.f32.mxu0 %vm8506_vm14, %v665_v42  ;;  %v7054_v42 = vsel %vm829_vm8, 1.0, %v8508_v12  ;;  %vm8545_vm8 = vcmask 392192  }
 0x1bd   :  { %8573 = vst [vmem:[#allocation28_spill] sm:$0xff] %v7054_v42 }
 0x1be   :  { %v423_v44 = vpop.permute.xlu1 %422  ;;  %v372_v2 = vpop.permute.xlu0 %371 }
 0x1bf   :  { %v624_v3 = vsel %vm8503_vm9, %v613_v58, %v372_v2  ;;  %v634_v5 = vsel %vm625_vm10, %v623_v63, %v423_v44  ;;  %vm8505_vm9 = vcmask 629760  }
 0x1c2   :  { %v425_v49 = vpop.permute.xlu1 %424  ;;  %v577_v51 = vpop.permute.xlu0 %576 }
 0x1c3   :  { %v666_v52 = vsel %vm8500_vm13, %v655_v48, %v577_v51  ;;  %v635_v6 = vsel %vm625_vm10, %v624_v3, %v425_v49 }
 0x1c4   :  { %5215 = vmatmul.mubr.msk.f32.gmra.mrb[6].mxu0 %vm8506_vm14, %v666_v52 }
 0x1c6   :  { %v477_v53 = vpop.permute.xlu1 %476  ;;  %v475_v26 = vpop.permute.xlu0 %474 }
 0x1c7   :  { %v646_v7 = vsel %vm8502_vm11, %v635_v6, %v477_v53  ;;  %v645_v36 = vsel %vm8502_vm11, %v634_v5, %v475_v26  ;;  %vm828_vm11 = vcmp.eq.s32.totalorder %v824_v30, %v825_v31 }
 0x1c8   :  { %v7047_v40 = vsel %vm828_vm11, 1.0, %v8508_v12  ;;  %vm8544_vm11 = vcmask 523264  }
 0x1c9   :  { %8572 = vst [vmem:[#allocation27_spill] sm:$0xff] %v7047_v40 }
 0x1ca   :  { %v529_v61 = vpop.permute.xlu1 %528  ;;  %v527_v62 = vpop.permute.xlu0 %526 }
 0x1cb   :  { %v657_v59 = vsel %vm8501_vm12, %v646_v7, %v529_v61  ;;  %v656_v8 = vsel %vm8501_vm12, %v645_v36, %v527_v62 }
 0x1ce   :  { %v581_v9 = vpop.permute.xlu1 %580  ;;  %v579_v10 = vpop.permute.xlu0 %578 }
 0x1cf   :  { %v668_v11 = vsel %vm8500_vm13, %v657_v59, %v581_v9  ;;  %v667_v0 = vsel %vm8500_vm13, %v656_v8, %v579_v10  ;;  %vm6363_vm13 = vmmov 1  }
 0x1d0   :  { %5217 = vmatprep.mubr.msk.f32.mxu0 %vm8506_vm14, %v667_v0  ;;  %vm7039_vm12 = vmpackc.low %vm333_vm2, %vm6363_vm13  ;;  %vm830_vm13 = vcmp.eq.s32.totalorder %v824_v30, %v827_v41  ;;  %v1167_v30 = vld [vmem:[%s8577_s30 + $0x38] sm:$0xff] }
 0x1d1   :  { %5218 = vmatmul.mubr.msk.f32.gmra.mrb[8].mxu0 %vm8506_vm14, %v668_v11  ;;  %v8570_v35 = vsel %vm7039_vm12, 4294967295, %v8569_v35  ;;  %v7061_v4 = vsel %vm830_vm13, 1.0, %v8508_v12  ;;  %v7121_v31 = vpack.c.bf16 %v1167_v30, %v1166_v28  ;;  %v1171_v41 = vld [vmem:[%s8577_s30 + $0x58] sm:$0xff]  ;;  %vm8543_vm13 = vcmask 654336  }
 0x1d2   :  { %5253 = vmatprep.mubr.msk.f32.mxu0 %vm6361_vm15, %v8508_v12  ;;  %8571 = vst [vmem:[#allocation26_spill] sm:$0xff] %v8570_v35  ;;  %8574 = vst [vmem:[#allocation29_spill] sm:$0xff] %v7061_v4 }
 0x1d3   :  { %8581 = vst [vmem:[#allocation33_spill] sm:$0xff] %v7121_v31 }
 0x243   :  { %v5207_v15 = vpop.f32.mrb[0].mxu0 }
 0x244   :  { %v770_v17 = vpop.f32.mrb[1].mxu0 }
 0x245   :  { %v5581_v18 = vpack.c.bf16 %v5207_v15, %v770_v17 }
 0x247   :  { %5582 = vmatpush3.bf16.msra.mxu1 %v5581_v18 }
 0x248   :  { %5583 = vmatprep.subr.bf16.mxu1 %v8510_v54 }
 0x25f   :  { %v5210_v19 = vpop.f32.mrb[2].mxu0 }
 0x260   :  { %v780_v20 = vpop.f32.mrb[3].mxu0 }
 0x261   :  { %v5584_v21 = vpack.c.bf16 %v5210_v19, %v780_v20  ;;  %v1160_v19 = vld [vmem:[%s8577_s30] sm:$0xff]  ;;  %v1161_v20 = vld [vmem:[%s8577_s30 + $0x8] sm:$0xff] }
 0x263   :  { %5585 = vmatpush3.bf16.msra.mxu1 %v5584_v21  ;;  %v1162_v21 = vld [vmem:[%s8577_s30 + $0x10] sm:$0xff] }
 0x264   :  { %5586 = vmatprep.subr.bf16.mxu1 %v8510_v54 }
 0x27b   :  { %v5213_v22 = vpop.f32.mrb[4].mxu0 }
 0x27c   :  { %v790_v23 = vpop.f32.mrb[5].mxu0 }
 0x27d   :  { %v5587_v24 = vpack.c.bf16 %v5213_v22, %v790_v23  ;;  %v7095_v22 = vpack.c.bf16 %v1161_v20, %v1160_v19  ;;  %v1163_v23 = vld [vmem:[%s8577_s30 + $0x18] sm:$0xff] }
 0x27f   :  { %5588 = vmatpush3.bf16.msra.mxu1 %v5587_v24  ;;  %8578 = vst [vmem:[#allocation30_spill] sm:$0xff] %v7095_v22  ;;  %v7100_v24 = vpack.c.bf16 %v1163_v23, %v1162_v21  ;;  %v7202_v23 = vld [vmem:[%s8564_s10 + $0x58] sm:$0xff] }
 0x280   :  { %5589 = vmatprep.subr.bf16.mxu1 %v8510_v54 }
 0x281   :  { %8579 = vst [vmem:[#allocation31_spill] sm:$0xff] %v7100_v24 }
 0x297   :  { %v5216_v1 = vpop.f32.mrb[6].mxu0 }
 0x298   :  { %v800_v50 = vpop.f32.mrb[7].mxu0 }
 0x299   :  { %v5590_v25 = vpack.c.bf16 %v5216_v1, %v800_v50  ;;  %v1164_v1 = vld [vmem:[%s8577_s30 + $0x20] sm:$0xff]  ;;  %v1165_v50 = vld [vmem:[%s8577_s30 + $0x28] sm:$0xff] }
 0x29b   :  { %5591 = vmatpush3.bf16.msra.mxu1 %v5590_v25  ;;  %v7111_v25 = vpack.c.bf16 %v1165_v50, %v1164_v1  ;;  %v7207_v1 = vld [vmem:[%s8564_s10 + $0x60] sm:$0xff] }
 0x29c   :  { %5592 = vmatprep.subr.bf16.mxu1 %v8510_v54 }
 0x29d   :  { %8580 = vst [vmem:[#allocation32_spill] sm:$0xff] %v7111_v25 }
 0x2a4   :  { %v5219_v33 = vpop.f32.mrb[8].mxu0 }
 0x2a5   :  { %v810_v34 = vpop.f32.mrb[9].mxu0 }
 0x2a6   :  { %v5593_v39 = vpack.c.bf16 %v5219_v33, %v810_v34  ;;  %v1169_v33 = vld [vmem:[%s8577_s30 + $0x48] sm:$0xff] }
 0x2a7   :  { %v7132_v37 = vpack.c.bf16 %v1169_v33, %v1168_v32  ;;  %v1448_v32 = vrot.slane %v7202_v23, 1  ;;  %v1449_v33 = vrot.slane %v7207_v1, 1 }
 0x2a8   :  { %5595 = vmatpush3.bf16.msk.msra.mxu1 %vm7039_vm12, %v5593_v39  ;;  %v1170_v39 = vld [vmem:[%s8577_s30 + $0x50] sm:$0xff] }
 0x2a9   :  { %5600 = vmatprep.subr.bf16.mxu1 %v7095_v22  ;;  %8582 = vst [vmem:[#allocation34_spill] sm:$0xff] %v7132_v37 }
 0x2ab   :  { %5241 = vmatmul.mubr.msk.f32.vlgmr.msra.gmra.mrb[0].mxu1 %vm8505_vm9, %v7047_v40 }
 0x2ac   :  { %5243 = vmatprep.mubr.msk.f32.mxu1 %vm6361_vm15, %v8508_v12  ;;  %5602 = vmatpush3.bf16.msra.mxu1 %v7095_v22 }
 0x2ad   :  { %5604 = vmatprep.subr.bf16.mxu1 %v7100_v24 }
 0x2af   :  { %5244 = vmatmul.mubr.msk.f32.gmra.mrb[2].mxu1 %vm8505_vm9, %v7054_v42 }
 0x2b0   :  { %5246 = vmatprep.mubr.msk.f32.mxu1 %vm6361_vm15, %v8508_v12  ;;  %5606 = vmatpush3.bf16.msra.mxu1 %v7100_v24 }
 0x2b1   :  { %5608 = vmatprep.subr.bf16.mxu1 %v7111_v25 }
 0x2b3   :  { %5247 = vmatmul.mubr.msk.f32.gmra.mrb[4].mxu1 %vm8505_vm9, %v7061_v4  ;;  %vm8542_vm9 = vcmask 785408  }
 0x2b4   :  { %5610 = vmatpush3.bf16.msra.mxu1 %v7111_v25 }
 0x2b5   :  { %5612 = vmatprep.subr.bf16.mxu1 %v7121_v31 }
 0x2b8   :  { %5614 = vmatpush3.bf16.msra.mxu1 %v7121_v31 }
 0x2b9   :  { %5616 = vmatprep.subr.bf16.mxu1 %v7132_v37 }
 0x2bc   :  { %5618 = vmatpush3.bf16.msra.mxu1 %v7132_v37 }
 0x37e   :  { %v921_v44 = vpop.f32.mrb[0].mxu1 }
 0x37f   :  { %v922_v2 = vadd.f32 %v4909_v43, %v921_v44  ;;  %v5242_v45 = vpop.f32.mrb[1].mxu1  ;;  %v7144_v44 = vpack.c.bf16 %v1171_v41, %v1170_v39 }
 0x381   :  { %v935_v46 = vmax.f32 %v922_v2, 0.0  ;;  %8583 = vst [vmem:[#allocation35_spill] sm:$0xff] %v7144_v44  ;;  %5620 = vmatprep.subr.bf16.mxu1 %v7144_v44 }
 0x382   :  { %v926_v47 = vpop.f32.mrb[2].mxu1  ;;  %5622 = vmatpush3.bf16.msra.mxu1 %v7144_v44 }
 0x383   :  { %v927_v48 = vadd.f32 %v4909_v43, %v926_v47  ;;  %v5245_v49 = vpop.f32.mrb[3].mxu1  ;;  %5254 = vmatmul.mubr.msk.f32.vlgmr.msra.gmra.mrb[10].mxu0 %vm625_vm10, %v935_v46 }
 0x384   :  { %5256 = vmatprep.mubr.msk.f32.mxu0 %vm6361_vm15, %v8508_v12 }
 0x385   :  { %v936_v51 = vmax.f32 %v927_v48, 0.0 }
 0x386   :  { %v931_v52 = vpop.f32.mrb[4].mxu1 }
 0x387   :  { %v932_v53 = vadd.f32 %v4909_v43, %v931_v52  ;;  %5257 = vmatmul.mubr.msk.f32.gmra.mrb[12].mxu0 %vm625_vm10, %v936_v51  ;;  %v5248_v26 = vpop.f32.mrb[5].mxu1  ;;  %v1172_v51 = vld [vmem:[%s8577_s30 + $0x60] sm:$0xff]  ;;  %v1173_v52 = vld [vmem:[%s8577_s30 + $0x68] sm:$0xff] }
 0x388   :  { %5259 = vmatprep.mubr.msk.f32.mxu0 %vm6361_vm15, %v8508_v12 }
 0x389   :  { %v937_v55 = vmax.f32 %v932_v53, 0.0 }
 0x38b   :  { %5260 = vmatmul.mubr.msk.f32.gmra.mrb[14].mxu0 %vm625_vm10, %v937_v55  ;;  %v7162_v55 = vpack.c.bf16 %v1173_v52, %v1172_v51  ;;  %v1498_v51 = vrot.slane %v7207_v1, 2 }
 0x38c   :  { %5301 = vmatprep.mubr.msk.f32.mxu0 %vm6361_vm15, %v8508_v12 }
 0x38d   :  { %8584 = vst [vmem:[#allocation36_spill] sm:$0xff] %v7162_v55  ;;  %5624 = vmatprep.subr.bf16.mxu1 %v7162_v55 }
 0x38e   :  { %5626 = vmatpush3.bf16.msra.mxu1 %v7162_v55 }
 0x456   :  { %v1020_v16 = vpop.f32.mrb[10].mxu0 }
 0x457   :  { %v1021_v58 = vadd.f32 %v4914_v57, %v1020_v16  ;;  %v5255_v61 = vpop.f32.mrb[11].mxu0 }
 0x459   :  { %v4918_v62 = vmul.f32 -1.442695, %v1021_v58 }
 0x45a   :  { %v1025_v63 = vpop.f32.mrb[12].mxu0 }
 0x45b   :  { %5989 = vpow2.f32 %v4918_v62  ;;  %v1026_v3 = vadd.f32 %v4914_v57, %v1025_v63  ;;  %v5258_v5 = vpop.f32.mrb[13].mxu0 }
 0x45d   :  { %v4919_v6 = vmul.f32 -1.442695, %v1026_v3 }
 0x45e   :  { %v1030_v7 = vpop.f32.mrb[14].mxu0 }
 0x45f   :  { %5991 = vpow2.f32 %v4919_v6  ;;  %v7080_v36 = vadd.f32 %v4914_v57, %v1030_v7  ;;  %v5261_v59 = vpop.f32.mrb[15].mxu0 }
 0x460   :  { %v1175_v59 = vld [vmem:[%s8577_s30 + $0x78] sm:$0xff] }
 0x461   :  { %v4920_v8 = vmul.f32 -1.442695, %v7080_v36 }
 0x463   :  { %5993 = vpow2.f32 %v4920_v8 }
 0x465   :  { %v5990_v9 = vpop.eup %5989 }
 0x466   :  { %v1043_v10 = vadd.f32 1.0, %v5990_v9 }
 0x468   :  { %5995 = vrcp.f32 %v1043_v10 }
 0x469   :  { %v5992_v11 = vpop.eup %5991 }
 0x46a   :  { %v1044_v0 = vadd.f32 1.0, %v5992_v11 }
 0x46c   :  { %5997 = vrcp.f32 %v1044_v0 }
 0x46d   :  { %v5994_v13 = vpop.eup %5993 }
 0x46e   :  { %v1045_v27 = vadd.f32 1.0, %v5994_v13 }
 0x470   :  { %5999 = vrcp.f32 %v1045_v27 }
 0x472   :  { %v5996_v15 = vpop.eup %5995 }
 0x473   :  { %1055 = vrot.lane.b32.xlu0 %v5996_v15, %s6364_s27 }
 0x476   :  { %v5998_v17 = vpop.eup %5997 }
 0x477   :  { %1057 = vrot.lane.b32.xlu1 %v5998_v17, %s6364_s27 }
 0x47a   :  { %v6000_v18 = vpop.eup %5999 }
 0x47b   :  { %1059 = vrot.lane.b32.xlu0 %v6000_v18, %s6364_s27 }
 0x4e5   :  { %v1056_v34 = vpop.permute.xlu0 %1055 }
 0x4e6   :  { %v7134_v38 = vmul.f32 %v1056_v34, %v1021_v58 }
 0x4e8   :  { %v1069_v45 = vrot.slane %v7134_v38, 1  ;;  %v1078_v47 = vrot.slane %v7134_v38, 2  ;;  %v1087_v26 = vrot.slane %v7134_v38, 3  ;;  %v1097_v5 = vrot.slane %v7134_v38, 4 }
 0x4e9   :  { %v1058_v43 = vpop.permute.xlu1 %1057  ;;  %v1108_v17 = vrot.slane %v7134_v38, 5  ;;  %v1119_v19 = vrot.slane %v7134_v38, 6  ;;  %v1130_v41 = vrot.slane %v7134_v38, 7 }
 0x4ea   :  { %v7146_v2 = vmul.f32 %v1058_v43, %v1026_v3  ;;  %v7221_v43 = vld [vmem:[%s8564_s10 + $0x68] sm:$0xff] }
 0x4ec   :  { %v1070_v46 = vrot.slane %v7146_v2, 1  ;;  %v1079_v48 = vrot.slane %v7146_v2, 2  ;;  %v1088_v49 = vrot.slane %v7146_v2, 3  ;;  %v7168_v61 = vrot.slane %v7146_v2, 4 }
 0x4ed   :  { %v1060_v53 = vpop.permute.xlu0 %1059  ;;  %v1109_v0 = vrot.slane %v7146_v2, 5  ;;  %v1120_v13 = vrot.slane %v7146_v2, 6  ;;  %v1131_v50 = vrot.slane %v7146_v2, 7 }
 0x4ee   :  { %v1066_v57 = vmul.f32 %v1060_v53, %v7080_v36  ;;  %v1071_v16 = vsel %vm233_vm1, %v1069_v45, %v1070_v46  ;;  %v1080_v58 = vsel %vm283_vm0, %v1078_v47, %v1079_v48  ;;  %8585 = vst [vmem:[#allocation37_spill] sm:$0xff] %v7168_v61  ;;  %v1089_v3 = vsel %vm333_vm2, %v1087_v26, %v1088_v49  ;;  %v1174_v36 = vld [vmem:[%s8577_s30 + $0x70] sm:$0xff] }
 0x4ef   :  { %v5919_v62 = vpack.i.bf16 %v1070_v46, %v1071_v16  ;;  %v5924_v63 = vpack.i.bf16 %v1079_v48, %v1080_v58  ;;  %v7182_v9 = vpack.c.bf16 %v1175_v59, %v1174_v36  ;;  %v7186_v10 = vsel %vm8549_vm3, %v1097_v5, %v7168_v61 }
 0x4f0   :  { %v1100_v6 = vrot.slane %v1066_v57, 4  ;;  %v1111_v7 = vrot.slane %v1066_v57, 5  ;;  %v1122_v8 = vrot.slane %v1066_v57, 6  ;;  %8587 = vst [vmem:[#allocation39_spill] sm:$0xff] %v7186_v10  ;;  %v5929_v27 = vpack.i.bf16 %v1088_v49, %v1089_v3 }
 0x4f1   :  { %5920 = vrot.lane.b32.xlu1 %v5919_v62, %s6343_s9  ;;  %5925 = vrot.lane.b32.xlu0 %v5924_v63, %s6365_s21  ;;  %8586 = vst [vmem:[#allocation38_spill] sm:$0xff] %v7182_v9  ;;  %v1133_v21 = vrot.slane %v1066_v57, 7  ;;  %v1110_v28 = vsel %vm8548_vm4, %v1108_v17, %v1109_v0  ;;  %v1121_v30 = vsel %vm8547_vm5, %v1119_v19, %v1120_v13  ;;  %v1451_v48 = vrot.slane %v7221_v43, 1 }
 0x4f2   :  { %v1101_v11 = vsel %vm8549_vm3, %v7168_v61, %v1100_v6  ;;  %5628 = vmatprep.subr.bf16.mxu1 %v7182_v9  ;;  %v1112_v18 = vsel %vm8548_vm4, %v1109_v0, %v1111_v7  ;;  %v1123_v20 = vsel %vm8547_vm5, %v1120_v13, %v1122_v8  ;;  %v1132_v46 = vsel %vm8546_vm6, %v1130_v41, %v1131_v50  ;;  %v7248_v7 = vld [vmem:[%s8564_s10 + $0x70] sm:$0xff]  ;;  %v7259_v0 = vld [vmem:[%s8564_s10 + $0x78] sm:$0xff] }
 0x4f3   :  { %v5934_v15 = vpack.i.bf16 %v1101_v11, %v7186_v10  ;;  %5630 = vmatpush3.bf16.msra.mxu1 %v7182_v9  ;;  %v5939_v34 = vpack.i.bf16 %v1112_v18, %v1110_v28  ;;  %v5944_v39 = vpack.i.bf16 %v1123_v20, %v1121_v30  ;;  %v1134_v45 = vsel %vm8546_vm6, %v1131_v50, %v1133_v21 }
 0x4f4   :  { %5649 = vmatprep.subr.bf16.mxu1 %v8510_v54  ;;  %v1450_v47 = vsel %vm233_vm1, %v1448_v32, %v1449_v33  ;;  %v1497_v49 = vrot.slane %v7202_v23, 2  ;;  %v5949_v52 = vpack.i.bf16 %v1134_v45, %v1132_v46  ;;  %v1500_v53 = vrot.slane %v7221_v43, 2 }
 0x4f5   :  { %5930 = vrot.lane.b32.xlu1 %v5929_v27, %s6366_s26  ;;  %5935 = vrot.lane.b32.xlu0 %v5934_v15, %s6367_s28  ;;  %v1452_v26 = vsel %vm233_vm1, %v1449_v33, %v1451_v48  ;;  %v1546_v16 = vrot.slane %v7202_v23, 3  ;;  %v1547_v58 = vrot.slane %v7207_v1, 3  ;;  %v1549_v62 = vrot.slane %v7221_v43, 3 }
 0x4f6   :  { %v1499_v57 = vsel %vm283_vm0, %v1497_v49, %v1498_v51  ;;  %v1501_v63 = vsel %vm283_vm0, %v1498_v51, %v1500_v53  ;;  %v1596_v5 = vrot.slane %v7202_v23, 4  ;;  %v1597_v6 = vrot.slane %v7207_v1, 4 }
 0x4f7   :  { %v1548_v3 = vsel %vm333_vm2, %v1546_v16, %v1547_v58  ;;  %v1550_v36 = vsel %vm333_vm2, %v1547_v58, %v1549_v62  ;;  %v1453_v8 = vrot.slane %v7248_v7, 1  ;;  %v1599_v11 = vrot.slane %v7221_v43, 4  ;;  %v7307_v58 = vld [vmem:[%s8564_s10 + $0x80] sm:$0xff] }
 0x4f8   :  { %v1598_v59 = vsel %vm8549_vm3, %v1596_v5, %v1597_v6  ;;  %v1647_v13 = vrot.slane %v7202_v23, 5  ;;  %v1648_v17 = vrot.slane %v7207_v1, 5  ;;  %v1455_v18 = vrot.slane %v7259_v0, 1 }
 0x4f9   :  { %5940 = vrot.lane.b32.xlu1 %v5939_v34, %s6368_s4  ;;  %5945 = vrot.lane.b32.xlu0 %v5944_v39, %s6369_s13  ;;  %v1454_v27 = vsel %vm233_vm1, %v1451_v48, %v1453_v8  ;;  %v1600_v15 = vsel %vm8549_vm3, %v1597_v6, %v1599_v11  ;;  %v1502_v21 = vrot.slane %v7248_v7, 2  ;;  %v1650_v50 = vrot.slane %v7221_v43, 5  ;;  %v7320_v6 = vld [vmem:[%s8564_s10 + $0x88] sm:$0xff] }
 0x4fa   :  { %v1649_v19 = vsel %vm8548_vm4, %v1647_v13, %v1648_v17  ;;  %v1456_v20 = vsel %vm233_vm1, %v1453_v8, %v1455_v18  ;;  %v1698_v28 = vrot.slane %v7202_v23, 6  ;;  %v1699_v33 = vrot.slane %v7207_v1, 6 }
 0x4fb   :  { %v1503_v30 = vsel %vm283_vm0, %v1500_v53, %v1502_v21  ;;  %v1651_v32 = vsel %vm8548_vm4, %v1648_v17, %v1650_v50  ;;  %v1504_v34 = vrot.slane %v7259_v0, 2  ;;  %v1551_v45 = vrot.slane %v7248_v7, 3 }
 0x4fc   :  { %v1700_v39 = vsel %vm8547_vm5, %v1698_v28, %v1699_v33  ;;  %v1701_v46 = vrot.slane %v7221_v43, 6  ;;  %v1750_v51 = vrot.slane %v7207_v1, 7  ;;  %v1752_v16 = vrot.slane %v7221_v43, 7 }
 0x4fd   :  { %5950 = vrot.lane.b32.xlu1 %v5949_v52, %s6364_s27  ;;  %1467 = vrot.lane.b32.xlu0 %v1450_v47, %s6355_s0  ;;  %v1505_v41 = vsel %vm283_vm0, %v1502_v21, %v1504_v34  ;;  %v1749_v47 = vrot.slane %v7202_v23, 7  ;;  %v1552_v48 = vsel %vm333_vm2, %v1549_v62, %v1551_v45  ;;  %v1553_v52 = vrot.slane %v7259_v0, 3 }
 0x4fe   :  { %v1702_v49 = vsel %vm8547_vm5, %v1699_v33, %v1701_v46  ;;  %v1603_v5 = vrot.slane %v7259_v0, 4  ;;  %v1652_v8 = vrot.slane %v7248_v7, 5 }
 0x4ff   :  { %v1751_v53 = vsel %vm8546_vm6, %v1749_v47, %v1750_v51 }
 0x500   :  { %v1653_v13 = vsel %vm8548_vm4, %v1650_v50, %v1652_v8 }
 0x501   :  { %1469 = vrot.lane.b32.xlu1 %v1452_v26, %s6355_s0  ;;  %1516 = vrot.lane.b32.xlu0 %v1499_v57, %s6349_s3  ;;  %v1554_v26 = vsel %vm333_vm2, %v1551_v45, %v1553_v52  ;;  %v1601_v57 = vrot.slane %v7248_v7, 4 }
 0x503   :  { %v1602_v62 = vsel %vm8549_vm3, %v1599_v11, %v1601_v57  ;;  %v1459_v11 = vrot.slane %v7320_v6, 1 }
 0x505   :  { %1518 = vrot.lane.b32.xlu1 %v1501_v63, %s6349_s3  ;;  %1565 = vrot.lane.b32.xlu0 %v1548_v3, %s6356_s5  ;;  %v1753_v63 = vsel %vm8546_vm6, %v1750_v51, %v1752_v16  ;;  %v1457_v3 = vrot.slane %v7307_v58, 1 }
 0x509   :  { %1567 = vrot.lane.b32.xlu1 %v1550_v36, %s6356_s5  ;;  %1617 = vrot.lane.b32.xlu0 %v1598_v59, %s6343_s9  ;;  %v1458_v36 = vsel %vm233_vm1, %v1455_v18, %v1457_v3  ;;  %v1604_v59 = vsel %vm8549_vm3, %v1601_v57, %v1603_v5 }
 0x50d   :  { %1471 = vrot.lane.b32.xlu1 %v1454_v27, %s6355_s0  ;;  %1619 = vrot.lane.b32.xlu0 %v1600_v15, %s6343_s9  ;;  %v1460_v27 = vsel %vm233_vm1, %v1457_v3, %v1459_v11  ;;  %v1506_v15 = vrot.slane %v7307_v58, 2 }
 0x50f   :  { %v1507_v17 = vsel %vm283_vm0, %v1504_v34, %v1506_v15 }
 0x511   :  { %1668 = vrot.lane.b32.xlu1 %v1649_v19, %s6357_s29  ;;  %1473 = vrot.lane.b32.xlu0 %v1456_v20, %s6355_s0 }
 0x515   :  { %1520 = vrot.lane.b32.xlu1 %v1503_v30, %s6349_s3  ;;  %1670 = vrot.lane.b32.xlu0 %v1651_v32, %s6357_s29 }
 0x519   :  { %1719 = vrot.lane.b32.xlu1 %v1700_v39, %s6358_s19  ;;  %1522 = vrot.lane.b32.xlu0 %v1505_v41, %s6349_s3 }
 0x51d   :  { %1569 = vrot.lane.b32.xlu1 %v1552_v48, %s6356_s5  ;;  %1721 = vrot.lane.b32.xlu0 %v1702_v49, %s6358_s19 }
 0x521   :  { %1770 = vrot.lane.b32.xlu1 %v1751_v53, %s6359_s2  ;;  %1571 = vrot.lane.b32.xlu0 %v1554_v26, %s6356_s5 }
 0x525   :  { %1621 = vrot.lane.b32.xlu1 %v1602_v62, %s6343_s9  ;;  %1772 = vrot.lane.b32.xlu0 %v1753_v63, %s6359_s2 }
 0x529   :  { %1475 = vrot.lane.b32.xlu1 %v1458_v36, %s6355_s0  ;;  %1623 = vrot.lane.b32.xlu0 %v1604_v59, %s6343_s9 }
 0x52d   :  { %1672 = vrot.lane.b32.xlu1 %v1653_v13, %s6357_s29  ;;  %1477 = vrot.lane.b32.xlu0 %v1460_v27, %s6355_s0 }
 0x531   :  { %1524 = vrot.lane.b32.xlu1 %v1507_v17, %s6349_s3 }
 0x563   :  { %v5921_v18 = vpop.permute.xlu1 %5920  ;;  %v5926_v19 = vpop.permute.xlu0 %5925 }
 0x564   :  { %v5923_v20 = vunpack.i.h.bf16 %v5921_v18  ;;  %v5922_v21 = vunpack.i.l.bf16 %v5921_v18  ;;  %v5928_v28 = vunpack.i.h.bf16 %v5926_v19  ;;  %v5927_v50 = vunpack.i.l.bf16 %v5926_v19 }
 0x566   :  { %v1142_v30 = vsel %vm625_vm10, %v7146_v2, %v5923_v20  ;;  %v1141_v32 = vsel %vm625_vm10, %v7134_v38, %v5922_v21 }
 0x567   :  { %v5931_v33 = vpop.permute.xlu1 %5930  ;;  %v5936_v39 = vpop.permute.xlu0 %5935  ;;  %v1144_v34 = vsel %vm8506_vm14, %v1142_v30, %v5928_v28  ;;  %v1143_v47 = vsel %vm8506_vm14, %v1141_v32, %v5927_v50  ;;  %vm8507_vm14 = vcmask 916480   ;;  %v1654_v50 = vrot.slane %v7259_v0, 5 }
 0x568   :  { %v5933_v41 = vunpack.i.h.bf16 %v5931_v33  ;;  %v5932_v45 = vunpack.i.l.bf16 %v5931_v33  ;;  %v5938_v48 = vunpack.i.h.bf16 %v5936_v39  ;;  %v5937_v49 = vunpack.i.l.bf16 %v5936_v39 }
 0x569   :  { %v1703_v30 = vrot.slane %v7248_v7, 6  ;;  %v1655_v32 = vsel %vm8548_vm4, %v1652_v8, %v1654_v50  ;;  %v1508_v39 = vrot.slane %v7320_v6, 2 }
 0x56a   :  { %v1146_v51 = vsel %vm8545_vm8, %v1143_v47, %v5932_v45  ;;  %v1147_v53 = vsel %vm8545_vm8, %v1144_v34, %v5933_v41  ;;  %1674 = vrot.lane.b32.xlu0 %v1655_v32, %s6357_s29  ;;  %v1555_v45 = vrot.slane %v7307_v58, 3  ;;  %v1705_v34 = vrot.slane %v7259_v0, 6 }
 0x56b   :  { %v5941_v2 = vpop.permute.xlu1 %5940  ;;  %v5946_v26 = vpop.permute.xlu0 %5945  ;;  %v1149_v62 = vsel %vm8544_vm11, %v1146_v51, %v5937_v49  ;;  %v1150_v63 = vsel %vm8544_vm11, %v1147_v53, %v5938_v48  ;;  %v1704_v33 = vsel %vm8547_vm5, %v1701_v46, %v1703_v30  ;;  %v1509_v41 = vsel %vm283_vm0, %v1506_v15, %v1508_v39  ;;  %v7386_v51 = vld [vmem:[%s8564_s10 + $0x90] sm:$0xff] }
 0x56c   :  { %v5943_v38 = vunpack.i.h.bf16 %v5941_v2  ;;  %v5942_v57 = vunpack.i.l.bf16 %v5941_v2  ;;  %v5948_v3 = vunpack.i.h.bf16 %v5946_v26  ;;  %v5947_v36 = vunpack.i.l.bf16 %v5946_v26  ;;  %1723 = vrot.lane.b32.xlu1 %v1704_v33, %s6358_s19 }
 0x56d   :  { %v1754_v47 = vrot.slane %v7248_v7, 7  ;;  %v1556_v46 = vsel %vm333_vm2, %v1553_v52, %v1555_v45  ;;  %v1706_v8 = vsel %vm8547_vm5, %v1703_v30, %v1705_v34  ;;  %v1557_v48 = vrot.slane %v7320_v6, 3 }
 0x56e   :  { %v1153_v59 = vsel %vm8543_vm13, %v1150_v63, %v5943_v38  ;;  %v1152_v13 = vsel %vm8543_vm13, %v1149_v62, %v5942_v57  ;;  %1526 = vrot.lane.b32.xlu0 %v1509_v41, %s6349_s3  ;;  %v1605_v49 = vrot.slane %v7307_v58, 4  ;;  %v1756_v53 = vrot.slane %v7259_v0, 7 }
 0x56f   :  { %v5951_v27 = vpop.permute.xlu1 %5950  ;;  %v1155_v19 = vsel %vm8542_vm9, %v1152_v13, %v5947_v36  ;;  %v1156_v20 = vsel %vm8542_vm9, %v1153_v59, %v5948_v3  ;;  %v1755_v15 = vsel %vm8546_vm6, %v1752_v16, %v1754_v47  ;;  %v1558_v52 = vsel %vm333_vm2, %v1555_v45, %v1557_v48 }
 0x570   :  { %v5953_v17 = vunpack.i.h.bf16 %v5951_v27  ;;  %v5952_v18 = vunpack.i.l.bf16 %v5951_v27  ;;  %1573 = vrot.lane.b32.xlu1 %v1556_v46, %s6356_s5  ;;  %v1606_v2 = vsel %vm8549_vm3, %v1603_v5, %v1605_v49  ;;  %v1461_v16 = vrot.slane %v7386_v51, 1  ;;  %v7407_v5 = vld [vmem:[%s8564_s10 + $0x98] sm:$0xff] }
 0x571   :  { %v1757_v26 = vsel %vm8546_vm6, %v1754_v47, %v1756_v53  ;;  %v1607_v38 = vrot.slane %v7320_v6, 4  ;;  %v1656_v62 = vrot.slane %v7307_v58, 5  ;;  %v1463_v3 = vrot.slane %v7407_v5, 1 }
 0x572   :  { %v1158_v21 = vsel %vm8507_vm14, %v1155_v19, %v5952_v18  ;;  %v1159_v28 = vsel %vm8507_vm14, %v1156_v20, %v5953_v17  ;;  %1725 = vrot.lane.b32.xlu0 %v1706_v8, %s6358_s19  ;;  %v1462_v57 = vsel %vm233_vm1, %v1459_v11, %v1461_v16  ;;  %v1510_v59 = vrot.slane %v7386_v51, 2 }
 0x573   :  { %5294 = vmatprep.mubr.f32.mxu1 %v1158_v21  ;;  %v1608_v63 = vsel %vm8549_vm3, %v1605_v49, %v1607_v38  ;;  %v1657_v36 = vsel %vm8548_vm4, %v1654_v50, %v1656_v62  ;;  %v1464_v11 = vsel %vm233_vm1, %v1461_v16, %v1463_v3  ;;  %v1658_v13 = vrot.slane %v7320_v6, 5 }
 0x574   :  { %5295 = vmatmul.mubr.f32.vlgmr.msra.gmra.mrb[6].mxu1 %v1159_v28  ;;  %1774 = vrot.lane.b32.xlu1 %v1755_v15, %s6359_s2  ;;  %v1511_v27 = vsel %vm283_vm0, %v1508_v39, %v1510_v59  ;;  %v1707_v17 = vrot.slane %v7307_v58, 6  ;;  %v1512_v19 = vrot.slane %v7407_v5, 2  ;;  %v1559_v21 = vrot.slane %v7386_v51, 3 }
 0x575   :  { %5358 = vmatprep.mubr.msk.f32.mxu1 %vm6361_vm15, %v8508_v12  ;;  %v1659_v18 = vsel %vm8548_vm4, %v1656_v62, %v1658_v13  ;;  %v1709_v50 = vrot.slane %v7320_v6, 6  ;;  %v1758_v32 = vrot.slane %v7307_v58, 7  ;;  %v1561_v39 = vrot.slane %v7407_v5, 3 }
 0x576   :  { %1575 = vrot.lane.b32.xlu0 %v1558_v52, %s6356_s5  ;;  %v1708_v20 = vsel %vm8547_vm5, %v1705_v34, %v1707_v17  ;;  %v1513_v28 = vsel %vm283_vm0, %v1510_v59, %v1512_v19  ;;  %v1560_v30 = vsel %vm333_vm2, %v1557_v48, %v1559_v21  ;;  %v1609_v45 = vrot.slane %v7386_v51, 4  ;;  %v7442_v34 = vld [vmem:[%s8564_s10 + $0xa0] sm:$0xff] }
 0x577   :  { %v1710_v33 = vsel %vm8547_vm5, %v1707_v17, %v1709_v50  ;;  %v1759_v41 = vsel %vm8546_vm6, %v1756_v53, %v1758_v32  ;;  %v1562_v47 = vsel %vm333_vm2, %v1559_v21, %v1561_v39  ;;  %v1760_v46 = vrot.slane %v7320_v6, 7 }
 0x578   :  { %1625 = vrot.lane.b32.xlu1 %v1606_v2, %s6343_s9  ;;  %v1610_v8 = vsel %vm8549_vm3, %v1607_v38, %v1609_v45  ;;  %v1465_v48 = vrot.slane %v7442_v34, 1  ;;  %v1611_v49 = vrot.slane %v7407_v5, 4  ;;  %v1660_v53 = vrot.slane %v7386_v51, 5 }
 0x579   :  { %v1761_v15 = vsel %vm8546_vm6, %v1758_v32, %v1760_v46  ;;  %v1662_v38 = vrot.slane %v7407_v5, 5  ;;  %v1711_v62 = vrot.slane %v7386_v51, 6  ;;  %v1713_v59 = vrot.slane %v7407_v5, 6 }
 0x57a   :  { %1776 = vrot.lane.b32.xlu0 %v1757_v26, %s6359_s2  ;;  %v1466_v52 = vsel %vm233_vm1, %v1463_v3, %v1465_v48  ;;  %v1612_v2 = vsel %vm8549_vm3, %v1609_v45, %v1611_v49  ;;  %v1661_v16 = vsel %vm8548_vm4, %v1658_v13, %v1660_v53  ;;  %v1514_v26 = vrot.slane %v7442_v34, 2 }
 0x57b   :  { %v1712_v3 = vsel %vm8547_vm5, %v1709_v50, %v1711_v62  ;;  %v1762_v13 = vrot.slane %v7386_v51, 7  ;;  %vm8541_vm14 = vcmask 105472   ;;  %vm8603_vm9 = vcmask 97280  }
 0x57c   :  { %1479 = vrot.lane.b32.xlu1 %v1462_v57, %s6355_s0  ;;  %v1515_v57 = vsel %vm283_vm0, %v1512_v19, %v1514_v26  ;;  %v4937_v19 = vld [vmem:[%s8564_s10 + $0xa8] sm:$0xf]  ;;  %vm8611_vm8 = vcmask 195584   ;;  %s8799_s10 = sld [smem:[#allocation65_spill]] }
 0x57d   :  { %v1763_v17 = vsel %vm8546_vm6, %v1760_v46, %v1762_v13 }
 0x57e   :  { %1627 = vrot.lane.b32.xlu0 %v1608_v63, %s6343_s9  ;;  %v1663_v63 = vsel %vm8548_vm4, %v1660_v53, %v1662_v38 }
 0x580   :  { %1676 = vrot.lane.b32.xlu1 %v1657_v36, %s6357_s29  ;;  %v1563_v36 = vrot.slane %v7442_v34, 3 }
 0x582   :  { %1481 = vrot.lane.b32.xlu0 %v1464_v11, %s6355_s0  ;;  %v1564_v11 = vsel %vm333_vm2, %v1561_v39, %v1563_v36 }
 0x584   :  { %1528 = vrot.lane.b32.xlu1 %v1511_v27, %s6349_s3  ;;  %v1714_v27 = vsel %vm8547_vm5, %v1711_v62, %v1713_v59  ;;  %v1468_v62 = vpop.permute.xlu0 %1467 }
 0x586   :  { %1678 = vrot.lane.b32.xlu0 %v1659_v18, %s6357_s29  ;;  %v1613_v18 = vrot.slane %v7442_v34, 4 }
 0x588   :  { %1727 = vrot.lane.b32.xlu1 %v1708_v20, %s6358_s19  ;;  %v1764_v20 = vrot.slane %v7407_v5, 7  ;;  %v1614_v21 = vsel %vm8549_vm3, %v1611_v49, %v1613_v18 }
 0x58a   :  { %1530 = vrot.lane.b32.xlu0 %v1513_v28, %s6349_s3  ;;  %v1615_v28 = vrot.slane %v4937_v19, 4  ;;  %v1765_v50 = vsel %vm8546_vm6, %v1762_v13, %v1764_v20 }
 0x58c   :  { %1577 = vrot.lane.b32.xlu1 %v1560_v30, %s6356_s5  ;;  %v1664_v30 = vrot.slane %v7442_v34, 5  ;;  %v1616_v32 = vsel %vm8549_vm3, %v1613_v18, %v1615_v28 }
 0x58e   :  { %1729 = vrot.lane.b32.xlu0 %v1710_v33, %s6358_s19  ;;  %v1666_v33 = vrot.slane %v4937_v19, 5  ;;  %v1665_v39 = vsel %vm8548_vm4, %v1662_v38, %v1664_v30 }
 0x590   :  { %1778 = vrot.lane.b32.xlu1 %v1759_v41, %s6359_s2  ;;  %v1715_v41 = vrot.slane %v7442_v34, 6  ;;  %v1667_v45 = vsel %vm8548_vm4, %v1664_v30, %v1666_v33 }
 0x592   :  { %1579 = vrot.lane.b32.xlu0 %v1562_v47, %s6356_s5  ;;  %v1717_v47 = vrot.slane %v4937_v19, 6  ;;  %v1716_v46 = vsel %vm8547_vm5, %v1713_v59, %v1715_v41 }
 0x594   :  { %1629 = vrot.lane.b32.xlu1 %v1610_v8, %s6343_s9  ;;  %v1766_v8 = vrot.slane %v7442_v34, 7 }
 0x596   :  { %1780 = vrot.lane.b32.xlu0 %v1761_v15, %s6359_s2  ;;  %v1768_v15 = vrot.slane %v4937_v19, 7  ;;  %v1767_v49 = vsel %vm8546_vm6, %v1764_v20, %v1766_v8 }
 0x598   :  { %1483 = vrot.lane.b32.xlu1 %v1466_v52, %s6355_s0  ;;  %v1769_v52 = vsel %vm8546_vm6, %v1766_v8, %v1768_v15  ;;  %vm8617_vm6 = vcmask 162816  }
 0x59a   :  { %1631 = vrot.lane.b32.xlu0 %v1612_v2, %s6343_s9 }
 0x59c   :  { %1680 = vrot.lane.b32.xlu1 %v1661_v16, %s6357_s29  ;;  %v1333_v16 = vld [vmem:[#allocation2] sm:$0xff] }
 0x59e   :  { %1485 = vrot.lane.b32.xlu0 %v1465_v48, %s6355_s0  ;;  %v1718_v48 = vsel %vm8547_vm5, %v1715_v41, %v1717_v47  ;;  %v1336_v41 = vld [vmem:[#allocation2 + $0x18] sm:$0xff] }
 0x5a0   :  { %1532 = vrot.lane.b32.xlu1 %v1515_v57, %s6349_s3 }
 0x5a2   :  { %1682 = vrot.lane.b32.xlu0 %v1663_v63, %s6357_s29  ;;  %v7520_v63 = vpop.permute.xlu1 %1469 }
 0x5a4   :  { %1731 = vrot.lane.b32.xlu1 %v1712_v3, %s6358_s19  ;;  %v1517_v3 = vpop.permute.xlu0 %1516 }
 0x5a6   :  { %1534 = vrot.lane.b32.xlu0 %v1514_v26, %s6349_s3  ;;  %v1334_v26 = vld [vmem:[#allocation2 + $0x8] sm:$0xff] }
 0x5a7   :  { %v7511_v57 = vpack.c.bf16 %v1334_v26, %v1333_v16 }
 0x5a8   :  { %1581 = vrot.lane.b32.xlu1 %v1564_v11, %s6356_s5  ;;  %v1566_v59 = vpop.permute.xlu0 %1565 }
 0x5a9   :  { %8588 = vst [vmem:[#allocation40_spill] sm:$0xff] %v7511_v57 }
 0x5aa   :  { %1733 = vrot.lane.b32.xlu0 %v1714_v27, %s6358_s19 }
 0x5ac   :  { %1782 = vrot.lane.b32.xlu1 %v1763_v17, %s6359_s2  ;;  %v7526_v13 = vpop.permute.xlu0 %1617 }
 0x5ae   :  { %1583 = vrot.lane.b32.xlu0 %v1563_v36, %s6356_s5  ;;  %v7522_v36 = vpop.permute.xlu1 %1518  ;;  %s8606_s5 = sld [smem:[#allocation60_spill]] }
 0x5b0   :  { %1633 = vrot.lane.b32.xlu1 %v1614_v21, %s6343_s9  ;;  %v7528_v17 = vpop.permute.xlu0 %1619 }
 0x5b2   :  { %1784 = vrot.lane.b32.xlu0 %v1765_v50, %s6359_s2  ;;  %v7524_v11 = vpop.permute.xlu1 %1567 }
 0x5b4   :  { %1635 = vrot.lane.b32.xlu1 %v1616_v32, %s6343_s9  ;;  %v7532_v19 = vpop.permute.xlu0 %1473 }
 0x5b6   :  { %1684 = vrot.lane.b32.xlu0 %v1665_v39, %s6357_s29  ;;  %v1472_v27 = vpop.permute.xlu1 %1471  ;;  %v1335_v39 = vld [vmem:[#allocation2 + $0x10] sm:$0xff] }
 0x5b7   :  { %v7550_v47 = vpack.c.bf16 %v1336_v41, %v1335_v39 }
 0x5b8   :  { %1686 = vrot.lane.b32.xlu1 %v1667_v45, %s6357_s29  ;;  %v7536_v21 = vpop.permute.xlu0 %1670 }
 0x5b9   :  { %8589 = vst [vmem:[#allocation41_spill] sm:$0xff] %v7550_v47 }
 0x5ba   :  { %1735 = vrot.lane.b32.xlu0 %v1716_v46, %s6358_s19  ;;  %v7530_v18 = vpop.permute.xlu1 %1668 }
 0x5bc   :  { %1737 = vrot.lane.b32.xlu1 %v1718_v48, %s6358_s19  ;;  %v7540_v50 = vpop.permute.xlu0 %1522 }
 0x5be   :  { %1786 = vrot.lane.b32.xlu0 %v1767_v49, %s6359_s2  ;;  %v7534_v20 = vpop.permute.xlu1 %1520 }
 0x5c0   :  { %1788 = vrot.lane.b32.xlu1 %v1769_v52, %s6359_s2  ;;  %v7544_v32 = vpop.permute.xlu0 %1721 }
 0x5c2   :  { %v7538_v28 = vpop.permute.xlu1 %1719 }
 0x5c4   :  { %v7548_v45 = vpop.permute.xlu0 %1571 }
 0x5c6   :  { %v7542_v30 = vpop.permute.xlu1 %1569 }
 0x5c8   :  { %v7556_v8 = vpop.permute.xlu0 %1772 }
 0x5ca   :  { %v7546_v33 = vpop.permute.xlu1 %1770 }
 0x5cc   :  { %v7558_v15 = vpop.permute.xlu0 %1623 }
 0x5ce   :  { %v7553_v46 = vpop.permute.xlu1 %1621 }
 0x5d0   :  { %v1478_v52 = vpop.permute.xlu0 %1477 }
 0x5d2   :  { %v1476_v48 = vpop.permute.xlu1 %1475 }
 0x5d6   :  { %v7560_v49 = vpop.permute.xlu1 %1672 }
 0x647   :  { %v5296_v53 = vpop.f32.mrb[6].mxu1 }
 0x648   :  { %v1242_v2 = vpop.f32.mrb[7].mxu1 }
 0x649   :  { %v5632_v38 = vpack.c.bf16 %v5296_v53, %v1242_v2  ;;  %v1525_v53 = vpop.permute.xlu1 %1524  ;;  %v7562_v2 = vpop.permute.xlu0 %1674 }
 0x64b   :  { %5634 = vmatpush3.bf16.msk.msra.mxu0 %vm7039_vm12, %v5632_v38 }
 0x64c   :  { %5635 = vmatprep.subr.bf16.mxu0 %v8510_v54 }
 0x64d   :  { %v7564_v16 = vpop.permute.xlu1 %1723  ;;  %v1527_v26 = vpop.permute.xlu0 %1526 }
 0x64e   :  { %5302 = vmatmul.mubr.msk.f32.vlgmr.msra.gmra.mrb[16].mxu0 %vm8541_vm14, %v7047_v40  ;;  %vm8602_vm14 = vcmask 64512  }
 0x64f   :  { %5637 = vmatpush3.bf16.msra.mxu0 %v7511_v57  ;;  %5312 = vmatprep.mubr.msk.f32.mxu0 %vm6361_vm15, %v8508_v12  ;;  %vm8604_vm13 = vmmov %vm8602_vm14 }
 0x650   :  { %5638 = vmatprep.subr.bf16.mxu0 %v8510_v54 }
 0x651   :  { %v1574_v38 = vpop.permute.xlu1 %1573  ;;  %v7566_v39 = vpop.permute.xlu0 %1725 }
 0x652   :  { %8590 = vst [vmem:[#allocation42_spill] sm:$0xff] %v7566_v39 }
 0x653   :  { %5640 = vmatpush3.bf16.msra.mxu0 %v7550_v47 }
 0x654   :  { %5642 = vmatprep.subr.bf16.mxu0 %v6750_v56 }
 0x655   :  { %v7568_v41 = vpop.permute.xlu1 %1774  ;;  %v7570_v12 = vpop.permute.xlu0 %1575 }
 0x656   :  { %8591 = vst [vmem:[#allocation43_spill] sm:$0xff] %v7568_v41 }
 0x659   :  { %v7572_v54 = vpop.permute.xlu1 %1625  ;;  %v7574_v61 = vpop.permute.xlu0 %1776 }
 0x65a   :  { %8592 = vst [vmem:[#allocation44_spill] sm:$0xff] %v7574_v61 }
 0x65d   :  { %v1480_v10 = vpop.permute.xlu1 %1479  ;;  %v7576_v29 = vpop.permute.xlu0 %1627 }
 0x661   :  { %v7578_v47 = vpop.permute.xlu1 %1676  ;;  %v1482_v57 = vpop.permute.xlu0 %1481 }
 0x665   :  { %v1529_v9 = vpop.permute.xlu1 %1528  ;;  %v7580_v55 = vpop.permute.xlu0 %1678 }
 0x666   :  { %8593 = vst [vmem:[#allocation45_spill] sm:$0xff] %v7580_v55 }
 0x669   :  { %v7582_v44 = vpop.permute.xlu1 %1727  ;;  %v7584_v37 = vpop.permute.xlu0 %1530 }
 0x66a   :  { %8594 = vst [vmem:[#allocation46_spill] sm:$0xff] %v7582_v44 }
 0x66d   :  { %v7586_v31 = vpop.permute.xlu1 %1577  ;;  %v7588_v4 = vpop.permute.xlu0 %1729 }
 0x66e   :  { %8595 = vst [vmem:[#allocation47_spill] sm:$0xff] %v7588_v4 }
 0x671   :  { %v7590_v25 = vpop.permute.xlu1 %1778  ;;  %v7592_v42 = vpop.permute.xlu0 %1579 }
 0x672   :  { %8596 = vst [vmem:[#allocation48_spill] sm:$0xff] %v7590_v25  ;;  %v1800_v25 = vsel %vm592_vm7, %v7202_v23, %v1468_v62 }
 0x673   :  { %v1810_v39 = vsel %vm8602_vm14, %v1800_v25, %v1517_v3  ;;  %v1803_v3 = vsel %vm592_vm7, %v7248_v7, %v7532_v19  ;;  %vm8607_vm14 = vcmask 162816  }
 0x675   :  { %v7594_v24 = vpop.permute.xlu1 %1629  ;;  %v7596_v40 = vpop.permute.xlu0 %1780 }
 0x676   :  { %8597 = vst [vmem:[#allocation49_spill] sm:$0xff] %v7594_v24  ;;  %8598 = vst [vmem:[#allocation50_spill] sm:$0xff] %v7596_v40  ;;  %v1820_v40 = vsel %vm8603_vm9, %v1810_v39, %v1566_v59 }
 0x677   :  { %v1830_v23 = vsel %vm625_vm10, %v1820_v40, %v7526_v13  ;;  %vm8605_vm9 = vmmov %vm8604_vm13  ;;  %v1804_v40 = vsel %vm592_vm7, %v7259_v0, %v1476_v48  ;;  %v1805_v0 = vsel %vm592_vm7, %v7307_v58, %v1478_v52 }
 0x678   :  { %vm8609_vm11 = vmmov %vm8605_vm9 }
 0x679   :  { %v1484_v22 = vpop.permute.xlu1 %1483  ;;  %v7598_v35 = vpop.permute.xlu0 %1631  ;;  %v1813_v7 = vsel %vm8609_vm11, %v1803_v3, %v7540_v50  ;;  %v1806_v50 = vsel %vm592_vm7, %v7320_v6, %v1480_v10  ;;  %v1807_v10 = vsel %vm592_vm7, %v7386_v51, %v1482_v57 }
 0x67a   :  { %8599 = vst [vmem:[#allocation51_spill] sm:$0xff] %v7598_v35 }
 0x67d   :  { %v7600_v61 = vpop.permute.xlu1 %1680  ;;  %v1486_v14 = vpop.permute.xlu0 %1485 }
 0x67e   :  { %8600 = vst [vmem:[#allocation52_spill] sm:$0xff] %v7600_v61  ;;  %v1801_v61 = vsel %vm592_vm7, %v7207_v1, %v7520_v63  ;;  %v4921_v63 = vld [vmem:[%s8606_s5] ss:$0 sm:$0xff] }
 0x67f   :  { %v1811_v62 = vsel %vm8604_vm13, %v1801_v61, %v7522_v36  ;;  %vm8608_vm13 = vcmask 97280  }
 0x680   :  { %v1821_v61 = vsel %vm8608_vm13, %v1811_v62, %v7524_v11  ;;  %v8640_v62 = vld [vmem:[#allocation46_spill] sm:$0xff] }
 0x681   :  { %v1533_v44 = vpop.permute.xlu1 %1532  ;;  %v7602_v55 = vpop.permute.xlu0 %1682  ;;  %v1831_v11 = vsel %vm625_vm10, %v1821_v61, %v7528_v17 }
 0x682   :  { %v1841_v17 = vsel %vm8617_vm6, %v1831_v11, %v7536_v21 }
 0x685   :  { %v7604_v41 = vpop.permute.xlu1 %1731  ;;  %v7608_v4 = vpop.permute.xlu0 %1534 }
 0x686   :  { %8601 = vst [vmem:[#allocation53_spill] sm:$0xff] %v7604_v41  ;;  %v1802_v41 = vsel %vm592_vm7, %v7221_v43, %v1472_v27  ;;  %v1840_v43 = vsel %vm8607_vm14, %v1830_v23, %v7530_v18  ;;  %vm8612_vm14 = vmmov %vm8609_vm11 }
 0x687   :  { %v1812_v1 = vsel %vm8605_vm9, %v1802_v41, %v7534_v20  ;;  %vm8610_vm9 = vmmov %vm8608_vm13  ;;  %v1850_v18 = vsel %vm8611_vm8, %v1840_v43, %v7538_v28  ;;  %v1814_v48 = vsel %vm8612_vm14, %v1804_v40, %v1525_v53  ;;  %vm8614_vm8 = vcmask 228352  }
 0x688   :  { %v1822_v13 = vsel %vm8610_vm9, %v1812_v1, %v7542_v30  ;;  %vm8613_vm11 = vmmov %vm8610_vm9  ;;  %v1860_v28 = vsel %vm8614_vm8, %v1850_v18, %v7546_v33  ;;  %v1824_v52 = vsel %vm8610_vm9, %v1814_v48, %v1574_v38  ;;  %v1808_v53 = vsel %vm592_vm7, %v7407_v5, %v1484_v22  ;;  %v8643_v1 = vld [vmem:[#allocation24_spill] sm:$0xff] }
 0x689   :  { %v7611_v24 = vpop.permute.xlu1 %1581  ;;  %v7617_v35 = vpop.permute.xlu0 %1733  ;;  %v1823_v30 = vsel %vm8613_vm11, %v1813_v7, %v7548_v45  ;;  %v1832_v41 = vsel %vm625_vm10, %v1822_v13, %v7553_v46  ;;  %vm8615_vm13 = vmmov %vm8612_vm14  ;;  %vm8616_vm14 = vcmask 261120   ;;  %v8651_v18 = vld [vmem:[#allocation48_spill] sm:$0xff] }
 0x68a   :  { %v1815_v58 = vsel %vm8615_vm13, %v1805_v0, %v1527_v26  ;;  %vm8618_vm5 = vmmov %vm8615_vm13  ;;  %v1833_v33 = vsel %vm625_vm10, %v1823_v30, %v7558_v15  ;;  %v1817_v57 = vsel %vm8615_vm13, %v1807_v10, %v7584_v37  ;;  %v8634_v26 = vld [vmem:[#allocation43_spill] sm:$0xff]  ;;  %v8659_v30 = vld [vmem:[#allocation50_spill] sm:$0xff] }
 0x68b   :  { %v1816_v6 = vsel %vm8618_vm5, %v1806_v50, %v1529_v9  ;;  %vm8619_vm11 = vmmov %vm8616_vm14  ;;  %vm8622_vm5 = vcmask 195584  }
 0x68c   :  { %vm8620_vm8 = vmmov %vm8617_vm6  ;;  %v1851_v51 = vsel %vm8622_vm5, %v1841_v17, %v7544_v32  ;;  %v8628_v32 = vmov 0.0|0.0  }
 0x68d   :  { %v7625_v25 = vpop.permute.xlu1 %1782  ;;  %v1584_v36 = vpop.permute.xlu0 %1583  ;;  %v1842_v46 = vsel %vm8620_vm8, %v1832_v41, %v7560_v49  ;;  %vm8621_vm6 = vmmov %vm8610_vm9  ;;  %v8655_v11 = vld [vmem:[#allocation53_spill] sm:$0xff] }
 0x68e   :  { %v1825_v9 = vsel %vm8621_vm6, %v1815_v58, %v7570_v12  ;;  %vm8623_vm9 = vmmov %vm8621_vm6  ;;  %v1809_v12 = vsel %vm592_vm7, %v7442_v34, %v1486_v14  ;;  %v8631_v14 = vld [vmem:[#allocation49_spill] sm:$0xff]  ;;  %v8632_v34 = vld [vmem:[#allocation42_spill] sm:$0xff] }
 0x68f   :  { %v1826_v15 = vsel %vm8623_vm9, %v1816_v6, %v7586_v31  ;;  %v1835_v37 = vsel %vm625_vm10, %v1825_v9, %v7576_v29 }
 0x691   :  { %v1634_v27 = vpop.permute.xlu1 %1633  ;;  %v1785_v45 = vpop.permute.xlu0 %1784 }
 0x695   :  { %v1636_v21 = vpop.permute.xlu1 %1635  ;;  %v1685_v49 = vpop.permute.xlu0 %1684 }
 0x699   :  { %v1687_v23 = vpop.permute.xlu1 %1686  ;;  %v1736_v13 = vpop.permute.xlu0 %1735 }
 0x69d   :  { %v1787_v17 = vpop.permute.xlu0 %1786 }
 0x721   :  { %v1328_v59 = vpop.f32.mrb[16].mxu0 }
 0x722   :  { %v1329_v19 = vadd.f32 %v4921_v63, %v1328_v59  ;;  %v5303_v20 = vpop.f32.mrb[17].mxu0  ;;  %v8644_v63 = vld [vmem:[#allocation51_spill] sm:$0xff] }
 0x724   :  { %v1332_v39 = vmax.f32 %v1329_v19, 0.0  ;;  %v8649_v19 = vld [vmem:[#allocation47_spill] sm:$0xff] }
 0x726   :  { %5313 = vmatmul.mubr.msk.f32.vlgmr.msra.gmra.mrb[18].mxu0 %vm8616_vm14, %v1332_v39  ;;  %vm8624_vm14 = vmmov %vm8620_vm8  ;;  %v1738_v39 = vpop.permute.xlu1 %1737 }
 0x727   :  { %5644 = vmatpush3.bf16.msra.mxu0 %v6750_v56  ;;  %5323 = vmatprep.mubr.msk.f32.mxu0 %vm8619_vm11, %v1860_v28  ;;  %v1834_v56 = vsel %vm625_vm10, %v1824_v52, %v7572_v54  ;;  %v1843_v22 = vsel %vm8624_vm14, %v1833_v33, %v7562_v2  ;;  %vm8625_vm11 = vmmov %vm8622_vm5  ;;  %vm8629_vm5 = vcmask 228352  }
 0x728   :  { %5646 = vmatprep.subr.bf16.mxu0 %v6755_v60  ;;  %v1852_v5 = vsel %vm8625_vm11, %v1842_v46, %v7564_v16  ;;  %vm8626_vm8 = vmmov %vm8615_vm13  ;;  %v1861_v2 = vsel %vm8629_vm5, %v1851_v51, %v7556_v8  ;;  %v8639_v8 = vld [vmem:[#allocation45_spill] sm:$0xff] }
 0x729   :  { %v1818_v54 = vsel %vm8626_vm8, %v1808_v53, %v1533_v44  ;;  %vm8627_vm6 = vmmov %vm8624_vm14  ;;  %v1836_v44 = vsel %vm625_vm10, %v1826_v15, %v8631_v14 }
 0x72a   :  { %v1844_v31 = vsel %vm8627_vm6, %v1834_v56, %v7578_v47  ;;  %vm8630_vm13 = vmmov %vm8623_vm9  ;;  %v1789_v46 = vpop.permute.xlu1 %1788 }
 0x72b   :  { %5648 = vmatpush3.bf16.msra.mxu0 %v6755_v60  ;;  %v1827_v16 = vsel %vm8630_vm13, %v1817_v57, %v7592_v42  ;;  %vm8633_vm7 = vmmov %vm8625_vm11  ;;  %v1845_v42 = vsel %vm8627_vm6, %v1835_v37, %v8639_v8  ;;  %v8684_v8 = vld [vmem:[#allocation35_spill] sm:$0xff] }
 0x72c   :  { %5665 = vmatprep.subr.bf16.mxu0 %v8628_v32  ;;  %v1853_v60 = vsel %vm8633_vm7, %v1843_v22, %v8632_v34  ;;  %vm8635_vm9 = vmmov %vm8629_vm5  ;;  %v1837_v43 = vsel %vm625_vm10, %v1827_v16, %v8644_v63  ;;  %v8674_v34 = vld [vmem:[#allocation27_spill] sm:$0xff] }
 0x72d   :  { %v1862_v29 = vsel %vm8635_vm9, %v1852_v5, %v8634_v26  ;;  %vm8636_vm14 = vmmov %vm8626_vm8  ;;  %vm8638_vm8 = vcmask 261120   ;;  %v8677_v26 = vld [vmem:[#allocation28_spill] sm:$0xff] }
 0x72e   :  { %v1819_v47 = vsel %vm8636_vm14, %v1809_v12, %v7608_v4  ;;  %vm8637_vm11 = vmmov %vm8630_vm13  ;;  %5324 = vmatmul.mubr.msk.f32.vlgmr.msra.gmra.mrb[20].mxu0 %vm8638_vm8, %v1861_v2  ;;  %v8645_v4 = vld [vmem:[#allocation52_spill] sm:$0xff] }
 0x72f   :  { %v1828_v38 = vsel %vm8637_vm11, %v1818_v54, %v7611_v24  ;;  %vm8641_vm5 = vmmov %vm8633_vm7  ;;  %5667 = vmatpush3.bf16.msra.mxu0 %v8643_v1  ;;  %v8647_v24 = vld [vmem:[#allocation44_spill] sm:$0xff] }
 0x730   :  { %v1854_v3 = vsel %vm8641_vm5, %v1844_v31, %v8640_v62  ;;  %vm8642_vm13 = vmmov %vm8638_vm8  ;;  %5700 = vmatprep.subr.bf16.mxu0 %v8628_v32  ;;  %v1863_v61 = vsel %vm8635_vm9, %v1853_v60, %v8647_v24  ;;  %v1838_v7 = vsel %vm625_vm10, %v1828_v38, %v1634_v27  ;;  %v8676_v60 = vld [vmem:[#allocation31_spill] sm:$0xff]  ;;  %v8682_v38 = vld [vmem:[#allocation33_spill] sm:$0xff] }
 0x731   :  { %5326 = vmatprep.mubr.msk.f32.mxu0 %vm8642_vm13, %v1862_v29  ;;  %vm8646_vm7 = vmmov %vm8627_vm6  ;;  %v8679_v29 = vld [vmem:[#allocation32_spill] sm:$0xff]  ;;  %v8686_v62 = vld [vmem:[#allocation38_spill] sm:$0xff] }
 0x732   :  { %v1846_v40 = vsel %vm8646_vm7, %v1836_v44, %v8645_v4  ;;  %vm8648_vm14 = vmmov %vm8637_vm11  ;;  %v8673_v44 = vld [vmem:[#allocation30_spill] sm:$0xff] }
 0x733   :  { %v1829_v59 = vsel %vm8648_vm14, %v1819_v47, %v1584_v36  ;;  %vm8650_vm11 = vmmov %vm8641_vm5  ;;  %v8680_v47 = vld [vmem:[#allocation29_spill] sm:$0xff] }
 0x734   :  { %v1855_v20 = vsel %vm8650_vm11, %v1845_v42, %v8649_v19  ;;  %vm8652_vm8 = vmmov %vm8635_vm9  ;;  %v1839_v27 = vsel %vm625_vm10, %v1829_v59, %v1636_v21  ;;  %v8685_v42 = vld [vmem:[#allocation36_spill] sm:$0xff] }
 0x735   :  { %v1864_v0 = vsel %vm8652_vm8, %v1854_v3, %v8651_v18  ;;  %vm8653_vm6 = vmmov %vm8642_vm13  ;;  %v4948_v3 = vld [vmem:[%s8575_s23 + $0x1] ss:$0 sm:$0xff] }
 0x736   :  { %5327 = vmatmul.mubr.msk.f32.gmra.mrb[22].mxu0 %vm8653_vm6, %v1863_v61  ;;  %vm8654_vm5 = vmmov %vm8646_vm7  ;;  %v4953_v18 = vld [vmem:[%s8576_s15 + $0x1] ss:$0 sm:$0xff] }
 0x737   :  { %v1847_v48 = vsel %vm8654_vm5, %v1837_v43, %v7602_v55  ;;  %vm8656_vm13 = vmmov %vm8650_vm11 }
 0x738   :  { %v1856_v50 = vsel %vm8656_vm13, %v1846_v40, %v8655_v11  ;;  %vm8657_vm7 = vmmov %vm8653_vm6  ;;  %v1857_v28 = vsel %vm8650_vm11, %v1847_v48, %v7617_v35 }
 0x739   :  { %5329 = vmatprep.mubr.msk.f32.mxu0 %vm8657_vm7, %v1864_v0  ;;  %vm8658_vm9 = vmmov %vm8654_vm5  ;;  %v1866_v58 = vsel %vm8652_vm8, %v1856_v50, %v7625_v25  ;;  %v8671_v25 = vmov 0.0  }
 0x73a   :  { %v1848_v36 = vsel %vm8658_vm9, %v1838_v7, %v1685_v49  ;;  %vm8660_vm14 = vmmov %vm8652_vm8 }
 0x73b   :  { %v1865_v41 = vsel %vm8660_vm14, %v1855_v20, %v8659_v30  ;;  %vm8661_vm5 = vmmov %vm8650_vm11 }
 0x73c   :  { %5330 = vmatmul.mubr.msk.f32.gmra.mrb[24].mxu0 %vm8653_vm6, %v1865_v41  ;;  %v1858_v55 = vsel %vm8661_vm5, %v1848_v36, %v1736_v13  ;;  %vm8662_vm13 = vmmov %vm8658_vm9 }
 0x73d   :  { %v1849_v52 = vsel %vm8662_vm13, %v1839_v27, %v1687_v23  ;;  %vm8663_vm7 = vmmov %vm8653_vm6  ;;  %v8683_v23 = vld [vmem:[#allocation34_spill] sm:$0xff]  ;;  %vm8688_vm13 = vcmask 1043456  }
 0x73e   :  { %5332 = vmatprep.mubr.msk.f32.mxu0 %vm8663_vm7, %v1866_v58  ;;  %vm8664_vm9 = vmmov %vm8652_vm8 }
 0x73f   :  { %v1867_v10 = vsel %vm8664_vm9, %v1857_v28, %v1785_v45  ;;  %vm8665_vm4 = vmmov %vm8652_vm8  ;;  %vm8690_vm9 = vcmask 1042432  }
 0x740   :  { %v1868_v6 = vsel %vm8665_vm4, %v1858_v55, %v1787_v17  ;;  %vm8666_vm14 = vmmov %vm8661_vm5 }
 0x741   :  { %v1859_v33 = vsel %vm8666_vm14, %v1849_v52, %v1738_v39  ;;  %vm8667_vm11 = vmmov %vm8653_vm6  ;;  %vm8691_vm14 = vcmask 1041408  }
 0x742   :  { %5333 = vmatmul.mubr.msk.f32.gmra.mrb[26].mxu0 %vm8667_vm11, %v1867_v10  ;;  %vm8668_vm3 = vmmov %vm8653_vm6 }
 0x743   :  { %5335 = vmatprep.mubr.msk.f32.mxu0 %vm8668_vm3, %v1868_v6  ;;  %vm8669_vm8 = vmmov %vm8665_vm4 }
 0x744   :  { %v1869_v35 = vsel %vm8669_vm8, %v1859_v33, %v1789_v46  ;;  %vm8670_vm6 = vmmov %vm8668_vm3  ;;  %vm8675_vm3 = vcmask 629760  }
 0x745   :  { %vm8678_vm4 = vmmov %vm8675_vm3 }
 0x746   :  { %5336 = vmatmul.mubr.msk.f32.gmra.mrb[28].mxu0 %vm8670_vm6, %v1869_v35  ;;  %vm8681_vm5 = vmmov %vm8675_vm3  ;;  %vm8694_vm6 = vcmask 1040384  }
 0x747   :  { %5371 = vmatprep.mubr.msk.f32.mxu0 %vm6361_vm15, %v8671_v25  ;;  %vm8689_vm7 = vmmov %vm8688_vm13 }
 0x748   :  { %vm8692_vm11 = vmmov %vm8690_vm9 }
 0x749   :  { %vm8693_vm8 = vmmov %vm8691_vm14 }
 0x7f9   :  { %v7761_v53 = vpop.f32.mrb[18].mxu0 }
 0x7fa   :  { %v5314_v21 = vpop.f32.mrb[19].mxu0 }
 0x801   :  { %v5325_v45 = vpop.f32.mrb[20].mxu0 }
 0x802   :  { %v1966_v9 = vpop.f32.mrb[21].mxu0 }
 0x803   :  { %v5650_v56 = vpack.c.bf16 %v5325_v45, %v1966_v9  ;;  %v4924_v9 = vld [vmem:[%s8687_s7] ss:$0 sm:$0xff] }
 0x805   :  { %5651 = vmatpush3.bf16.msra.mxu1 %v5650_v56  ;;  %v7817_v56 = vadd.f32 %v4924_v9, %v7761_v53 }
 0x806   :  { %5652 = vmatprep.subr.bf16.mxu1 %v8628_v32 }
 0x809   :  { %v5328_v51 = vpop.f32.mrb[22].mxu0 }
 0x80a   :  { %v1976_v57 = vpop.f32.mrb[23].mxu0 }
 0x80b   :  { %v5653_v15 = vpack.c.bf16 %v5328_v51, %v1976_v57  ;;  %v4926_v51 = vmul.f32 -1.442695, %v7817_v56 }
 0x80d   :  { %5654 = vmatpush3.bf16.msra.mxu1 %v5653_v15 }
 0x80e   :  { %5655 = vmatprep.subr.bf16.mxu1 %v8628_v32 }
 0x80f   :  { %v5331_v22 = vpop.f32.mrb[24].mxu0 }
 0x810   :  { %v1986_v5 = vpop.f32.mrb[25].mxu0 }
 0x811   :  { %v5656_v12 = vpack.c.bf16 %v5331_v22, %v1986_v5 }
 0x813   :  { %5657 = vmatpush3.bf16.msra.mxu1 %v5656_v12 }
 0x814   :  { %5658 = vmatprep.subr.bf16.mxu1 %v8628_v32 }
 0x815   :  { %v5334_v54 = vpop.f32.mrb[26].mxu0 }
 0x816   :  { %v1996_v49 = vpop.f32.mrb[27].mxu0 }
 0x817   :  { %v5659_v37 = vpack.c.bf16 %v5334_v54, %v1996_v49 }
 0x819   :  { %v5337_v31 = vpop.f32.mrb[28].mxu0  ;;  %5660 = vmatpush3.bf16.msra.mxu1 %v5659_v37 }
 0x81a   :  { %v2006_v2 = vpop.f32.mrb[29].mxu0  ;;  %5661 = vmatprep.subr.bf16.mxu1 %v8628_v32 }
 0x81b   :  { %v5662_v16 = vpack.c.bf16 %v5337_v31, %v2006_v2 }
 0x81d   :  { %5664 = vmatpush3.bf16.msk.msra.mxu1 %vm7039_vm12, %v5662_v16 }
 0x81e   :  { %5669 = vmatprep.subr.bf16.mxu1 %v8673_v44 }
 0x820   :  { %5359 = vmatmul.mubr.msk.f32.vlgmr.msra.gmra.mrb[8].mxu1 %vm8675_vm3, %v8674_v34  ;;  %vm8695_vm3 = vmmov %vm8694_vm6 }
 0x821   :  { %5361 = vmatprep.mubr.msk.f32.mxu1 %vm6361_vm15, %v8671_v25  ;;  %5671 = vmatpush3.bf16.msra.mxu1 %v8673_v44 }
 0x822   :  { %5673 = vmatprep.subr.bf16.mxu1 %v8676_v60 }
 0x824   :  { %5362 = vmatmul.mubr.msk.f32.gmra.mrb[10].mxu1 %vm8678_vm4, %v8677_v26  ;;  %vm8696_vm4 = vcmask 261120  }
 0x825   :  { %5364 = vmatprep.mubr.msk.f32.mxu1 %vm6361_vm15, %v8671_v25  ;;  %5675 = vmatpush3.bf16.msra.mxu1 %v8676_v60 }
 0x826   :  { %5677 = vmatprep.subr.bf16.mxu1 %v8679_v29 }
 0x828   :  { %5365 = vmatmul.mubr.msk.f32.gmra.mrb[12].mxu1 %vm8681_vm5, %v8680_v47  ;;  %vm8697_vm5 = vmmov %vm8696_vm4 }
 0x829   :  { %5679 = vmatpush3.bf16.msra.mxu1 %v8679_v29 }
 0x82a   :  { %5681 = vmatprep.subr.bf16.mxu1 %v8682_v38 }
 0x82d   :  { %5683 = vmatpush3.bf16.msra.mxu1 %v8682_v38 }
 0x82e   :  { %5685 = vmatprep.subr.bf16.mxu1 %v8683_v23 }
 0x831   :  { %5687 = vmatpush3.bf16.msra.mxu1 %v8683_v23 }
 0x832   :  { %5689 = vmatprep.subr.bf16.mxu1 %v8684_v8 }
 0x835   :  { %5691 = vmatpush3.bf16.msra.mxu1 %v8684_v8 }
 0x836   :  { %5693 = vmatprep.subr.bf16.mxu1 %v8685_v42 }
 0x839   :  { %5695 = vmatpush3.bf16.msra.mxu1 %v8685_v42 }
 0x83a   :  { %5697 = vmatprep.subr.bf16.mxu1 %v8686_v62 }
 0x83d   :  { %5699 = vmatpush3.bf16.msra.mxu1 %v8686_v62 }
 0x8f3   :  { %v2089_v1 = vpop.f32.mrb[8].mxu1 }
 0x8f4   :  { %v2090_v63 = vadd.f32 %v4948_v3, %v2089_v1  ;;  %v5360_v43 = vpop.f32.mrb[9].mxu1 }
 0x8f6   :  { %v2103_v4 = vmax.f32 %v2090_v63, 0.0 }
 0x8f7   :  { %v2094_v40 = vpop.f32.mrb[10].mxu1 }
 0x8f8   :  { %v2095_v24 = vadd.f32 %v4948_v3, %v2094_v40  ;;  %v5363_v61 = vpop.f32.mrb[11].mxu1  ;;  %5372 = vmatmul.mubr.msk.f32.vlgmr.msra.gmra.mrb[30].mxu0 %vm625_vm10, %v2103_v4 }
 0x8f9   :  { %5374 = vmatprep.mubr.msk.f32.mxu0 %vm6361_vm15, %v8671_v25 }
 0x8fa   :  { %v2104_v59 = vmax.f32 %v2095_v24, 0.0 }
 0x8fb   :  { %v2099_v7 = vpop.f32.mrb[12].mxu1 }
 0x8fc   :  { %v2100_v13 = vadd.f32 %v4948_v3, %v2099_v7  ;;  %5375 = vmatmul.mubr.msk.f32.gmra.mrb[32].mxu0 %vm625_vm10, %v2104_v59  ;;  %v5366_v19 = vpop.f32.mrb[13].mxu1 }
 0x8fd   :  { %5377 = vmatprep.mubr.msk.f32.mxu0 %vm6361_vm15, %v8671_v25 }
 0x8fe   :  { %v2105_v20 = vmax.f32 %v2100_v13, 0.0 }
 0x900   :  { %5378 = vmatmul.mubr.msk.f32.gmra.mrb[34].mxu0 %vm625_vm10, %v2105_v20 }
 0x901   :  { %5419 = vmatprep.mubr.msk.f32.mxu0 %vm6361_vm15, %v8671_v25 }
 0x9cb   :  { %v2186_v0 = vpop.f32.mrb[30].mxu0 }
 0x9cc   :  { %v2187_v48 = vadd.f32 %v4953_v18, %v2186_v0  ;;  %v5373_v11 = vpop.f32.mrb[31].mxu0 }
 0x9ce   :  { %v4957_v50 = vmul.f32 -1.442695, %v2187_v48 }
 0x9cf   :  { %v2191_v36 = vpop.f32.mrb[32].mxu0 }
 0x9d0   :  { %6001 = vpow2.f32 %v4957_v50  ;;  %v2192_v27 = vadd.f32 %v4953_v18, %v2191_v36  ;;  %v5376_v39 = vpop.f32.mrb[33].mxu0 }
 0x9d2   :  { %v4958_v30 = vmul.f32 -1.442695, %v2192_v27 }
 0x9d3   :  { %v2196_v41 = vpop.f32.mrb[34].mxu0 }
 0x9d4   :  { %6003 = vpow2.f32 %v4958_v30  ;;  %v2197_v28 = vadd.f32 %v4953_v18, %v2196_v41  ;;  %v5379_v58 = vpop.f32.mrb[35].mxu0 }
 0x9d6   :  { %v4959_v55 = vmul.f32 -1.442695, %v2197_v28 }
 0x9d8   :  { %6005 = vpow2.f32 %v4959_v55 }
 0x9da   :  { %v6002_v52 = vpop.eup %6001 }
 0x9db   :  { %v2209_v17 = vadd.f32 1.0, %v6002_v52 }
 0x9dd   :  { %6007 = vrcp.f32 %v2209_v17 }
 0x9de   :  { %v6004_v10 = vpop.eup %6003 }
 0x9df   :  { %v2210_v6 = vadd.f32 1.0, %v6004_v10 }
 0x9e1   :  { %6009 = vrcp.f32 %v2210_v6 }
 0x9e2   :  { %v6006_v33 = vpop.eup %6005 }
 0x9e3   :  { %v2211_v46 = vadd.f32 1.0, %v6006_v33 }
 0x9e5   :  { %6011 = vrcp.f32 %v2211_v46 }
 0x9e6   :  { %6013 = vpow2.f32 %v4926_v51 }
 0x9e7   :  { %v6008_v35 = vpop.eup %6007 }
 0x9e8   :  { %2221 = vrot.lane.b32.xlu0 %v6008_v35, %s6364_s27 }
 0x9eb   :  { %v6010_v21 = vpop.eup %6009 }
 0x9ec   :  { %2223 = vrot.lane.b32.xlu1 %v6010_v21, %s6364_s27 }
 0x9ef   :  { %v6012_v45 = vpop.eup %6011 }
 0x9f0   :  { %2225 = vrot.lane.b32.xlu0 %v6012_v45, %s6364_s27  ;;  %v6014_v44 = vpop.eup %6013 }
 0x9f1   :  { %v1418_v1 = vadd.f32 1.0, %v6014_v44 }
 0x9f3   :  { %6015 = vrcp.f32 %v1418_v1 }
 0x9fd   :  { %v6016_v41 = vpop.eup %6015 }
 0xa5a   :  { %v2222_v57 = vpop.permute.xlu0 %2221 }
 0xa5b   :  { %v2230_v15 = vmul.f32 %v2222_v57, %v2187_v48 }
 0xa5d   :  { %v2235_v12 = vrot.slane %v2230_v15, 1  ;;  %v2244_v49 = vrot.slane %v2230_v15, 2  ;;  %v2253_v16 = vrot.slane %v2230_v15, 3  ;;  %v2263_v23 = vrot.slane %v2230_v15, 4 }
 0xa5e   :  { %v2224_v22 = vpop.permute.xlu1 %2223  ;;  %v2274_v59 = vrot.slane %v2230_v15, 5  ;;  %v2285_v19 = vrot.slane %v2230_v15, 6  ;;  %v2296_v36 = vrot.slane %v2230_v15, 7 }
 0xa5f   :  { %v2231_v5 = vmul.f32 %v2224_v22, %v2192_v27 }
 0xa61   :  { %v2236_v54 = vrot.slane %v2231_v5, 1  ;;  %v2245_v37 = vrot.slane %v2231_v5, 2  ;;  %v2254_v31 = vrot.slane %v2231_v5, 3  ;;  %v7822_v29 = vrot.slane %v2231_v5, 4 }
 0xa62   :  { %v2226_v2 = vpop.permute.xlu0 %2225  ;;  %v2275_v4 = vrot.slane %v2231_v5, 5  ;;  %v2286_v40 = vrot.slane %v2231_v5, 6  ;;  %v2297_v48 = vrot.slane %v2231_v5, 7 }
 0xa63   :  { %v2232_v60 = vmul.f32 %v2226_v2, %v2197_v28  ;;  %v2237_v26 = vsel %vm233_vm1, %v2235_v12, %v2236_v54  ;;  %v2246_v53 = vsel %vm283_vm0, %v2244_v49, %v2245_v37  ;;  %v2255_v3 = vsel %vm333_vm2, %v2253_v16, %v2254_v31 }
 0xa64   :  { %v5954_v47 = vpack.i.bf16 %v2236_v54, %v2237_v26  ;;  %v5959_v38 = vpack.i.bf16 %v2245_v37, %v2246_v53  ;;  %v7829_v63 = vsel %vm8688_vm13, %v2263_v23, %v7822_v29  ;;  %v5964_v24 = vpack.i.bf16 %v2254_v31, %v2255_v3 }
 0xa65   :  { %v2266_v8 = vrot.slane %v2232_v60, 4  ;;  %v2277_v42 = vrot.slane %v2232_v60, 5  ;;  %v2288_v62 = vrot.slane %v2232_v60, 6  ;;  %v2299_v7 = vrot.slane %v2232_v60, 7 }
 0xa66   :  { %5955 = vrot.lane.b32.xlu1 %v5954_v47, %s6343_s9  ;;  %5960 = vrot.lane.b32.xlu0 %v5959_v38, %s6365_s21  ;;  %v2276_v18 = vsel %vm8692_vm11, %v2274_v59, %v2275_v4  ;;  %v2287_v0 = vsel %vm8693_vm8, %v2285_v19, %v2286_v40  ;;  %v2298_v39 = vsel %vm8695_vm3, %v2296_v36, %v2297_v48  ;;  %vm8698_vm13 = vcmask 392192   ;;  %v2568_v19 = vld [vmem:[#allocation4] sm:$0xff] }
 0xa67   :  { %v2267_v43 = vsel %vm8689_vm7, %v7822_v29, %v2266_v8  ;;  %v2278_v13 = vsel %vm8690_vm9, %v2275_v4, %v2277_v42  ;;  %v2289_v20 = vsel %vm8691_vm14, %v2286_v40, %v2288_v62  ;;  %v2300_v27 = vsel %vm8694_vm6, %v2297_v48, %v2299_v7  ;;  %vm8699_vm7 = vmmov %vm8698_vm13  ;;  %v8709_v4 = vld [vmem:[#allocation40_spill] sm:$0xff]  ;;  %v8710_v40 = vld [vmem:[#allocation41_spill] sm:$0xff] }
 0xa68   :  { %v5969_v61 = vpack.i.bf16 %v2267_v43, %v7829_v63  ;;  %v5974_v11 = vpack.i.bf16 %v2278_v13, %v2276_v18  ;;  %v5979_v50 = vpack.i.bf16 %v2289_v20, %v2287_v0  ;;  %v5984_v30 = vpack.i.bf16 %v2300_v27, %v2298_v39  ;;  %v2571_v13 = vld [vmem:[#allocation4 + $0x18] sm:$0xff]  ;;  %v2570_v18 = vld [vmem:[#allocation4 + $0x10] sm:$0xff]  ;;  %v4963_v48 = vld [vmem:[%s8687_s7 + $0x1] ss:$0 sm:$0xff] }
 0xa69   :  { %vm8700_vm9 = vcmask 523264   ;;  %vm8702_vm11 = vcmask 654336   ;;  %vm8704_vm6 = vcmask 785408   ;;  %v5712_v0 = vpack.c.bf16 %v2570_v18, %v2568_v19 }
 0xa6a   :  { %5965 = vrot.lane.b32.xlu1 %v5964_v24, %s6366_s26  ;;  %5970 = vrot.lane.b32.xlu0 %v5969_v61, %s6367_s28  ;;  %vm8701_vm14 = vmmov %vm8700_vm9  ;;  %v4960_v24 = vld [vmem:[%s8606_s5 + $0x1] ss:$0 sm:$0xff] }
 0xa6b   :  { %vm8703_vm8 = vmmov %vm8702_vm11 }
 0xa6c   :  { %vm8705_vm3 = vmmov %vm8704_vm6 }
 0xa6e   :  { %5975 = vrot.lane.b32.xlu1 %v5974_v11, %s6368_s4  ;;  %5980 = vrot.lane.b32.xlu0 %v5979_v50, %s6369_s13 }
 0xa72   :  { %5985 = vrot.lane.b32.xlu1 %v5984_v30, %s6364_s27 }
 0xa76   :  { %1422 = vrot.lane.b32.xlu1 %v6016_v41, %s6369_s13  ;;  %v2573_v41 = vld [vmem:[#allocation4 + $0x28] sm:$0xff] }
 0xad8   :  { %v5956_v28 = vpop.permute.xlu1 %5955  ;;  %v5961_v58 = vpop.permute.xlu0 %5960 }
 0xad9   :  { %v5958_v55 = vunpack.i.h.bf16 %v5956_v28  ;;  %v5957_v52 = vunpack.i.l.bf16 %v5956_v28  ;;  %v5963_v17 = vunpack.i.h.bf16 %v5961_v58  ;;  %v5962_v10 = vunpack.i.l.bf16 %v5961_v58  ;;  %v2575_v28 = vld [vmem:[#allocation4 + $0x38] sm:$0xff] }
 0xada   :  { %v5714_v58 = vpack.c.bf16 %v2575_v28, %v2573_v41 }
 0xadb   :  { %v2308_v6 = vsel %vm625_vm10, %v2231_v5, %v5958_v55  ;;  %v2307_v33 = vsel %vm625_vm10, %v2230_v15, %v5957_v52  ;;  %v2572_v55 = vld [vmem:[#allocation4 + $0x20] sm:$0xff]  ;;  %v2574_v52 = vld [vmem:[#allocation4 + $0x30] sm:$0xff] }
 0xadc   :  { %v5966_v46 = vpop.permute.xlu1 %5965  ;;  %v5971_v35 = vpop.permute.xlu0 %5970  ;;  %v2310_v9 = vsel %vm8696_vm4, %v2308_v6, %v5963_v17  ;;  %v2309_v51 = vsel %vm8697_vm5, %v2307_v33, %v5962_v10  ;;  %vm8706_vm4 = vcmask 916480   ;;  %v5716_v17 = vpack.c.bf16 %v2574_v52, %v2572_v55  ;;  %v2663_v10 = vld [vmem:[#allocation7 + $0x8] sm:$0xff]  ;;  %v2665_v6 = vld [vmem:[#allocation7 + $0x18] sm:$0xff] }
 0xadd   :  { %v5968_v21 = vunpack.i.h.bf16 %v5966_v46  ;;  %v5967_v45 = vunpack.i.l.bf16 %v5966_v46  ;;  %v5973_v57 = vunpack.i.h.bf16 %v5971_v35  ;;  %v5972_v22 = vunpack.i.l.bf16 %v5971_v35  ;;  %vm8707_vm5 = vmmov %vm8706_vm4  ;;  %v2662_v46 = vld [vmem:[#allocation7] sm:$0xff]  ;;  %v2664_v35 = vld [vmem:[#allocation7 + $0x10] sm:$0xff] }
 0xade   :  { %v5718_v33 = vpack.c.bf16 %v2665_v6, %v2663_v10 }
 0xadf   :  { %v2311_v12 = vsel %vm8698_vm13, %v2309_v51, %v5967_v45  ;;  %v2312_v54 = vsel %vm8699_vm7, %v2310_v9, %v5968_v21  ;;  %vm8708_vm13 = vcmask 105472   ;;  %v7879_v21 = vpack.c.bf16 %v2664_v35, %v2662_v46  ;;  %v2667_v45 = vld [vmem:[#allocation7 + $0x28] sm:$0xff]  ;;  %v2669_v9 = vld [vmem:[#allocation7 + $0x38] sm:$0xff] }
 0xae0   :  { %v5976_v49 = vpop.permute.xlu1 %5975  ;;  %v5981_v37 = vpop.permute.xlu0 %5980  ;;  %v2313_v15 = vsel %vm8700_vm9, %v2311_v12, %v5972_v22  ;;  %v2314_v2 = vsel %vm8701_vm14, %v2312_v54, %v5973_v57  ;;  %v7881_v51 = vpack.c.bf16 %v2669_v9, %v2667_v45  ;;  %v2666_v57 = vld [vmem:[#allocation7 + $0x20] sm:$0xff]  ;;  %v2668_v22 = vld [vmem:[#allocation7 + $0x30] sm:$0xff]  ;;  %5727 = vmatprep.subr.bf16.mxu1 %v5718_v33  ;;  %vm8712_vm7 = vcmask 1043456  }
 0xae1   :  { %v5978_v31 = vunpack.i.h.bf16 %v5976_v49  ;;  %v5977_v5 = vunpack.i.l.bf16 %v5976_v49  ;;  %v5983_v16 = vunpack.i.h.bf16 %v5981_v37  ;;  %v5982_v44 = vunpack.i.l.bf16 %v5981_v37 }
 0xae2   :  { %v7885_v12 = vpack.c.bf16 %v2668_v22, %v2666_v57  ;;  %vm8715_vm14 = vcmask 1040384  }
 0xae3   :  { %v2316_v60 = vsel %vm8702_vm11, %v2314_v2, %v5978_v31  ;;  %v2315_v26 = vsel %vm8703_vm8, %v2313_v15, %v5977_v5  ;;  %vm8716_vm11 = vmmov %vm8715_vm14 }
 0xae4   :  { %v5986_v53 = vpop.permute.xlu1 %5985  ;;  %v2318_v23 = vsel %vm8704_vm6, %v2316_v60, %v5983_v16  ;;  %v2317_v8 = vsel %vm8705_vm3, %v2315_v26, %v5982_v44  ;;  %v2576_v44 = vld [vmem:[#allocation6] sm:$0x3]  ;;  %vm8717_vm8 = vmmov %vm8716_vm11  ;;  %vm8719_vm3 = vcmask 1041408  }
 0xae5   :  { %v5988_v47 = vunpack.i.h.bf16 %v5986_v53  ;;  %v5987_v38 = vunpack.i.l.bf16 %v5986_v53  ;;  %vm8718_vm6 = vmmov %vm8717_vm8 }
 0xae7   :  { %v2319_v42 = vsel %vm8706_vm4, %v2317_v8, %v5987_v38  ;;  %v2320_v62 = vsel %vm8707_vm5, %v2318_v23, %v5988_v47  ;;  %vm8721_vm5 = vmmov %vm8718_vm6 }
 0xae8   :  { %5412 = vmatprep.mubr.f32.mxu1 %v2319_v42  ;;  %v1423_v49 = vpop.permute.xlu1 %1422 }
 0xae9   :  { %5413 = vmatmul.mubr.f32.vlgmr.msra.gmra.mrb[14].mxu1 %v2320_v62  ;;  %v7892_v5 = vmul.f32 %v1423_v49, %v7817_v56  ;;  %v8714_v56 = vld [vmem:[#allocation25_spill] sm:$0xff] }
 0xaea   :  { %2853 = vmatprep.mubr.f32.mxu1 %v8671_v25  ;;  %5729 = vmatpush1.bf16.msra.mxu1 %v7879_v21  ;;  %v2580_v16 = vsub.s32 0, %v8714_v56  ;;  %v2584_v60 = vsub.s32 1, %v8714_v56 }
 0xaeb   :  { %5731 = vmatprep.subr.bf16.mxu1 %v7881_v51 }
 0xaec   :  { %v2581_v26 = vrot.slane %v2576_v44, %v2580_v16  ;;  %v2585_v53 = vrot.slane %v2576_v44, %v2584_v60 }
 0xaee   :  { %5733 = vmatpush1.bf16.msra.mxu1 %v7885_v12 }
 0xaef   :  { %5743 = vmatprep.subr.bf16.mxu1 %v5718_v33 }
 0xbbc   :  { %v5414_v3 = vpop.f32.mrb[14].mxu1 }
 0xbbd   :  { %v2387_v1 = vpop.f32.mrb[15].mxu1 }
 0xbbe   :  { %v5701_v43 = vpack.c.bf16 %v5414_v3, %v2387_v1 }
 0xbc0   :  { %5703 = vmatpush3.bf16.msk.msra.mxu0 %vm7039_vm12, %v5701_v43  ;;  %vm8711_vm12 = vcmask 261120  }
 0xbc1   :  { %5704 = vmatprep.subr.bf16.mxu0 %v8628_v32  ;;  %vm8713_vm9 = vmmov %vm8711_vm12 }
 0xbc2   :  { %vm8720_vm4 = vmmov %vm8713_vm9 }
 0xbc3   :  { %5420 = vmatmul.mubr.msk.f32.vlgmr.msra.gmra.mrb[36].mxu0 %vm8708_vm13, %v8674_v34  ;;  %v2569_v34 = vld [vmem:[#allocation4 + $0x8] sm:$0xff]  ;;  %vm8722_vm13 = vmmov %vm8721_vm5 }
 0xbc4   :  { %5706 = vmatpush3.bf16.msra.mxu0 %v8709_v4  ;;  %5430 = vmatprep.mubr.msk.f32.mxu0 %vm6361_vm15, %v8671_v25  ;;  %v5710_v20 = vpack.c.bf16 %v2571_v13, %v2569_v34 }
 0xbc5   :  { %5707 = vmatprep.subr.bf16.mxu0 %v8628_v32 }
 0xbc8   :  { %5709 = vmatpush3.bf16.msra.mxu0 %v8710_v40 }
 0xbc9   :  { %5711 = vmatprep.subr.bf16.mxu0 %v5710_v20 }
 0xc96   :  { %v2470_v14 = vpop.f32.mrb[36].mxu0 }
 0xc97   :  { %v2471_v61 = vadd.f32 %v4960_v24, %v2470_v14  ;;  %v5421_v59 = vpop.f32.mrb[37].mxu0 }
 0xc99   :  { %v2474_v7 = vmax.f32 %v2471_v61, 0.0 }
 0xc9b   :  { %5431 = vmatmul.mubr.msk.f32.vlgmr.msra.gmra.mrb[38].mxu0 %vm8711_vm12, %v2474_v7  ;;  %vm8723_vm12 = vmmov %vm8719_vm3 }
 0xc9c   :  { %2655 = vmatprep.mubr.f32.mxu0 %v8671_v25  ;;  %5713 = vmatpush1.bf16.msra.mxu0 %v5712_v0 }
 0xc9d   :  { %5715 = vmatprep.subr.bf16.mxu0 %v5714_v58 }
 0xca0   :  { %5717 = vmatpush1.bf16.msra.mxu0 %v5716_v17 }
 0xca1   :  { %5719 = vmatprep.subr.bf16.mxu0 %v5718_v33 }
 0xd6e   :  { %v2549_v11 = vpop.f32.mrb[38].mxu0 }
 0xd6f   :  { %v2550_v50 = vadd.f32 %v4963_v48, %v2549_v11  ;;  %v5432_v36 = vpop.f32.mrb[39].mxu0 }
 0xd71   :  { %v4965_v27 = vmul.f32 -1.442695, %v2550_v50 }
 0xd73   :  { %6017 = vpow2.f32 %v4965_v27 }
 0xd7d   :  { %v6018_v39 = vpop.eup %6017 }
 0xd7e   :  { %v2556_v30 = vadd.f32 1.0, %v6018_v39 }
 0xd80   :  { %6019 = vrcp.f32 %v2556_v30 }
 0xd8a   :  { %v6020_v54 = vpop.eup %6019 }
 0xd8b   :  { %2560 = vrot.lane.b32.xlu0 %v6020_v54, %s6369_s13 }
 0xdfd   :  { %v2561_v37 = vpop.permute.xlu0 %2560 }
 0xdfe   :  { %v7889_v31 = vmul.f32 %v2561_v37, %v2550_v50 }
 0xe00   :  { %v2565_v15 = vrot.slane %v7889_v31, 4 }
 0xe02   :  { %v2567_v2 = vsel %vm8712_vm7, %v7892_v5, %v2565_v15  ;;  %vm8724_vm7 = vmmov %vm8720_vm4 }
 0xe03   :  { %4966 = vmatmul.mubr.msk.f32.vlgmr.msra.gmra.mrb[40].mxu0 %vm8713_vm9, %v2567_v2  ;;  %vm8725_vm9 = vmmov %vm8721_vm5 }
 0xe04   :  { %5721 = vmatpush1.bf16.msra.mxu0 %v7879_v21  ;;  %2737 = vmatprep.mubr.f32.mxu0 %v8671_v25 }
 0xe05   :  { %5723 = vmatprep.subr.bf16.mxu0 %v7881_v51 }
 0xe08   :  { %5725 = vmatpush1.bf16.msra.mxu0 %v7885_v12 }
 0xe09   :  { %5735 = vmatprep.subr.bf16.mxu0 %v5718_v33 }
 0xe0b   :  { %2738 = vmatmul.mubr.f32.vlgmr.msra.gmra.mrb[42].mxu0 %v8671_v25 }
 0xe0c   :  { %5737 = vmatpush1.bf16.msra.mxu0 %v7879_v21  ;;  %2969 = vmatprep.mubr.f32.mxu0 %v8671_v25 }
 0xe0d   :  { %5739 = vmatprep.subr.bf16.mxu0 %v7881_v51 }
 0xe10   :  { %5741 = vmatpush1.bf16.msra.mxu0 %v7885_v12 }
 0xed6   :  { %v2657_v47 = vpop.f32.mrb[40].mxu0 }
 0xed7   :  { %v7915_v38 = vadd.f32 %v2657_v47, %v2581_v26  ;;  %v2659_v23 = vpop.f32.mrb[41].mxu0 }
 0xed8   :  { %v7917_v8 = vadd.f32 %v2659_v23, %v2585_v53 }
 0xed9   :  { %v2745_v42 = vrot.slane %v7915_v38, 3  ;;  %v3092_v43 = vrot.slane %v7915_v38, 6  ;;  %v2860_v17 = vrot.slane %v7915_v38, 1  ;;  %v2862_v10 = vrot.slane %v7915_v38, 4 }
 0xeda   :  { %v2749_v62 = vrot.slane %v7917_v8, 3  ;;  %v2751_v3 = vrot.slane %v7917_v8, 6  ;;  %v2865_v55 = vrot.slane %v7917_v8, 2  ;;  %v2867_v52 = vrot.slane %v7917_v8, 5 }
 0xedb   :  { %v2747_v14 = vsel %vm8717_vm8, %v7915_v38, %v2745_v42  ;;  %v7931_v61 = vsel %vm8718_vm6, %v2745_v42, %v3092_v43  ;;  %v2864_v46 = vsel %vm8722_vm13, %v2860_v17, %v2862_v10  ;;  %v2976_v43 = vrot.slane %v7915_v38, 2  ;;  %vm8728_vm8 = vmmov %vm8720_vm4 }
 0xedc   :  { %v2753_v1 = vsel %vm8715_vm14, %v2749_v62, %v2751_v3  ;;  %v7926_v40 = vsel %vm8716_vm11, %v7917_v8, %v2749_v62  ;;  %v2869_v6 = vsel %vm8721_vm5, %v2865_v55, %v2867_v52  ;;  %v2981_v3 = vrot.slane %v7917_v8, 1  ;;  %vm8726_vm14 = vmmov %vm8721_vm5 }
 0xedd   :  { %v2756_v4 = vrot.slane %v2753_v1, 6  ;;  %v2872_v35 = vrot.slane %v2869_v6, 6  ;;  %v2983_v1 = vrot.slane %v7917_v8, 4  ;;  %vm8727_vm11 = vmmov %vm8719_vm3  ;;  %v3098_v10 = vrot.slane %v7926_v40, 6 }
 0xede   :  { %v2739_v24 = vpop.f32.mrb[42].mxu0  ;;  %vm8729_vm6 = vmmov %vm8719_vm3 }
 0xedf   :  { %v2754_v59 = vadd.f32 %v2747_v14, %v2739_v24  ;;  %v2741_v7 = vpop.f32.mrb[43].mxu0  ;;  %v2985_v24 = vsel %vm8725_vm9, %v2981_v3, %v2983_v1  ;;  %v3183_v1 = vld [vmem:[%s8474_s12 + $0x28] sm:$0xff]  ;;  %vm8733_vm13 = vmmov %vm8725_vm9  ;;  %vm8736_vm9 = vcmask 1042432  }
 0xee0   :  { %v2758_v34 = vadd.f32 %v2756_v4, %v2741_v7  ;;  %v2978_v4 = vrot.slane %v7915_v38, 5  ;;  %v2988_v7 = vrot.slane %v2985_v24, 6  ;;  %v3182_v24 = vld [vmem:[%s8474_s12 + $0x20] sm:$0xff] }
 0xee2   :  { %v2759_v13 = vsel %vm8719_vm3, %v2754_v59, %v2758_v34  ;;  %v2980_v59 = vsel %vm8726_vm14, %v2976_v43, %v2978_v4  ;;  %v3185_v43 = vld [vmem:[%s8474_s12 + $0x38] sm:$0xff]  ;;  %vm8730_vm3 = vmmov %vm8720_vm4  ;;  %vm8737_vm14 = vcmask 1043456  }
 0xee3   :  { %6021 = vtanh.f32 %v2759_v13  ;;  %v4967_v20 = vmul.f32 -1.442695, %v2759_v13  ;;  %v5754_v4 = vpack.c.bf16 %v3185_v43, %v3183_v1  ;;  %vm8732_vm5 = vmmov %vm8730_vm3 }
 0xee5   :  { %6023 = vpow2.f32 %v4967_v20 }
 0xeed   :  { %v6022_v19 = vpop.eup %6021 }
 0xeee   :  { %2769 = vrot.lane.b32.xlu0 %v6022_v19, %s6367_s28 }
 0xeef   :  { %v6024_v18 = vpop.eup %6023 }
 0xef0   :  { %v2763_v0 = vadd.f32 1.0, %v6024_v18 }
 0xef2   :  { %6025 = vrcp.f32 %v2763_v0 }
 0xefc   :  { %v6026_v48 = vpop.eup %6025 }
 0xefd   :  { %v2767_v36 = vmul.f32 0.0, %v6026_v48 }
 0xf60   :  { %v2770_v11 = vpop.permute.xlu0 %2769 }
 0xf61   :  { %v2772_v50 = vmul.f32 %v6026_v48, %v2770_v11 }
 0xf63   :  { %2774 = vrot.lane.b32.xlu1 %v2772_v50, %s6365_s21 }
 0xfd5   :  { %v2775_v27 = vpop.permute.xlu1 %2774 }
 0xfd6   :  { %v2777_v39 = vadd.f32 %v2775_v27, %v2767_v36 }
 0xfd8   :  { %6027 = vtanh.f32 %v2777_v39 }
 0xfe2   :  { %v6028_v30 = vpop.eup %6027 }
 0xfe3   :  { %2780 = vrot.lane.b32.xlu0 %v6028_v30, %s6367_s28 }
0x1055   :  { %v2781_v41 = vpop.permute.xlu0 %2780 }
0x1056   :  { %v7937_v28 = vmul.f32 %v6026_v48, %v2781_v41 }
0x1058   :  { %2785 = vrot.lane.b32.xlu1 %v7937_v28, %s6365_s21 }
0x10ca   :  { %v7941_v58 = vpop.permute.xlu1 %2785 }
0x10cb   :  { %4968 = vmatmul.mubr.msk.f32.vlgmr.msra.gmra.mrb[16].mxu1 %vm8720_vm4, %v7941_v58  ;;  %vm8731_vm4 = vmmov %vm8730_vm3 }
0x10cc   :  { %5745 = vmatpush1.bf16.msra.mxu1 %v7879_v21  ;;  %3085 = vmatprep.mubr.f32.mxu1 %v8671_v25 }
0x10cd   :  { %5747 = vmatprep.subr.bf16.mxu1 %v7881_v51 }
0x10d0   :  { %5749 = vmatpush1.bf16.msra.mxu1 %v7885_v12 }
0x119e   :  { %v2855_v33 = vpop.f32.mrb[16].mxu1 }
0x119f   :  { %v2870_v21 = vadd.f32 %v2864_v46, %v2855_v33  ;;  %v2857_v45 = vpop.f32.mrb[17].mxu1 }
0x11a0   :  { %v2874_v9 = vadd.f32 %v2872_v35, %v2857_v45 }
0x11a2   :  { %v2875_v51 = vsel %vm8723_vm12, %v2870_v21, %v2874_v9  ;;  %vm8734_vm12 = vmmov %vm8730_vm3 }
0x11a3   :  { %6029 = vtanh.f32 %v2875_v51  ;;  %v4969_v22 = vmul.f32 -1.442695, %v2875_v51 }
0x11a5   :  { %6031 = vpow2.f32 %v4969_v22 }
0x11ad   :  { %v6030_v57 = vpop.eup %6029 }
0x11ae   :  { %2885 = vrot.lane.b32.xlu0 %v6030_v57, %s6367_s28 }
0x11af   :  { %v6032_v12 = vpop.eup %6031 }
0x11b0   :  { %v2879_v54 = vadd.f32 1.0, %v6032_v12 }
0x11b2   :  { %6033 = vrcp.f32 %v2879_v54 }
0x11bc   :  { %v6034_v49 = vpop.eup %6033 }
0x11bd   :  { %v2883_v44 = vmul.f32 %v6034_v49, %v2777_v39 }
0x1220   :  { %v2886_v37 = vpop.permute.xlu0 %2885 }
0x1221   :  { %v2888_v2 = vmul.f32 %v6034_v49, %v2886_v37  ;;  %v3179_v37 = vld [vmem:[%s8474_s12 + $0x8] sm:$0xff] }
0x1223   :  { %2890 = vrot.lane.b32.xlu1 %v2888_v2, %s6365_s21  ;;  %v3181_v2 = vld [vmem:[%s8474_s12 + $0x18] sm:$0xff] }
0x1295   :  { %v2891_v26 = vpop.permute.xlu1 %2890 }
0x1296   :  { %v2893_v53 = vadd.f32 %v2891_v26, %v2883_v44  ;;  %v3178_v44 = vld [vmem:[%s8474_s12] sm:$0xff]  ;;  %v5750_v26 = vpack.c.bf16 %v3181_v2, %v3179_v37 }
0x1298   :  { %6035 = vtanh.f32 %v2893_v53  ;;  %5751 = vmatprep.subr.bf16.mxu0 %v5750_v26 }
0x12a2   :  { %v6036_v47 = vpop.eup %6035 }
0x12a3   :  { %2896 = vrot.lane.b32.xlu0 %v6036_v47, %s6367_s28 }
0x1315   :  { %v2897_v23 = vpop.permute.xlu0 %2896 }
0x1316   :  { %v7959_v42 = vmul.f32 %v6034_v49, %v2897_v23 }
0x1318   :  { %2901 = vrot.lane.b32.xlu1 %v7959_v42, %s6365_s21  ;;  %v3140_v3 = vrot.slane %v7959_v42, 2 }
0x138a   :  { %v7963_v62 = vpop.permute.xlu1 %2901 }
0x138b   :  { %4970 = vmatmul.mubr.msk.f32.vlgmr.msra.gmra.mrb[44].mxu0 %vm8724_vm7, %v7963_v62  ;;  %vm8735_vm7 = vmmov %vm8729_vm6 }
0x138c   :  { %3273 = vmatprep.mubr.f32.mxu0 %v8671_v25 }
0x145e   :  { %v2971_v14 = vpop.f32.mrb[44].mxu0 }
0x145f   :  { %v2986_v34 = vadd.f32 %v2980_v59, %v2971_v14  ;;  %v2973_v13 = vpop.f32.mrb[45].mxu0  ;;  %v3184_v14 = vld [vmem:[%s8474_s12 + $0x30] sm:$0xff]  ;;  %v3187_v59 = vld [vmem:[%s8474_s12 + $0x48] sm:$0xff] }
0x1460   :  { %v2990_v19 = vadd.f32 %v2988_v7, %v2973_v13  ;;  %v5756_v42 = vpack.c.bf16 %v3184_v14, %v3182_v24  ;;  %v3189_v7 = vld [vmem:[%s8474_s12 + $0x58] sm:$0xff]  ;;  %v3186_v13 = vld [vmem:[%s8474_s12 + $0x40] sm:$0xff] }
0x1462   :  { %v2991_v20 = vsel %vm8727_vm11, %v2986_v34, %v2990_v19  ;;  %v5758_v34 = vpack.c.bf16 %v3189_v7, %v3187_v59  ;;  %v3188_v19 = vld [vmem:[%s8474_s12 + $0x50] sm:$0xff]  ;;  %vm8738_vm11 = vcmask 523264  }
0x1463   :  { %6037 = vtanh.f32 %v2991_v20  ;;  %v4971_v8 = vmul.f32 -1.442695, %v2991_v20  ;;  %v5760_v20 = vpack.c.bf16 %v3188_v19, %v3186_v13 }
0x1465   :  { %6039 = vpow2.f32 %v4971_v8  ;;  %v3193_v8 = vld [vmem:[%s8474_s12 + $0x78] sm:$0xff] }
0x146d   :  { %v6038_v18 = vpop.eup %6037 }
0x146e   :  { %3001 = vrot.lane.b32.xlu0 %v6038_v18, %s6367_s28  ;;  %v3191_v18 = vld [vmem:[%s8474_s12 + $0x68] sm:$0xff] }
0x146f   :  { %v6040_v0 = vpop.eup %6039 }
0x1470   :  { %v2995_v48 = vadd.f32 1.0, %v6040_v0 }
0x1472   :  { %6041 = vrcp.f32 %v2995_v48  ;;  %v5762_v48 = vpack.c.bf16 %v3193_v8, %v3191_v18 }
0x147c   :  { %v6042_v38 = vpop.eup %6041 }
0x147d   :  { %v2999_v36 = vmul.f32 %v6042_v38, %v2893_v53  ;;  %v3180_v53 = vld [vmem:[%s8474_s12 + $0x10] sm:$0xff] }
0x147e   :  { %v5752_v47 = vpack.c.bf16 %v3180_v53, %v3178_v44 }
0x1480   :  { %5753 = vmatpush1.bf16.msra.mxu0 %v5752_v47 }
0x1481   :  { %5755 = vmatprep.subr.bf16.mxu0 %v5754_v4 }
0x1484   :  { %5757 = vmatpush1.bf16.msra.mxu0 %v5756_v42  ;;  %v3194_v42 = vld [vmem:[#allocation9] sm:$0x3] }
0x1485   :  { %5759 = vmatprep.subr.bf16.mxu0 %v5758_v34  ;;  %v3199_v59 = vrot.slane %v3194_v42, %v2580_v16  ;;  %v3203_v7 = vrot.slane %v3194_v42, %v2584_v60 }
0x1488   :  { %5761 = vmatpush1.bf16.msra.mxu0 %v5760_v20 }
0x1489   :  { %5763 = vmatprep.subr.bf16.mxu0 %v5762_v48 }
0x14e0   :  { %v3002_v11 = vpop.permute.xlu0 %3001 }
0x14e1   :  { %v3004_v50 = vmul.f32 %v6042_v38, %v3002_v11  ;;  %v3192_v11 = vld [vmem:[%s8474_s12 + $0x70] sm:$0xff] }
0x14e3   :  { %3006 = vrot.lane.b32.xlu1 %v3004_v50, %s6365_s21  ;;  %v3281_v50 = vld [vmem:[#allocation10 + $0x8] sm:$0xff] }
0x1555   :  { %v3007_v27 = vpop.permute.xlu1 %3006 }
0x1556   :  { %v3009_v39 = vadd.f32 %v3007_v27, %v2999_v36 }
0x1558   :  { %6043 = vtanh.f32 %v3009_v39 }
0x1562   :  { %v6044_v30 = vpop.eup %6043 }
0x1563   :  { %3012 = vrot.lane.b32.xlu0 %v6044_v30, %s6367_s28  ;;  %v3280_v30 = vld [vmem:[#allocation10] sm:$0xff] }
0x15d5   :  { %v3013_v41 = vpop.permute.xlu0 %3012 }
0x15d6   :  { %v3015_v55 = vmul.f32 %v6042_v38, %v3013_v41  ;;  %v3190_v38 = vld [vmem:[%s8474_s12 + $0x60] sm:$0xff]  ;;  %v3282_v41 = vld [vmem:[#allocation10 + $0x10] sm:$0xff] }
0x15d7   :  { %v5764_v27 = vpack.c.bf16 %v3192_v11, %v3190_v38 }
0x15d8   :  { %3017 = vrot.lane.b32.xlu1 %v3015_v55, %s6365_s21  ;;  %v3134_v40 = vrot.slane %v3015_v55, 2 }
0x15d9   :  { %5765 = vmatpush1.bf16.msra.mxu0 %v5764_v27 }
0x164a   :  { %v7979_v52 = vpop.permute.xlu1 %3017 }
0x164b   :  { %4972 = vmatmul.mubr.msk.f32.vlgmr.msra.gmra.mrb[18].mxu1 %vm8728_vm8, %v7979_v52  ;;  %vm8739_vm8 = vmmov %vm8733_vm13 }
0x164c   :  { %3352 = vmatprep.mubr.f32.mxu1 %v8671_v25 }
0x171e   :  { %v3087_v17 = vpop.f32.mrb[18].mxu1 }
0x171f   :  { %v3096_v6 = vadd.f32 %v7931_v61, %v3087_v17  ;;  %v3089_v33 = vpop.f32.mrb[19].mxu1  ;;  %v8041_v17 = vpack.c.bf16 %v3282_v41, %v3280_v30 }
0x1720   :  { %v3100_v46 = vadd.f32 %v3098_v10, %v3089_v33  ;;  %v3287_v33 = vld [vmem:[#allocation10 + $0x38] sm:$0xff] }
0x1722   :  { %v3101_v35 = vsel %vm8729_vm6, %v3096_v6, %v3100_v46  ;;  %v3285_v6 = vld [vmem:[#allocation10 + $0x28] sm:$0xff]  ;;  %v3284_v46 = vld [vmem:[#allocation10 + $0x20] sm:$0xff]  ;;  %vm8740_vm6 = vmmov %vm8739_vm8 }
0x1723   :  { %6045 = vtanh.f32 %v3101_v35  ;;  %v4973_v45 = vmul.f32 -1.442695, %v3101_v35  ;;  %v8046_v35 = vpack.c.bf16 %v3287_v33, %v3285_v6 }
0x1725   :  { %6047 = vpow2.f32 %v4973_v45 }
0x172d   :  { %v6046_v21 = vpop.eup %6045 }
0x172e   :  { %3111 = vrot.lane.b32.xlu0 %v6046_v21, %s6367_s28  ;;  %v3286_v21 = vld [vmem:[#allocation10 + $0x30] sm:$0xff] }
0x172f   :  { %v6048_v9 = vpop.eup %6047  ;;  %v8048_v45 = vpack.c.bf16 %v3286_v21, %v3284_v46 }
0x1730   :  { %v3105_v51 = vadd.f32 1.0, %v6048_v9  ;;  %v3148_v9 = vrot.slane %v7937_v28, 2 }
0x1732   :  { %6049 = vrcp.f32 %v3105_v51 }
0x173c   :  { %v6050_v57 = vpop.eup %6049 }
0x173d   :  { %v3109_v61 = vmul.f32 %v6050_v57, %v3009_v39  ;;  %v3283_v39 = vld [vmem:[#allocation10 + $0x18] sm:$0xff] }
0x173e   :  { %v5766_v55 = vpack.c.bf16 %v3283_v39, %v3281_v50 }
0x1740   :  { %5767 = vmatprep.subr.bf16.mxu1 %v5766_v55  ;;  %5783 = vmatprep.subr.bf16.mxu0 %v5766_v55 }
0x1741   :  { %5769 = vmatpush1.bf16.msra.mxu1 %v8041_v17 }
0x1742   :  { %5771 = vmatprep.subr.bf16.mxu1 %v8046_v35 }
0x1745   :  { %5773 = vmatpush1.bf16.msra.mxu1 %v8048_v45 }
0x1746   :  { %5775 = vmatprep.subr.bf16.mxu1 %v5766_v55 }
0x1748   :  { %3353 = vmatmul.mubr.f32.vlgmr.msra.gmra.mrb[20].mxu1 %v8671_v25 }
0x1749   :  { %5777 = vmatpush1.bf16.msra.mxu1 %v8041_v17  ;;  %3468 = vmatprep.mubr.f32.mxu1 %v8671_v25 }
0x174a   :  { %5779 = vmatprep.subr.bf16.mxu1 %v8046_v35 }
0x174d   :  { %5781 = vmatpush1.bf16.msra.mxu1 %v8048_v45 }
0x174e   :  { %5791 = vmatprep.subr.bf16.mxu1 %v5766_v55 }
0x17a0   :  { %v3112_v22 = vpop.permute.xlu0 %3111 }
0x17a1   :  { %v3114_v12 = vmul.f32 %v6050_v57, %v3112_v22 }
0x17a3   :  { %3116 = vrot.lane.b32.xlu1 %v3114_v12, %s6365_s21 }
0x17a7   :  { %3135 = vrot.lane.b32.xlu1 %v3134_v40, %s6367_s28 }
0x1815   :  { %v3117_v54 = vpop.permute.xlu1 %3116 }
0x1816   :  { %v3119_v49 = vadd.f32 %v3117_v54, %v3109_v61 }
0x1818   :  { %6051 = vtanh.f32 %v3119_v49 }
0x1819   :  { %v3136_v51 = vpop.permute.xlu1 %3135 }
0x181a   :  { %v3138_v28 = vsel %vm8730_vm3, %v7963_v62, %v3136_v51  ;;  %vm8741_vm3 = vmmov %vm8740_vm6 }
0x181b   :  { %v3154_v40 = vrot.slane %v3138_v28, 7  ;;  %v3165_v47 = vrot.slane %v3138_v28, 4  ;;  %v3354_v24 = vpop.f32.mrb[20].mxu1 }
0x181c   :  { %v3356_v14 = vpop.f32.mrb[21].mxu1 }
0x1822   :  { %v6052_v23 = vpop.eup %6051 }
0x1823   :  { %3122 = vrot.lane.b32.xlu0 %v6052_v23, %s6367_s28 }
0x1827   :  { %3141 = vrot.lane.b32.xlu0 %v3140_v3, %s6367_s28 }
0x1895   :  { %v3123_v0 = vpop.permute.xlu0 %3122 }
0x1896   :  { %v3125_v36 = vmul.f32 %v6050_v57, %v3123_v0 }
0x1898   :  { %v3128_v10 = vrot.slane %v3125_v36, 2  ;;  %3145 = vrot.lane.b32.xlu0 %v3125_v36, %s6365_s21 }
0x1899   :  { %v3142_v57 = vpop.permute.xlu0 %3141 }
0x189a   :  { %3129 = vrot.lane.b32.xlu1 %v3128_v10, %s6367_s28  ;;  %v3144_v61 = vsel %vm8732_vm5, %v7979_v52, %v3142_v57  ;;  %vm8743_vm5 = vmmov %vm8735_vm7 }
0x189b   :  { %v3157_v2 = vrot.slane %v3144_v61, 6  ;;  %v3167_v3 = vrot.slane %v3144_v61, 3 }
0x189e   :  { %3149 = vrot.lane.b32.xlu1 %v3148_v9, %s6367_s28 }
0x190a   :  { %v3146_v54 = vpop.permute.xlu0 %3145 }
0x190c   :  { %v3130_v22 = vpop.permute.xlu1 %3129 }
0x190d   :  { %v3132_v12 = vsel %vm8731_vm4, %v7941_v58, %v3130_v22  ;;  %vm8742_vm4 = vmmov %vm8741_vm3 }
0x190e   :  { %v3171_v49 = vsel %vm8733_vm13, %v3132_v12, %v3154_v40  ;;  %v3163_v53 = vrot.slane %v3132_v12, 5  ;;  %vm8744_vm13 = vmmov %vm8734_vm12 }
0x190f   :  { %v3172_v62 = vsel %vm8735_vm7, %v3171_v49, %v3157_v2  ;;  %vm8746_vm7 = vmmov %vm8741_vm3 }
0x1910   :  { %v3150_v37 = vpop.permute.xlu1 %3149 }
0x1911   :  { %v3152_v44 = vsel %vm8734_vm12, %v3146_v54, %v3150_v37  ;;  %vm8745_vm12 = vmmov %vm8741_vm3 }
0x1912   :  { %v3160_v26 = vrot.slane %v3152_v44, 5  ;;  %v3169_v1 = vrot.slane %v3152_v44, 2 }
0x1914   :  { %v3173_v23 = vsel %vm8736_vm9, %v3172_v62, %v3160_v26  ;;  %vm8747_vm9 = vmmov %vm8743_vm5 }
0x1915   :  { %v3174_v58 = vsel %vm8737_vm14, %v3173_v23, %v3163_v53  ;;  %vm8748_vm14 = vmmov %vm8744_vm13 }
0x1916   :  { %v3175_v52 = vsel %vm333_vm2, %v3174_v58, %v3165_v47 }
0x1917   :  { %v3176_v43 = vsel %vm283_vm0, %v3175_v52, %v3167_v3 }
0x1918   :  { %v3177_v4 = vsel %vm233_vm1, %v3176_v43, %v3169_v1 }
0x1919   :  { %4974 = vmatmul.mubr.msk.f32.vlgmr.msra.gmra.mrb[46].mxu0 %vm8738_vm11, %v3177_v4  ;;  %vm8749_vm11 = vmmov %vm8741_vm3 }
0x191a   :  { %5785 = vmatpush1.bf16.msra.mxu0 %v8041_v17  ;;  %3584 = vmatprep.mubr.f32.mxu0 %v8671_v25 }
0x191b   :  { %5787 = vmatprep.subr.bf16.mxu0 %v8046_v35 }
0x191e   :  { %5789 = vmatpush1.bf16.msra.mxu0 %v8048_v45 }
0x191f   :  { %5798 = vmatprep.subr.bf16.mxu0 %v8628_v32 }
0x19ec   :  { %v3275_v34 = vpop.f32.mrb[46].mxu0 }
0x19ed   :  { %v8083_v13 = vadd.f32 %v3275_v34, %v3199_v59  ;;  %v3277_v19 = vpop.f32.mrb[47].mxu0 }
0x19ee   :  { %v8085_v20 = vadd.f32 %v3277_v19, %v3203_v7 }
0x19ef   :  { %v3360_v18 = vrot.slane %v8083_v13, 3  ;;  %v3707_v60 = vrot.slane %v8083_v13, 6  ;;  %v3475_v61 = vrot.slane %v8083_v13, 1  ;;  %v3477_v54 = vrot.slane %v8083_v13, 4 }
0x19f0   :  { %v3364_v8 = vrot.slane %v8085_v20, 3  ;;  %v3366_v0 = vrot.slane %v8085_v20, 6  ;;  %v3480_v12 = vrot.slane %v8085_v20, 2  ;;  %v3482_v40 = vrot.slane %v8085_v20, 5 }
0x19f1   :  { %v3362_v48 = vsel %vm8739_vm8, %v8083_v13, %v3360_v18  ;;  %v8099_v36 = vsel %vm8742_vm4, %v3360_v18, %v3707_v60  ;;  %v3596_v7 = vrot.slane %v8085_v20, 1  ;;  %v3598_v34 = vrot.slane %v8085_v20, 4  ;;  %vm8750_vm8 = vmmov %vm8741_vm3 }
0x19f2   :  { %v3369_v38 = vadd.f32 %v3362_v48, %v3354_v24  ;;  %v3368_v16 = vsel %vm8740_vm6, %v3364_v8, %v3366_v0  ;;  %v8096_v11 = vsel %vm8741_vm3, %v8085_v20, %v3364_v8  ;;  %v3484_v49 = vsel %vm8745_vm12, %v3480_v12, %v3482_v40  ;;  %vm8751_vm6 = vmmov %vm8743_vm5 }
0x19f3   :  { %v3371_v56 = vrot.slane %v3368_v16, 6  ;;  %v3487_v2 = vrot.slane %v3484_v49, 6  ;;  %v3591_v19 = vrot.slane %v8083_v13, 2  ;;  %v3593_v18 = vrot.slane %v8083_v13, 5  ;;  %vm8752_vm3 = vmmov %vm8744_vm13 }
0x19f4   :  { %v3600_v8 = vsel %vm8749_vm11, %v3596_v7, %v3598_v34  ;;  %v3713_v12 = vrot.slane %v8096_v11, 6  ;;  %vm8753_vm4 = vmmov %vm8743_vm5  ;;  %vm8759_vm11 = vcmask 1042432  }
0x19f5   :  { %v3373_v50 = vadd.f32 %v3371_v56, %v3356_v14  ;;  %v3595_v48 = vsel %vm8750_vm8, %v3591_v19, %v3593_v18  ;;  %v3799_v19 = vld [vmem:[#allocation12 + $0x30] sm:$0xff]  ;;  %v3800_v18 = vld [vmem:[#allocation12 + $0x38] sm:$0xff]  ;;  %vm8756_vm12 = vmmov %vm8752_vm3  ;;  %vm8760_vm8 = vcmask 1043456  }
0x19f7   :  { %v3374_v27 = vsel %vm8743_vm5, %v3369_v38, %v3373_v50  ;;  %v3603_v38 = vrot.slane %v3600_v8, 6  ;;  %vm8754_vm5 = vmmov %vm8752_vm3 }
0x19f8   :  { %6053 = vtanh.f32 %v3374_v27  ;;  %v4975_v30 = vmul.f32 -1.442695, %v3374_v27 }
0x19fa   :  { %6055 = vpow2.f32 %v4975_v30 }
0x1a02   :  { %v6054_v39 = vpop.eup %6053 }
0x1a03   :  { %3384 = vrot.lane.b32.xlu0 %v6054_v39, %s6367_s28 }
0x1a04   :  { %v6056_v41 = vpop.eup %6055 }
0x1a05   :  { %v3378_v55 = vadd.f32 1.0, %v6056_v41 }
0x1a07   :  { %6057 = vrcp.f32 %v3378_v55 }
0x1a11   :  { %v6058_v10 = vpop.eup %6057 }
0x1a12   :  { %v3382_v46 = vmul.f32 0.0, %v6058_v10 }
0x1a75   :  { %v3385_v6 = vpop.permute.xlu0 %3384 }
0x1a76   :  { %v3387_v33 = vmul.f32 %v6058_v10, %v3385_v6 }
0x1a78   :  { %3389 = vrot.lane.b32.xlu1 %v3387_v33, %s6365_s21 }
0x1aea   :  { %v3390_v21 = vpop.permute.xlu1 %3389 }
0x1aeb   :  { %v3392_v9 = vadd.f32 %v3390_v21, %v3382_v46 }
0x1aed   :  { %6059 = vtanh.f32 %v3392_v9 }
0x1af7   :  { %v6060_v51 = vpop.eup %6059 }
0x1af8   :  { %3395 = vrot.lane.b32.xlu0 %v6060_v51, %s6367_s28 }
0x1b6a   :  { %v3396_v28 = vpop.permute.xlu0 %3395 }
0x1b6b   :  { %v8105_v57 = vmul.f32 %v6058_v10, %v3396_v28 }
0x1b6d   :  { %3400 = vrot.lane.b32.xlu1 %v8105_v57, %s6365_s21 }
0x1bdf   :  { %v8109_v22 = vpop.permute.xlu1 %3400 }
0x1be0   :  { %4976 = vmatmul.mubr.msk.f32.vlgmr.msra.gmra.mrb[22].mxu1 %vm8744_vm13, %v8109_v22  ;;  %vm8755_vm13 = vmmov %vm8752_vm3 }
0x1be1   :  { %5793 = vmatpush1.bf16.msra.mxu1 %v8041_v17  ;;  %3700 = vmatprep.mubr.f32.mxu1 %v8671_v25  ;;  %v3479_v17 = vsel %vm8746_vm7, %v3475_v61, %v3477_v54 }
0x1be2   :  { %5795 = vmatprep.subr.bf16.mxu1 %v8046_v35 }
0x1be5   :  { %5797 = vmatpush1.bf16.msra.mxu1 %v8048_v45 }
0x1be6   :  { %5810 = vmatprep.subr.bf16.mxu1 %v8628_v32 }
0x1cb3   :  { %v3470_v37 = vpop.f32.mrb[22].mxu1 }
0x1cb4   :  { %v3485_v44 = vadd.f32 %v3479_v17, %v3470_v37  ;;  %v3472_v35 = vpop.f32.mrb[23].mxu1 }
0x1cb5   :  { %v3489_v26 = vadd.f32 %v3487_v2, %v3472_v35 }
0x1cb7   :  { %v3490_v45 = vsel %vm8747_vm9, %v3485_v44, %v3489_v26  ;;  %vm8757_vm9 = vmmov %vm8752_vm3 }
0x1cb8   :  { %6061 = vtanh.f32 %v3490_v45  ;;  %v4977_v62 = vmul.f32 -1.442695, %v3490_v45 }
0x1cba   :  { %6063 = vpow2.f32 %v4977_v62 }
0x1cc2   :  { %v6062_v53 = vpop.eup %6061 }
0x1cc3   :  { %3500 = vrot.lane.b32.xlu0 %v6062_v53, %s6367_s28 }
0x1cc4   :  { %v6064_v47 = vpop.eup %6063 }
0x1cc5   :  { %v3494_v23 = vadd.f32 1.0, %v6064_v47  ;;  %v3793_v47 = vld [vmem:[#allocation12] sm:$0xff] }
0x1cc7   :  { %6065 = vrcp.f32 %v3494_v23  ;;  %v3794_v23 = vld [vmem:[#allocation12 + $0x8] sm:$0xff] }
0x1cd1   :  { %v6066_v3 = vpop.eup %6065 }
0x1cd2   :  { %v3498_v52 = vmul.f32 %v6066_v3, %v3392_v9 }
0x1d35   :  { %v3501_v58 = vpop.permute.xlu0 %3500 }
0x1d36   :  { %v3503_v1 = vmul.f32 %v6066_v3, %v3501_v58 }
0x1d38   :  { %3505 = vrot.lane.b32.xlu1 %v3503_v1, %s6365_s21 }
0x1daa   :  { %v3506_v43 = vpop.permute.xlu1 %3505 }
0x1dab   :  { %v3508_v4 = vadd.f32 %v3506_v43, %v3498_v52  ;;  %v3795_v52 = vld [vmem:[#allocation12 + $0x10] sm:$0xff]  ;;  %v3796_v43 = vld [vmem:[#allocation12 + $0x18] sm:$0xff] }
0x1dad   :  { %6067 = vtanh.f32 %v3508_v4 }
0x1db7   :  { %v6068_v24 = vpop.eup %6067 }
0x1db8   :  { %3511 = vrot.lane.b32.xlu0 %v6068_v24, %s6367_s28  ;;  %v3797_v24 = vld [vmem:[#allocation12 + $0x20] sm:$0xff] }
0x1e2a   :  { %v3512_v14 = vpop.permute.xlu0 %3511 }
0x1e2b   :  { %v8128_v42 = vmul.f32 %v6066_v3, %v3512_v14  ;;  %v5799_v3 = vpack.c.bf16 %v3794_v23, %v3793_v47  ;;  %v3798_v14 = vld [vmem:[#allocation12 + $0x28] sm:$0xff]  ;;  %v3904_v47 = vld [vmem:[%s8479_s17 + $0x58] sm:$0xff] }
0x1e2c   :  { %v5805_v7 = vpack.c.bf16 %v3798_v14, %v3797_v24 }
0x1e2d   :  { %3516 = vrot.lane.b32.xlu1 %v8128_v42, %s6365_s21  ;;  %v3755_v1 = vrot.slane %v8128_v42, 2 }
0x1e9f   :  { %v8132_v59 = vpop.permute.xlu1 %3516 }
0x1ea0   :  { %4978 = vmatmul.mubr.msk.f32.vlgmr.msra.gmra.mrb[48].mxu0 %vm8748_vm14, %v8132_v59  ;;  %vm8758_vm14 = vmmov %vm8753_vm4 }
0x1ea1   :  { %5449 = vmatprep.mubr.msk.f32.mxu0 %vm6361_vm15, %v8671_v25  ;;  %5800 = vmatpush3.bf16.msra.mxu0 %v5799_v3  ;;  %v4982_v3 = vld [vmem:[%s8478_s16] ss:$0 sm:$0xff] }
0x1ea2   :  { %5801 = vmatprep.subr.bf16.mxu0 %v8628_v32 }
0x1f73   :  { %v3586_v0 = vpop.f32.mrb[48].mxu0 }
0x1f74   :  { %v3601_v16 = vadd.f32 %v3595_v48, %v3586_v0  ;;  %v3588_v56 = vpop.f32.mrb[49].mxu0  ;;  %v5808_v0 = vpack.c.bf16 %v3800_v18, %v3799_v19  ;;  %v3763_v48 = vrot.slane %v8105_v57, 2  ;;  %v3995_v18 = vld [vmem:[#allocation13] sm:$0xff] }
0x1f75   :  { %v3605_v60 = vadd.f32 %v3603_v38, %v3588_v56 }
0x1f77   :  { %v3606_v50 = vsel %vm8751_vm6, %v3601_v16, %v3605_v60  ;;  %vm8761_vm6 = vcmask 523264  }
0x1f78   :  { %6069 = vtanh.f32 %v3606_v50  ;;  %v4979_v20 = vmul.f32 -1.442695, %v3606_v50 }
0x1f7a   :  { %6071 = vpow2.f32 %v4979_v20 }
0x1f82   :  { %v6070_v27 = vpop.eup %6069 }
0x1f83   :  { %3616 = vrot.lane.b32.xlu0 %v6070_v27, %s6367_s28 }
0x1f84   :  { %v6072_v39 = vpop.eup %6071 }
0x1f85   :  { %v3610_v30 = vadd.f32 1.0, %v6072_v39 }
0x1f87   :  { %6073 = vrcp.f32 %v3610_v30 }
0x1f91   :  { %v6074_v13 = vpop.eup %6073 }
0x1f92   :  { %v3614_v10 = vmul.f32 %v6074_v13, %v3508_v4  ;;  %v5802_v4 = vpack.c.bf16 %v3796_v43, %v3795_v52 }
0x1f94   :  { %5803 = vmatpush3.bf16.msra.mxu0 %v5802_v4 }
0x1f95   :  { %5804 = vmatprep.subr.bf16.mxu0 %v8628_v32 }
0x1f98   :  { %5806 = vmatpush3.bf16.msra.mxu0 %v5805_v7 }
0x1f99   :  { %5807 = vmatprep.subr.bf16.mxu0 %v8628_v32 }
0x1f9c   :  { %5809 = vmatpush3.bf16.msra.mxu0 %v5808_v0  ;;  %v3997_v0 = vld [vmem:[#allocation13 + $0x10] sm:$0xff] }
0x1f9d   :  { %5828 = vmatprep.subr.bf16.mxu0 %v8628_v32 }
0x1ff5   :  { %v3617_v41 = vpop.permute.xlu0 %3616 }
0x1ff6   :  { %v3619_v55 = vmul.f32 %v6074_v13, %v3617_v41 }
0x1ff8   :  { %3621 = vrot.lane.b32.xlu1 %v3619_v55, %s6365_s21 }
0x206a   :  { %v3622_v6 = vpop.permute.xlu1 %3621 }
0x206b   :  { %v3624_v33 = vadd.f32 %v3622_v6, %v3614_v10 }
0x206d   :  { %6075 = vtanh.f32 %v3624_v33 }
0x2077   :  { %v6076_v46 = vpop.eup %6075 }
0x2078   :  { %3627 = vrot.lane.b32.xlu0 %v6076_v46, %s6367_s28 }
0x20ea   :  { %v3628_v21 = vpop.permute.xlu0 %3627 }
0x20eb   :  { %v3630_v9 = vmul.f32 %v6074_v13, %v3628_v21 }
0x20ed   :  { %3632 = vrot.lane.b32.xlu1 %v3630_v9, %s6365_s21  ;;  %v3749_v11 = vrot.slane %v3630_v9, 2 }
0x215f   :  { %v8149_v51 = vpop.permute.xlu1 %3632 }
0x2160   :  { %4980 = vmatmul.mubr.msk.f32.vlgmr.msra.gmra.mrb[24].mxu1 %vm8752_vm3, %v8149_v51 }
0x2161   :  { %5476 = vmatprep.mubr.msk.f32.mxu1 %vm6361_vm15, %v8671_v25 }
0x2233   :  { %v3702_v28 = vpop.f32.mrb[24].mxu1 }
0x2234   :  { %v3711_v40 = vadd.f32 %v8099_v36, %v3702_v28  ;;  %v3704_v61 = vpop.f32.mrb[25].mxu1 }
0x2235   :  { %v3715_v54 = vadd.f32 %v3713_v12, %v3704_v61  ;;  %v3893_v12 = vld [vmem:[%s8479_s17] sm:$0xff]  ;;  %v3895_v61 = vld [vmem:[%s8479_s17 + $0x10] sm:$0xff] }
0x2237   :  { %v3716_v49 = vsel %vm8753_vm4, %v3711_v40, %v3715_v54  ;;  %v3894_v40 = vld [vmem:[%s8479_s17 + $0x8] sm:$0xff]  ;;  %vm8762_vm4 = vmmov %vm8761_vm6 }
0x2238   :  { %6077 = vtanh.f32 %v3716_v49  ;;  %v4981_v17 = vmul.f32 -1.442695, %v3716_v49  ;;  %v8198_v54 = vpack.c.bf16 %v3894_v40, %v3893_v12  ;;  %v3896_v49 = vld [vmem:[%s8479_s17 + $0x18] sm:$0xff] }
0x223a   :  { %6079 = vpow2.f32 %v4981_v17  ;;  %5812 = vmatpush3.bf16.msra.mxu1 %v8198_v54  ;;  %v3897_v17 = vld [vmem:[%s8479_s17 + $0x20] sm:$0xff] }
0x223b   :  { %5813 = vmatprep.subr.bf16.mxu1 %v8628_v32 }
0x2242   :  { %v6078_v37 = vpop.eup %6077 }
0x2243   :  { %3726 = vrot.lane.b32.xlu0 %v6078_v37, %s6367_s28  ;;  %v8204_v37 = vpack.c.bf16 %v3896_v49, %v3895_v61 }
0x2244   :  { %v6080_v2 = vpop.eup %6079 }
0x2245   :  { %v3720_v44 = vadd.f32 1.0, %v6080_v2  ;;  %v3898_v2 = vld [vmem:[%s8479_s17 + $0x28] sm:$0xff]  ;;  %5815 = vmatpush3.bf16.msra.mxu1 %v8204_v37 }
0x2246   :  { %5816 = vmatprep.subr.bf16.mxu1 %v8628_v32 }
0x2247   :  { %6081 = vrcp.f32 %v3720_v44  ;;  %v8214_v44 = vpack.c.bf16 %v3898_v2, %v3897_v17  ;;  %v4161_v17 = vld [vmem:[#allocation15] sm:$0xff]  ;;  %v4162_v2 = vld [vmem:[#allocation15 + $0x8] sm:$0xff] }
0x2249   :  { %5818 = vmatpush3.bf16.msra.mxu1 %v8214_v44 }
0x224a   :  { %5819 = vmatprep.subr.bf16.mxu1 %v8628_v32 }
0x2251   :  { %v6082_v35 = vpop.eup %6081 }
0x2252   :  { %v3724_v36 = vmul.f32 %v6082_v35, %v3624_v33 }
0x22b5   :  { %v3727_v26 = vpop.permute.xlu0 %3726 }
0x22b6   :  { %v3729_v45 = vmul.f32 %v6082_v35, %v3727_v26  ;;  %v3900_v26 = vld [vmem:[%s8479_s17 + $0x38] sm:$0xff] }
0x22b8   :  { %3731 = vrot.lane.b32.xlu1 %v3729_v45, %s6365_s21 }
0x22bc   :  { %3750 = vrot.lane.b32.xlu1 %v3749_v11, %s6367_s28  ;;  %v3901_v11 = vld [vmem:[%s8479_s17 + $0x40] sm:$0xff] }
0x232a   :  { %v3732_v53 = vpop.permute.xlu1 %3731 }
0x232b   :  { %v3734_v62 = vadd.f32 %v3732_v53, %v3724_v36  ;;  %v3902_v36 = vld [vmem:[%s8479_s17 + $0x48] sm:$0xff] }
0x232c   :  { %v8234_v53 = vpack.c.bf16 %v3902_v36, %v3901_v11  ;;  %v4164_v11 = vld [vmem:[#allocation15 + $0x18] sm:$0xff] }
0x232d   :  { %6083 = vtanh.f32 %v3734_v62  ;;  %v3903_v62 = vld [vmem:[%s8479_s17 + $0x50] sm:$0xff] }
0x232e   :  { %v3751_v38 = vpop.permute.xlu1 %3750  ;;  %v8244_v23 = vpack.c.bf16 %v3904_v47, %v3903_v62 }
0x232f   :  { %v3753_v16 = vsel %vm8754_vm5, %v8132_v59, %v3751_v38  ;;  %vm8763_vm5 = vcmask 785408   ;;  %v4984_v38 = vld [vmem:[%s8480_s18] ss:$0 sm:$0xff] }
0x2330   :  { %v3769_v27 = vrot.slane %v3753_v16, 7  ;;  %v3780_v6 = vrot.slane %v3753_v16, 4 }
0x2337   :  { %v6084_v58 = vpop.eup %6083 }
0x2338   :  { %3737 = vrot.lane.b32.xlu0 %v6084_v58, %s6367_s28 }
0x233c   :  { %3756 = vrot.lane.b32.xlu0 %v3755_v1, %s6367_s28 }
0x23aa   :  { %v3738_v34 = vpop.permute.xlu0 %3737 }
0x23ab   :  { %v3740_v8 = vmul.f32 %v6082_v35, %v3738_v34  ;;  %v3899_v35 = vld [vmem:[%s8479_s17 + $0x30] sm:$0xff] }
0x23ac   :  { %v8224_v45 = vpack.c.bf16 %v3900_v26, %v3899_v35  ;;  %v4163_v35 = vld [vmem:[#allocation15 + $0x10] sm:$0xff]  ;;  %v8286_v26 = vpack.c.bf16 %v4162_v2, %v4161_v17 }
0x23ad   :  { %v3743_v42 = vrot.slane %v3740_v8, 2  ;;  %3760 = vrot.lane.b32.xlu0 %v3740_v8, %s6365_s21  ;;  %v3996_v8 = vld [vmem:[#allocation13 + $0x8] sm:$0xff]  ;;  %v8288_v36 = vpack.c.bf16 %v4164_v11, %v4163_v35 }
0x23ae   :  { %v3757_v56 = vpop.permute.xlu0 %3756  ;;  %5821 = vmatpush3.bf16.msra.mxu1 %v8224_v45 }
0x23af   :  { %3744 = vrot.lane.b32.xlu1 %v3743_v42, %s6367_s28  ;;  %v3759_v20 = vsel %vm8756_vm12, %v8149_v51, %v3757_v56  ;;  %5822 = vmatprep.subr.bf16.mxu1 %v8628_v32  ;;  %v8260_v42 = vpack.c.bf16 %v3996_v8, %v3995_v18  ;;  %vm8765_vm12 = vmmov %vm8758_vm14 }
0x23b0   :  { %v3772_v57 = vrot.slane %v3759_v20, 6  ;;  %v3782_v46 = vrot.slane %v3759_v20, 3 }
0x23b2   :  { %5824 = vmatpush3.bf16.msra.mxu1 %v8234_v53 }
0x23b3   :  { %3764 = vrot.lane.b32.xlu1 %v3763_v48, %s6367_s28  ;;  %5825 = vmatprep.subr.bf16.mxu1 %v8628_v32 }
0x23b6   :  { %5827 = vmatpush3.bf16.msra.mxu1 %v8244_v23 }
0x241f   :  { %v3761_v39 = vpop.permute.xlu0 %3760 }
0x2421   :  { %v3745_v60 = vpop.permute.xlu1 %3744 }
0x2422   :  { %v3747_v50 = vsel %vm8755_vm13, %v8109_v22, %v3745_v60  ;;  %vm8764_vm13 = vmmov %vm8752_vm3 }
0x2423   :  { %v3786_v30 = vsel %vm8746_vm7, %v3747_v50, %v3769_v27  ;;  %v3778_v10 = vrot.slane %v3747_v50, 5 }
0x2424   :  { %v3787_v59 = vsel %vm8758_vm14, %v3786_v30, %v3772_v57  ;;  %vm8767_vm14 = vmmov %vm8765_vm12 }
0x2425   :  { %v3765_v13 = vpop.permute.xlu1 %3764 }
0x2426   :  { %v3767_v41 = vsel %vm8757_vm9, %v3761_v39, %v3765_v13  ;;  %vm8766_vm9 = vmmov %vm8746_vm7 }
0x2427   :  { %v3775_v55 = vrot.slane %v3767_v41, 5  ;;  %v3784_v21 = vrot.slane %v3767_v41, 2 }
0x2429   :  { %v3788_v33 = vsel %vm8759_vm11, %v3787_v59, %v3775_v55 }
0x242a   :  { %v3789_v22 = vsel %vm8760_vm8, %v3788_v33, %v3778_v10 }
0x242b   :  { %v3790_v9 = vsel %vm333_vm2, %v3789_v22, %v3780_v6  ;;  %v4988_v6 = vld [vmem:[%s8482_s20] ss:$0 sm:$0xff] }
0x242c   :  { %v3791_v51 = vsel %vm283_vm0, %v3790_v9, %v3782_v46 }
0x242d   :  { %v3792_v28 = vsel %vm233_vm1, %v3791_v51, %v3784_v21 }
0x242e   :  { %5450 = vmatmul.mubr.msk.f32.vlgmr.msra.gmra.mrb[50].mxu0 %vm8761_vm6, %v3792_v28  ;;  %vm8768_vm6 = vmmov %vm8746_vm7 }
0x242f   :  { %5487 = vmatprep.mubr.msk.f32.mxu0 %vm6361_vm15, %v8671_v25  ;;  %5830 = vmatpush3.bf16.msra.mxu0 %v8260_v42 }
0x2430   :  { %5831 = vmatprep.subr.bf16.mxu0 %v8628_v32 }
0x2501   :  { %v3877_v58 = vpop.f32.mrb[50].mxu0 }
0x2502   :  { %v8251_v1 = vadd.f32 %v4982_v3, %v3877_v58  ;;  %v5451_v52 = vpop.f32.mrb[51].mxu0 }
0x2504   :  { %v3881_v43 = vadd.f32 %v8251_v1, %v7892_v5  ;;  %v3998_v5 = vld [vmem:[#allocation13 + $0x18] sm:$0xff] }
0x2505   :  { %v8263_v48 = vpack.c.bf16 %v3998_v5, %v3997_v0 }
0x2506   :  { %v3883_v4 = vrot.slane %v3881_v43, 1  ;;  %v3887_v24 = vrot.slane %v3881_v43, 2 }
0x2507   :  { %5833 = vmatpush3.bf16.msra.mxu0 %v8263_v48 }
0x2508   :  { %3888 = vrot.lane.b32.xlu1 %v3887_v24, %s6367_s28  ;;  %3884 = vrot.lane.b32.xlu0 %v3883_v4, %s6365_s21 }
0x2509   :  { %5835 = vmatprep.subr.bf16.mxu0 %v8286_v26 }
0x257a   :  { %v3889_v14 = vpop.permute.xlu1 %3888  ;;  %v3885_v7 = vpop.permute.xlu0 %3884 }
0x257b   :  { %v3891_v34 = vsel %vm8752_vm3, %v3881_v43, %v3885_v7  ;;  %vm8770_vm3 = vmmov %vm8765_vm12 }
0x257c   :  { %v3892_v19 = vsel %vm8762_vm4, %v3891_v34, %v3889_v14  ;;  %v4165_v34 = vld [vmem:[#allocation15 + $0x20] sm:$0xff]  ;;  %vm8771_vm4 = vmmov %vm8759_vm11 }
0x257d   :  { %5477 = vmatmul.mubr.msk.f32.vlgmr.msra.gmra.mrb[26].mxu1 %vm8763_vm5, %v3892_v19  ;;  %v4166_v19 = vld [vmem:[#allocation15 + $0x28] sm:$0xff]  ;;  %vm8773_vm5 = vmmov %vm8764_vm13 }
0x257e   :  { %v8300_v8 = vpack.c.bf16 %v4166_v19, %v4165_v34 }
0x2650   :  { %v3979_v16 = vpop.f32.mrb[26].mxu1 }
0x2651   :  { %v3980_v56 = vadd.f32 %v4984_v38, %v3979_v16  ;;  %v5478_v60 = vpop.f32.mrb[27].mxu1 }
0x2652   :  { %v8769_v60 = vld [vmem:[#allocation39_spill] sm:$0xff] }
0x2653   :  { %v4986_v50 = vmul.f32 -1.442695, %v3980_v56 }
0x2655   :  { %6085 = vpow2.f32 %v4986_v50 }
0x265f   :  { %v6086_v27 = vpop.eup %6085 }
0x2660   :  { %v3986_v20 = vadd.f32 1.0, %v6086_v27 }
0x2662   :  { %6087 = vrcp.f32 %v3986_v20 }
0x266c   :  { %v6088_v39 = vpop.eup %6087 }
0x266d   :  { %3990 = vrot.lane.b32.xlu0 %v6088_v39, %s6369_s13 }
0x26df   :  { %v3991_v30 = vpop.permute.xlu0 %3990 }
0x26e0   :  { %v3993_v13 = vmul.f32 %v3991_v30, %v3980_v56  ;;  %v8772_v30 = vld [vmem:[#allocation37_spill] sm:$0xff] }
0x26e2   :  { %5488 = vmatmul.mubr.msk.f32.vlgmr.msra.gmra.mrb[52].mxu0 %vm8764_vm13, %v3993_v13  ;;  %vm8774_vm13 = vmmov %vm8773_vm5 }
0x26e3   :  { %5837 = vmatpush3.bf16.msra.mxu0 %v8286_v26 }
0x26e4   :  { %5839 = vmatprep.subr.bf16.mxu0 %v8288_v36 }
0x26e7   :  { %5841 = vmatpush3.bf16.msra.mxu0 %v8288_v36 }
0x26e8   :  { %5843 = vmatprep.subr.bf16.mxu0 %v8300_v8 }
0x26eb   :  { %5845 = vmatpush3.bf16.msra.mxu0 %v8300_v8 }
0x26ec   :  { %5868 = vmatprep.subr.bf16.mxu0 %v8628_v32 }
0x27b5   :  { %v4068_v57 = vpop.f32.mrb[52].mxu0 }
0x27b6   :  { %v4074_v41 = vrot.slane %v4068_v57, 7  ;;  %v5489_v55 = vpop.f32.mrb[53].mxu0  ;;  %v4072_v59 = vsel %vm8765_vm12, %v4068_v57, 0.0  ;;  %vm8775_vm12 = vcmask 392192  }
0x27b8   :  { %4075 = vrot.lane.b32.xlu1 %v4074_v41, %s6367_s28 }
0x282a   :  { %v4076_v10 = vpop.permute.xlu1 %4075 }
0x282b   :  { %v4078_v33 = vsel %vm8746_vm7, 0.0, %v4076_v10  ;;  %vm8776_vm7 = vmmov %vm8775_vm12 }
0x282c   :  { %v4079_v46 = vadd.f32 %v4078_v33, %v4072_v59 }
0x282e   :  { %v4084_v22 = vadd.f32 %v4988_v6, %v4079_v46 }
0x2830   :  { %v4085_v21 = vmax.f32 %v4084_v22, 0.0 }
0x2832   :  { %4117 = vrot.lane.b32.xlu0 %v4085_v21, %s6369_s13  ;;  %v4091_v9 = vrot.slane %v4085_v21, 6  ;;  %v4087_v51 = vrot.slane %v4085_v21, 7  ;;  %v4100_v28 = vrot.slane %v4085_v21, 4  ;;  %v4095_v12 = vrot.slane %v4085_v21, 5 }
0x2833   :  { %v4104_v40 = vrot.slane %v4085_v21, 3  ;;  %v4113_v61 = vrot.slane %v4085_v21, 1  ;;  %v4108_v49 = vrot.slane %v4085_v21, 2 }
0x2834   :  { %4092 = vrot.lane.b32.xlu1 %v4091_v9, %s6369_s13 }
0x2836   :  { %4088 = vrot.lane.b32.xlu0 %v4087_v51, %s6364_s27 }
0x2838   :  { %4101 = vrot.lane.b32.xlu1 %v4100_v28, %s6364_s27 }
0x283a   :  { %4096 = vrot.lane.b32.xlu0 %v4095_v12, %s6368_s4 }
0x283c   :  { %4105 = vrot.lane.b32.xlu1 %v4104_v40, %s6369_s13  ;;  %v4276_v40 = vld [vmem:[#allocation16] sm:$0xff] }
0x283e   :  { %4114 = vrot.lane.b32.xlu0 %v4113_v61, %s6364_s27  ;;  %v4277_v61 = vld [vmem:[#allocation16 + $0x8] sm:$0xff] }
0x2840   :  { %4109 = vrot.lane.b32.xlu1 %v4108_v49, %s6368_s4 }
0x2842   :  { %4120 = vrot.lane.b32.xlu0 %v4087_v51, %s6368_s4 }
0x28a4   :  { %v4118_v62 = vpop.permute.xlu0 %4117 }
0x28a6   :  { %v4093_v47 = vpop.permute.xlu1 %4092 }
0x28a8   :  { %v4089_v3 = vpop.permute.xlu0 %4088 }
0x28a9   :  { %v4123_v58 = vsel %vm8766_vm9, %v4085_v21, %v4089_v3  ;;  %vm8777_vm9 = vmmov %vm8773_vm5 }
0x28aa   :  { %v4102_v52 = vpop.permute.xlu1 %4101  ;;  %v4124_v43 = vsel %vm8767_vm14, %v4123_v58, %v4093_v47  ;;  %vm8779_vm14 = vcmask 785408  }
0x28ac   :  { %v4097_v4 = vpop.permute.xlu0 %4096 }
0x28ad   :  { %v4125_v24 = vsel %vm8759_vm11, %v4124_v43, %v4097_v4  ;;  %v4383_v43 = vadd.f32 %v8251_v1, %v2565_v15  ;;  %vm8780_vm11 = vmmov %vm8768_vm6 }
0x28ae   :  { %v4126_v14 = vsel %vm8760_vm8, %v4125_v24, %v4095_v12  ;;  %v4106_v7 = vpop.permute.xlu1 %4105  ;;  %vm8781_vm8 = vmmov %vm8773_vm5 }
0x28af   :  { %v4127_v18 = vsel %vm333_vm2, %v4126_v14, %v4102_v52  ;;  %v4389_v14 = vrot.slane %v4383_v43, 2 }
0x28b0   :  { %v4115_v0 = vpop.permute.xlu0 %4114  ;;  %v4128_v38 = vsel %vm283_vm0, %v4127_v18, %v4106_v7  ;;  %v4385_v7 = vrot.slane %v4383_v43, 1 }
0x28b1   :  { %v4130_v5 = vsel %vm8768_vm6, %v4108_v49, %v4115_v0  ;;  %v5846_v49 = vpack.c.bf16 %v4277_v61, %v4276_v40  ;;  %vm8782_vm6 = vmmov %vm8770_vm3 }
0x28b2   :  { %v4110_v16 = vpop.permute.xlu1 %4109  ;;  %v4131_v27 = vsel %vm8770_vm3, %v4130_v5, %v4118_v62  ;;  %vm8783_vm3 = vmmov %vm8780_vm11 }
0x28b3   :  { %v4129_v56 = vsel %vm233_vm1, %v4128_v38, %v4110_v16  ;;  %5847 = vmatprep.subr.bf16.mxu1 %v5846_v49 }
0x28b4   :  { %v4135_v50 = vadd.f32 %v4129_v56, %v8769_v60  ;;  %v4121_v20 = vpop.permute.xlu0 %4120  ;;  %5849 = vmatpush3.bf16.msra.mxu1 %v5846_v49 }
0x28b5   :  { %v4132_v39 = vsel %vm8771_vm4, %v4131_v27, %v4121_v20  ;;  %5850 = vmatprep.subr.bf16.mxu1 %v8628_v32  ;;  %vm8784_vm4 = vmmov %vm8783_vm3 }
0x28b6   :  { %v4136_v13 = vadd.f32 %v4132_v39, %v8772_v30  ;;  %v4139_v41 = vrot.slane %v4135_v50, 1  ;;  %v4148_v59 = vrot.slane %v4135_v50, 2 }
0x28b8   :  { %v4140_v57 = vrot.slane %v4136_v13, 1  ;;  %v4149_v55 = vrot.slane %v4136_v13, 2 }
0x28ba   :  { %4144 = vrot.lane.b32.xlu0 %v4140_v57, %s6343_s9  ;;  %v4141_v10 = vsel %vm233_vm1, %v4139_v41, %v4140_v57  ;;  %v4150_v6 = vsel %vm283_vm0, %v4148_v59, %v4149_v55 }
0x28bb   :  { %4142 = vrot.lane.b32.xlu1 %v4141_v10, %s6343_s9 }
0x28be   :  { %4153 = vrot.lane.b32.xlu0 %v4149_v55, %s6365_s21 }
0x28bf   :  { %4151 = vrot.lane.b32.xlu1 %v4150_v6, %s6365_s21 }
0x292c   :  { %v4145_v33 = vpop.permute.xlu0 %4144 }
0x292d   :  { %v4143_v46 = vpop.permute.xlu1 %4142  ;;  %v4158_v51 = vsel %vm625_vm10, %v4136_v13, %v4145_v33 }
0x292e   :  { %v4157_v21 = vsel %vm625_vm10, %v4135_v50, %v4143_v46 }
0x2930   :  { %v4154_v22 = vpop.permute.xlu0 %4153 }
0x2931   :  { %v4152_v9 = vpop.permute.xlu1 %4151  ;;  %v4160_v12 = vsel %vm8774_vm13, %v4158_v51, %v4154_v22  ;;  %vm8786_vm13 = vcmask 1042432  }
0x2932   :  { %v4159_v28 = vsel %vm8773_vm5, %v4157_v21, %v4152_v9  ;;  %vm8785_vm5 = vmmov %vm8782_vm6 }
0x2933   :  { %5502 = vmatprep.mubr.msk.f32.mxu0 %vm8775_vm12, %v4159_v28  ;;  %vm8787_vm12 = vcmask 1043456  }
0x2934   :  { %5503 = vmatmul.mubr.msk.f32.vlgmr.msra.gmra.mrb[54].mxu0 %vm8776_vm7, %v4160_v12  ;;  %vm8788_vm7 = vmmov %vm8783_vm3 }
0x2935   :  { %5870 = vmatpush3.bf16.msra.mxu0 %v8260_v42  ;;  %5547 = vmatprep.mubr.msk.f32.mxu0 %vm6361_vm15, %v8671_v25  ;;  %v4989_v42 = vld [vmem:[%s8484_s22] ss:$0 sm:$0xff] }
0x2936   :  { %5871 = vmatprep.subr.bf16.mxu0 %v8628_v32 }
0x2939   :  { %5873 = vmatpush3.bf16.msra.mxu0 %v8263_v48 }
0x293a   :  { %5875 = vmatprep.subr.bf16.mxu0 %v8286_v26 }
0x2a07   :  { %v5504_v17 = vpop.f32.mrb[54].mxu0 }
0x2a08   :  { %v4250_v2 = vadd.f32 %v5504_v17, %v4989_v42  ;;  %v4244_v35 = vpop.f32.mrb[55].mxu0 }
0x2a09   :  { %v4245_v11 = vadd.f32 %v4989_v42, %v4244_v35 }
0x2a0a   :  { %v4993_v62 = vmul.f32 -1.442695, %v4250_v2 }
0x2a0b   :  { %v4992_v47 = vmul.f32 -1.442695, %v4245_v11 }
0x2a0c   :  { %6089 = vpow2.f32 %v4993_v62 }
0x2a0d   :  { %6091 = vpow2.f32 %v4992_v47 }
0x2a16   :  { %v6090_v48 = vpop.eup %6089 }
0x2a17   :  { %v6092_v3 = vpop.eup %6091  ;;  %v4260_v58 = vadd.f32 1.0, %v6090_v48 }
0x2a18   :  { %v4259_v52 = vadd.f32 1.0, %v6092_v3 }
0x2a19   :  { %6093 = vrcp.f32 %v4260_v58 }
0x2a1a   :  { %6095 = vrcp.f32 %v4259_v52 }
0x2a23   :  { %v6094_v4 = vpop.eup %6093 }
0x2a24   :  { %v6096_v24 = vpop.eup %6095  ;;  %4269 = vrot.lane.b32.xlu0 %v6094_v4, %s6364_s27 }
0x2a25   :  { %4267 = vrot.lane.b32.xlu1 %v6096_v24, %s6364_s27 }
0x2a28   :  { %4390 = vrot.lane.b32.xlu0 %v4389_v14, %s6367_s28 }
0x2a29   :  { %4386 = vrot.lane.b32.xlu1 %v4385_v7, %s6365_s21 }
0x2a96   :  { %v4270_v34 = vpop.permute.xlu0 %4269 }
0x2a97   :  { %v4268_v19 = vpop.permute.xlu1 %4267  ;;  %v4274_v0 = vmul.f32 %v4270_v34, %v4250_v2 }
0x2a98   :  { %v4273_v18 = vmul.f32 %v4268_v19, %v4245_v11 }
0x2a9a   :  { %5509 = vmatprep.mubr.msk.f32.mxu1 %vm625_vm10, %v4273_v18 }
0x2a9b   :  { %5510 = vmatmul.mubr.msk.f32.vlgmr.msra.gmra.mrb[28].mxu1 %vm625_vm10, %v4274_v0  ;;  %v4387_v31 = vpop.permute.xlu1 %4386 }
0x2a9c   :  { %5852 = vmatpush3.bf16.msra.mxu1 %v8198_v54  ;;  %5536 = vmatprep.mubr.msk.f32.mxu1 %vm6361_vm15, %v8671_v25  ;;  %v4393_v15 = vsel %vm8777_vm9, %v4383_v43, %v4387_v31  ;;  %v4391_v25 = vpop.permute.xlu0 %4390  ;;  %vm8778_vm15 = vcmask 523264   ;;  %vm8789_vm9 = vmmov %vm8785_vm5 }
0x2a9d   :  { %5853 = vmatprep.subr.bf16.mxu1 %v8628_v32  ;;  %v4394_v54 = vsel %vm8778_vm15, %v4393_v15, %v4391_v25  ;;  %vm8790_vm15 = vmmov %vm8786_vm13 }
0x2aa0   :  { %5855 = vmatpush3.bf16.msra.mxu1 %v8204_v37  ;;  %v4413_v37 = vrot.slane %v4394_v54, 4 }
0x2aa1   :  { %5856 = vmatprep.subr.bf16.mxu1 %v8628_v32 }
0x2aa4   :  { %5858 = vmatpush3.bf16.msra.mxu1 %v8214_v44 }
0x2aa5   :  { %5859 = vmatprep.subr.bf16.mxu1 %v8628_v32 }
0x2aa8   :  { %5861 = vmatpush3.bf16.msra.mxu1 %v8224_v45 }
0x2aa9   :  { %5862 = vmatprep.subr.bf16.mxu1 %v8628_v32 }
0x2aac   :  { %5864 = vmatpush3.bf16.msra.mxu1 %v8234_v53 }
0x2aad   :  { %5865 = vmatprep.subr.bf16.mxu1 %v8628_v32 }
0x2ab0   :  { %5867 = vmatpush3.bf16.msra.mxu1 %v8244_v23  ;;  %v4997_v23 = vld [vmem:[%s8480_s18 + $0x1] ss:$0 sm:$0xff] }
0x2ab1   :  { %5887 = vmatprep.subr.bf16.mxu1 %v5846_v49 }
0x2ab3   :  { %5537 = vmatmul.mubr.msk.f32.vlgmr.msra.gmra.mrb[30].mxu1 %vm8779_vm14, %v4413_v37  ;;  %vm8793_vm14 = vcmask 392192  }
0x2ab4   :  { %5889 = vmatpush3.bf16.msra.mxu1 %v5846_v49 }
0x2b6e   :  { %v8359_v44 = vpop.f32.mrb[28].mxu1 }
0x2b6f   :  { %v4363_v45 = vrot.slane %v8359_v44, 7  ;;  %v8362_v1 = vpop.f32.mrb[29].mxu1 }
0x2b70   :  { %v4362_v53 = vrot.slane %v8362_v1, 7 }
0x2b72   :  { %v8368_v32 = vsel %vm8780_vm11, %v4362_v53, %v4363_v45  ;;  %vm8794_vm11 = vmmov %vm8793_vm14 }
0x2b86   :  { %v4482_v5 = vpop.f32.mrb[30].mxu1 }
0x2b87   :  { %v4483_v38 = vadd.f32 %v4997_v23, %v4482_v5  ;;  %v5538_v16 = vpop.f32.mrb[31].mxu1 }
0x2b89   :  { %v4999_v56 = vmul.f32 -1.442695, %v4483_v38 }
0x2b8b   :  { %6097 = vpow2.f32 %v4999_v56 }
0x2b95   :  { %v6098_v60 = vpop.eup %6097 }
0x2b96   :  { %v4489_v50 = vadd.f32 1.0, %v6098_v60 }
0x2b98   :  { %6099 = vrcp.f32 %v4489_v50 }
0x2ba2   :  { %v6100_v27 = vpop.eup %6099 }
0x2ba3   :  { %4493 = vrot.lane.b32.xlu1 %v6100_v27, %s6369_s13 }
0x2c15   :  { %v4494_v20 = vpop.permute.xlu1 %4493 }
0x2c16   :  { %v4496_v39 = vmul.f32 %v4494_v20, %v4483_v38  ;;  %v5002_v38 = vld [vmem:[%s8484_s22 + $0x1] ss:$0 sm:$0xff] }
0x2c18   :  { %5548 = vmatmul.mubr.msk.f32.vlgmr.msra.gmra.mrb[56].mxu0 %vm8781_vm8, %v4496_v39 }
0x2c19   :  { %5877 = vmatpush3.bf16.msra.mxu0 %v8286_v26  ;;  %v5001_v26 = vld [vmem:[%s8482_s20 + $0x1] ss:$0 sm:$0xff] }
0x2c1a   :  { %5879 = vmatprep.subr.bf16.mxu0 %v8288_v36 }
0x2c1d   :  { %5881 = vmatpush3.bf16.msra.mxu0 %v8288_v36 }
0x2c1e   :  { %5883 = vmatprep.subr.bf16.mxu0 %v8300_v8 }
0x2c21   :  { %5885 = vmatpush3.bf16.msra.mxu0 %v8300_v8 }
0x2ceb   :  { %v4571_v30 = vpop.f32.mrb[56].mxu0 }
0x2cec   :  { %v4577_v13 = vrot.slane %v4571_v30, 7  ;;  %v5549_v57 = vpop.f32.mrb[57].mxu0  ;;  %v4575_v55 = vsel %vm8782_vm6, %v4571_v30, 0.0 }
0x2cee   :  { %4578 = vrot.lane.b32.xlu0 %v4577_v13, %s6367_s28  ;;  %s8795_s28 = sld [smem:[#allocation64_spill]] }
0x2d60   :  { %v4579_v41 = vpop.permute.xlu0 %4578 }
0x2d61   :  { %v4581_v10 = vsel %vm8783_vm3, 0.0, %v4579_v41 }
0x2d62   :  { %v4582_v59 = vadd.f32 %v4581_v10, %v4575_v55 }
0x2d64   :  { %v4587_v36 = vadd.f32 %v5001_v26, %v4582_v59 }
0x2d66   :  { %v4588_v6 = vmax.f32 %v4587_v36, 0.0 }
0x2d68   :  { %4620 = vrot.lane.b32.xlu1 %v4588_v6, %s6369_s13  ;;  %v4594_v8 = vrot.slane %v4588_v6, 6  ;;  %v4590_v33 = vrot.slane %v4588_v6, 7  ;;  %v4603_v46 = vrot.slane %v4588_v6, 4  ;;  %v4598_v22 = vrot.slane %v4588_v6, 5 }
0x2d69   :  { %v4607_v21 = vrot.slane %v4588_v6, 3  ;;  %v4616_v9 = vrot.slane %v4588_v6, 1  ;;  %v4611_v51 = vrot.slane %v4588_v6, 2 }
0x2d6a   :  { %4595 = vrot.lane.b32.xlu0 %v4594_v8, %s6369_s13  ;;  %v4996_v8 = vld [vmem:[%s8795_s28] ss:$0 sm:$0xff] }
0x2d6c   :  { %4591 = vrot.lane.b32.xlu1 %v4590_v33, %s6364_s27 }
0x2d6e   :  { %4604 = vrot.lane.b32.xlu0 %v4603_v46, %s6364_s27 }
0x2d70   :  { %4599 = vrot.lane.b32.xlu1 %v4598_v22, %s6368_s4 }
0x2d72   :  { %4608 = vrot.lane.b32.xlu0 %v4607_v21, %s6369_s13 }
0x2d74   :  { %4617 = vrot.lane.b32.xlu1 %v4616_v9, %s6364_s27 }
0x2d76   :  { %4612 = vrot.lane.b32.xlu0 %v4611_v51, %s6368_s4 }
0x2d78   :  { %4623 = vrot.lane.b32.xlu1 %v4590_v33, %s6368_s4 }
0x2dda   :  { %v4621_v28 = vpop.permute.xlu1 %4620 }
0x2ddc   :  { %v4596_v12 = vpop.permute.xlu0 %4595 }
0x2dde   :  { %v4592_v40 = vpop.permute.xlu1 %4591 }
0x2ddf   :  { %v4626_v61 = vsel %vm8784_vm4, %v4588_v6, %v4592_v40 }
0x2de0   :  { %v4605_v49 = vpop.permute.xlu0 %4604  ;;  %v4627_v42 = vsel %vm8785_vm5, %v4626_v61, %v4596_v12  ;;  %v5009_v61 = vld [vmem:[%s8795_s28 + $0x1] ss:$0 sm:$0xff] }
0x2de2   :  { %v4600_v17 = vpop.permute.xlu1 %4599 }
0x2de3   :  { %v4628_v2 = vsel %vm8786_vm13, %v4627_v42, %v4600_v17 }
0x2de4   :  { %v4629_v35 = vsel %vm8787_vm12, %v4628_v2, %v4598_v22  ;;  %v4609_v11 = vpop.permute.xlu0 %4608 }
0x2de5   :  { %v4630_v62 = vsel %vm333_vm2, %v4629_v35, %v4605_v49  ;;  %vm8791_vm2 = vmmov %vm8781_vm8 }
0x2de6   :  { %v4618_v47 = vpop.permute.xlu1 %4617  ;;  %v4631_v3 = vsel %vm283_vm0, %v4630_v62, %v4609_v11  ;;  %vm8797_vm8 = vmmov %vm8785_vm5 }
0x2de7   :  { %v4633_v48 = vsel %vm8788_vm7, %v4611_v51, %v4618_v47 }
0x2de8   :  { %v4613_v58 = vpop.permute.xlu0 %4612  ;;  %v4634_v4 = vsel %vm8789_vm9, %v4633_v48, %v4621_v28 }
0x2de9   :  { %v4632_v52 = vsel %vm233_vm1, %v4631_v3, %v4613_v58 }
0x2dea   :  { %v4638_v43 = vadd.f32 %v4632_v52, %v7829_v63  ;;  %v4624_v24 = vpop.permute.xlu1 %4623 }
0x2deb   :  { %v4635_v14 = vsel %vm8790_vm15, %v4634_v4, %v4624_v24 }
0x2dec   :  { %v4639_v7 = vadd.f32 %v4635_v14, %v7822_v29  ;;  %v4642_v19 = vrot.slane %v4638_v43, 1  ;;  %v4651_v31 = vrot.slane %v4638_v43, 2 }
0x2dee   :  { %v4643_v34 = vrot.slane %v4639_v7, 1  ;;  %v4652_v18 = vrot.slane %v4639_v7, 2 }
0x2df0   :  { %4647 = vrot.lane.b32.xlu1 %v4643_v34, %s6343_s9  ;;  %v4644_v0 = vsel %vm233_vm1, %v4642_v19, %v4643_v34  ;;  %v4653_v63 = vsel %vm283_vm0, %v4651_v31, %v4652_v18  ;;  %vm8792_vm1 = vmmov %vm8791_vm2 }
0x2df1   :  { %4645 = vrot.lane.b32.xlu0 %v4644_v0, %s6343_s9  ;;  %vm8796_vm0 = vmmov %vm8783_vm3 }
0x2df2   :  { %vm8798_vm6 = vmmov %vm8792_vm1 }
0x2df3   :  { %vm8800_vm3 = vmmov %vm8796_vm0 }
0x2df4   :  { %4656 = vrot.lane.b32.xlu1 %v4652_v18, %s6365_s21  ;;  %vm8801_vm4 = vmmov %vm8796_vm0 }
0x2df5   :  { %4654 = vrot.lane.b32.xlu0 %v4653_v63, %s6365_s21  ;;  %vm8802_vm13 = vmmov %vm8792_vm1 }
0x2e62   :  { %v4648_v15 = vpop.permute.xlu1 %4647 }
0x2e63   :  { %v4646_v25 = vpop.permute.xlu0 %4645  ;;  %v4661_v45 = vsel %vm625_vm10, %v4639_v7, %v4648_v15 }
0x2e64   :  { %v4660_v29 = vsel %vm625_vm10, %v4638_v43, %v4646_v25 }
0x2e66   :  { %v4657_v54 = vpop.permute.xlu1 %4656 }
0x2e67   :  { %v4655_v37 = vpop.permute.xlu0 %4654  ;;  %v4663_v5 = vsel %vm8792_vm1, %v4661_v45, %v4657_v54 }
0x2e68   :  { %v4662_v23 = vsel %vm8791_vm2, %v4660_v29, %v4655_v37 }
0x2e69   :  { %5562 = vmatprep.mubr.msk.f32.mxu0 %vm8793_vm14, %v4662_v23 }
0x2e6a   :  { %5563 = vmatmul.mubr.msk.f32.vlgmr.msra.gmra.mrb[58].mxu0 %vm8794_vm11, %v4663_v5 }
0x2f3d   :  { %v5564_v16 = vpop.f32.mrb[58].mxu0 }
0x2f3e   :  { %v4753_v56 = vadd.f32 %v5564_v16, %v5002_v38  ;;  %v4747_v60 = vpop.f32.mrb[59].mxu0 }
0x2f3f   :  { %v4748_v50 = vadd.f32 %v5002_v38, %v4747_v60 }
0x2f40   :  { %v5006_v27 = vmul.f32 -1.442695, %v4753_v56 }
0x2f41   :  { %v5005_v20 = vmul.f32 -1.442695, %v4748_v50 }
0x2f42   :  { %6101 = vpow2.f32 %v5006_v27 }
0x2f43   :  { %6103 = vpow2.f32 %v5005_v20 }
0x2f4c   :  { %v6102_v39 = vpop.eup %6101 }
0x2f4d   :  { %v6104_v30 = vpop.eup %6103  ;;  %v4763_v13 = vadd.f32 1.0, %v6102_v39 }
0x2f4e   :  { %v4762_v57 = vadd.f32 1.0, %v6104_v30 }
0x2f4f   :  { %6105 = vrcp.f32 %v4763_v13 }
0x2f50   :  { %6107 = vrcp.f32 %v4762_v57 }
0x2f59   :  { %v6106_v41 = vpop.eup %6105 }
0x2f5a   :  { %v6108_v55 = vpop.eup %6107  ;;  %4772 = vrot.lane.b32.xlu1 %v6106_v41, %s6364_s27 }
0x2f5b   :  { %4770 = vrot.lane.b32.xlu0 %v6108_v55, %s6364_s27 }
0x2f5f   :  { %4365 = vrot.lane.b32.xlu0 %v4362_v53, %s6369_s13 }
0x2f63   :  { %4367 = vrot.lane.b32.xlu0 %v8368_v32, %s6369_s13  ;;  %v4359_v32 = vsel %vm8797_vm8, %v8359_v44, 0.0 }
0x2fcc   :  { %v4773_v26 = vpop.permute.xlu1 %4772 }
0x2fcd   :  { %v4771_v10 = vpop.permute.xlu0 %4770  ;;  %v4777_v36 = vmul.f32 %v4773_v26, %v4753_v56 }
0x2fce   :  { %v4776_v59 = vmul.f32 %v4771_v10, %v4748_v50 }
0x2fd0   :  { %5569 = vmatprep.mubr.msk.f32.mxu1 %vm625_vm10, %v4776_v59 }
0x2fd1   :  { %5570 = vmatmul.mubr.msk.f32.vlgmr.msra.gmra.mrb[32].mxu1 %vm625_vm10, %v4777_v36  ;;  %v4366_v6 = vpop.permute.xlu0 %4365  ;;  %vm4381_vm10 = vcmask 256000  }
0x2fd2   :  { %v4371_v33 = vsel %vm8796_vm0, 0.0, %v4366_v6 }
0x2fd3   :  { %v4372_v53 = vadd.f32 %v4371_v33, %v8362_v1 }
0x2fd5   :  { %v4378_v46 = vadd.f32 %v4996_v8, %v4372_v53  ;;  %v4368_v22 = vpop.permute.xlu0 %4367 }
0x2fd6   :  { %v4373_v21 = vadd.f32 %v4368_v22, %v4359_v32 }
0x2fd7   :  { %4380 = vst.msk [vmem:[%s8799_s10] sm:$0xff] %vm8798_vm6, %v4378_v46 }
0x2fd8   :  { %v4379_v9 = vadd.f32 %v4996_v8, %v4373_v21 }
0x2fda   :  { %4382 = vst.msk [vmem:[%s8799_s10 + $0x8] sm:$0x7] %vm4381_vm10, %v4379_v9 }
0x30a4   :  { %v5571_v51 = vpop.f32.mrb[32].mxu1 }
0x30a5   :  { %v4866_v1 = vrot.slane %v5571_v51, 7  ;;  %v4853_v28 = vpop.f32.mrb[33].mxu1  ;;  %v4862_v2 = vsel %vm8785_vm5, %v5571_v51, 0.0 }
0x30a6   :  { %v4865_v12 = vrot.slane %v4853_v28, 7 }
0x30a8   :  { %4868 = vrot.lane.b32.xlu1 %v4865_v12, %s6369_s13  ;;  %v4867_v44 = vsel %vm8800_vm3, %v4865_v12, %v4866_v1 }
0x30ac   :  { %4870 = vrot.lane.b32.xlu1 %v4867_v44, %s6369_s13 }
0x311a   :  { %v4869_v40 = vpop.permute.xlu1 %4868 }
0x311b   :  { %v4874_v49 = vsel %vm8801_vm4, 0.0, %v4869_v40 }
0x311c   :  { %v4875_v42 = vadd.f32 %v4874_v49, %v4853_v28 }
0x311e   :  { %v4881_v17 = vadd.f32 %v5009_v61, %v4875_v42  ;;  %v4871_v35 = vpop.permute.xlu1 %4870 }
0x311f   :  { %v4876_v11 = vadd.f32 %v4871_v35, %v4862_v2 }
0x3120   :  { %5010 = vst.msk [vmem:[%s8799_s10 + $0x10] sm:$0xff] %vm8802_vm13, %v4881_v17 }
0x3121   :  { %v4882_v62 = vadd.f32 %v5009_v61, %v4876_v11 }
0x3123   :  { %5011 = vst.msk [vmem:[%s8799_s10 + $0x18] sm:$0x7] %vm4381_vm10, %v4882_v62 }
0x3124   :  { %4890 = vsyncpa [#allocation3], 1 }
0x3125   :  { %4891 = vsyncpa [#allocation5], 1 }
0x3126   :  { %4892 = vsyncpa [#allocation8], 1 }
0x3127   :  { %4893 = vsyncpa [#allocation11], 1 }
0x3128   :  { %4894 = vsyncpa [#allocation14], 1 }
0x3129   :  { %4895 = vsyncpa [#allocation17], 1 }

</bundles_post_ra>
